<compile_context>
chip_gen: v5e
topology: v5e:2x2
jax: 0.10.0
libtpu: 0.0.40
codegen_flags: <defaults>
</compile_context>

<pallas_src>
import functools

import jax
import jax.numpy as jnp
from jax.experimental import pallas as pl
from jax.experimental.pallas import tpu as pltpu

EPS = 1e-5


def _im2col_slab(xp, H, W, C):
    """xp: (H+2, W+2, C) -> (H*W, 9*C) slab for a 3x3 / stride-1 'SAME' conv."""
    taps = [xp[dy:dy + H, dx:dx + W, :].reshape(H * W, C)
            for dy in range(3) for dx in range(3)]
    return jnp.concatenate(taps, axis=-1)


def conv1_stats_kernel(x_pad_ref, w_ref, z_ref, st_ref, *, H, W, C):
    """conv1 (3x3, SAME) for one image + per-image BN partial sums."""
    xp = x_pad_ref[0]                                     # (H+2, W+2, C)
    slab = _im2col_slab(xp, H, W, C)                      # (HW, 9C)
    acc = jnp.dot(slab, w_ref[...], preferred_element_type=jnp.float32)
    z_ref[0] = acc
    s = jnp.sum(acc, axis=0, keepdims=True)
    ss = jnp.sum(acc * acc, axis=0, keepdims=True)
    st_ref[0] = jnp.concatenate([s, ss], axis=0)          # (2, C)


def bn_relu_conv2_stats_kernel(z1_ref, sc_ref, sh_ref, w_ref, z_ref, st_ref,
                               *, H, W, C):
    """Folded bn1 (scale/shift) + relu + conv2 for one image + BN partials."""
    y = jnp.maximum(z1_ref[0] * sc_ref[...] + sh_ref[...], 0.0)      # (HW, C)
    y = y.reshape(H, W, C)
    # 1-pixel spatial zero-pad built in-register (no full-scratch zero fill).
    zc = jnp.zeros((H, 1, C), jnp.float32)
    zr = jnp.zeros((1, W + 2, C), jnp.float32)
    yp = jnp.concatenate([zc, y, zc], axis=1)                        # (H, W+2, C)
    yp = jnp.concatenate([zr, yp, zr], axis=0)                       # (H+2, W+2, C)
    slab = _im2col_slab(yp, H, W, C)
    acc = jnp.dot(slab, w_ref[...], preferred_element_type=jnp.float32)
    z_ref[0] = acc
    s = jnp.sum(acc, axis=0, keepdims=True)
    ss = jnp.sum(acc * acc, axis=0, keepdims=True)
    st_ref[0] = jnp.concatenate([s, ss], axis=0)


def bn_add_relu_kernel(z2_ref, sc_ref, sh_ref, res_ref, out_ref):
    """Folded bn2 (scale/shift) + residual add + relu, lane-dense epilogue."""
    out = z2_ref[0] * sc_ref[...] + sh_ref[...] + res_ref[0]
    out_ref[0] = jnp.maximum(out, 0.0).astype(out_ref.dtype)


def _bn_scale_shift(partials, gamma, beta, count):
    """Reduce per-image (sum, sumsq) partials -> folded BN scale/shift (1, Cp)."""
    tot = jnp.sum(partials, axis=0)                       # (2, Cp)
    mean = tot[0:1] / count
    var = jnp.maximum(tot[1:2] / count - mean * mean, 0.0)
    scale = gamma * jax.lax.rsqrt(var + EPS)
    shift = beta - mean * scale
    return scale, shift


@jax.jit
def basic_block(x_nchw, w1, w2, g1, b1, g2, b2):
    """NCHW in / NCHW out, matching the PyTorch BasicBlock forward."""
    N, Cin, H, W = x_nchw.shape
    Cout = w1.shape[-1]
    assert Cin == Cout, "stride=1 / downsample=None implies inplanes == planes"
    HW = H * W
    NP = N * HW
    Cp = ((max(Cin, Cout) + 127) // 128) * 128            # lane-dense channels

    x = jnp.transpose(x_nchw, (0, 2, 3, 1)).astype(jnp.float32)       # NHWC
    x_cp = jnp.pad(x, ((0, 0), (0, 0), (0, 0), (0, Cp - Cin)))
    x_res = x_cp.reshape(N, HW, Cp)                                   # residual
    x_pad = jnp.pad(x_cp, ((0, 0), (1, 1), (1, 1), (0, 0)))           # SAME pad

    def pack_w(w):                                    # HWIO -> (9*Cp, Cp), f32
        wp = jnp.pad(w.astype(jnp.float32),
                     ((0, 0), (0, 0), (0, Cp - w.shape[2]), (0, Cp - w.shape[3])))
        return wp.reshape(9 * Cp, Cp)                 # (dy, dx, cin) order == slab order

    w1m, w2m = pack_w(w1), pack_w(w2)

    def pack_v(v):
        return jnp.pad(v.astype(jnp.float32), (0, Cp - v.shape[0])).reshape(1, Cp)

    g1p, b1p, g2p, b2p = pack_v(g1), pack_v(b1), pack_v(g2), pack_v(b2)

    cparams = pltpu.CompilerParams(
        dimension_semantics=("parallel",),            # shard batch across TCs (v7x)
        vmem_limit_bytes=32 * 1024 * 1024,            # explicit, safe on v5e/v6e/v7x
    )
    img_spec = lambda: pl.BlockSpec((1, HW, Cp), lambda i: (i, 0, 0))
    st_spec = lambda: pl.BlockSpec((1, 2, Cp), lambda i: (i, 0, 0))
    vec_spec = lambda: pl.BlockSpec((1, Cp), lambda i: (0, 0))
    w_spec = lambda: pl.BlockSpec((9 * Cp, Cp), lambda i: (0, 0))

    # ---- stage 1: conv1 + per-image BN1 partial sums ------------------------
    z1, st1 = pl.pallas_call(
        functools.partial(conv1_stats_kernel, H=H, W=W, C=Cp),
        grid=(N,),
        out_shape=(jax.ShapeDtypeStruct((N, HW, Cp), jnp.float32),
                   jax.ShapeDtypeStruct((N, 2, Cp), jnp.float32)),
        in_specs=[pl.BlockSpec((1, H + 2, W + 2, Cp), lambda i: (i, 0, 0, 0)),
                  w_spec()],
        out_specs=(img_spec(), st_spec()),
        compiler_params=cparams,
    )(x_pad, w1m)
    sc1, sh1 = _bn_scale_shift(st1, g1p, b1p, NP)

    # ---- stage 2: bn1 + relu + conv2 + per-image BN2 partial sums -----------
    z2, st2 = pl.pallas_call(
        functools.partial(bn_relu_conv2_stats_kernel, H=H, W=W, C=Cp),
        grid=(N,),
        out_shape=(jax.ShapeDtypeStruct((N, HW, Cp), jnp.float32),
                   jax.ShapeDtypeStruct((N, 2, Cp), jnp.float32)),
        in_specs=[img_spec(), vec_spec(), vec_spec(), w_spec()],
        out_specs=(img_spec(), st_spec()),
        compiler_params=cparams,
    )(z1, sc1, sh1, w2m)
    sc2, sh2 = _bn_scale_shift(st2, g2p, b2p, NP)

    # ---- stage 3: bn2 + residual add + relu ---------------------------------
    out = pl.pallas_call(
        bn_add_relu_kernel,
        grid=(N,),
        out_shape=jax.ShapeDtypeStruct((N, HW, Cp), x.dtype),
        in_specs=[img_spec(), vec_spec(), vec_spec(), img_spec()],
        out_specs=img_spec(),
        compiler_params=cparams,
    )(z2, sc2, sh2, x_res)

    out = out.reshape(N, H, W, Cp)[..., :Cout]
    return jnp.transpose(out, (0, 3, 1, 2))               # NHWC -> NCHW


def ref_basic_block(x_nchw, w1, w2, g1, b1, g2, b2):
    """Pure-JAX reference (same math, XLA convs) for validation."""
    x = jnp.transpose(x_nchw, (0, 2, 3, 1)).astype(jnp.float32)

    def conv(y, w):
        return jax.lax.conv_general_dilated(
            y, w, window_strides=(1, 1), padding="SAME",
            dimension_numbers=("NHWC", "HWIO", "NHWC"))

    def bn(y, g, b):
        m = jnp.mean(y, axis=(0, 1, 2), keepdims=True)
        v = jnp.mean((y - m) ** 2, axis=(0, 1, 2), keepdims=True)
        return (y - m) * jax.lax.rsqrt(v + EPS) * g + b

    y = jnp.maximum(bn(conv(x, w1), g1, b1), 0.0)
    y = bn(conv(y, w2), g2, b2) + x
    y = jnp.maximum(y, 0.0)
    return jnp.transpose(y, (0, 3, 1, 2))


if __name__ == "__main__":
    key = jax.random.PRNGKey(0)
    N, C, H, W = 2, 4, 16, 16          # inplanes == planes == 4, stride = 1
    planes = C

    k_x, k_w1, k_w2, k_g1, k_b1, k_g2, k_b2 = jax.random.split(key, 7)
    x = jax.random.normal(k_x, (N, C, H, W), jnp.float32)

    # Deterministic synthetic params (HWIO conv weights; BN gamma/beta).
    w1 = jax.random.normal(k_w1, (3, 3, C, planes), jnp.float32) * 0.1
    w2 = jax.random.normal(k_w2, (3, 3, planes, planes), jnp.float32) * 0.1
    g1 = 1.0 + 0.1 * jax.random.normal(k_g1, (planes,), jnp.float32)
    b1 = 0.1 * jax.random.normal(k_b1, (planes,), jnp.float32)
    g2 = 1.0 + 0.1 * jax.random.normal(k_g2, (planes,), jnp.float32)
    b2 = 0.1 * jax.random.normal(k_b2, (planes,), jnp.float32)

    out = basic_block(x, w1, w2, g1, b1, g2, b2)
    out = jax.block_until_ready(out)

    ref = ref_basic_block(x, w1, w2, g1, b1, g2, b2)
    assert out.shape == (N, planes, H, W), out.shape
    err = float(jnp.max(jnp.abs(out - ref)))
    assert jnp.allclose(out, ref, atol=1e-3, rtol=1e-3), err

    print("KERNEL_OK")
</pallas_src>

<mosaic_0001>
module attributes {stable_mosaic.version = 11 : i64} {
  func.func @bn_add_relu_kernel(%arg0: i32, %arg1: memref<1x256x128xf32, #tpu.memory_space<vmem>>, %arg2: memref<1x128xf32, #tpu.memory_space<vmem>>, %arg3: memref<1x128xf32, #tpu.memory_space<vmem>>, %arg4: memref<1x256x128xf32, #tpu.memory_space<vmem>>, %arg5: memref<1x256x128xf32, #tpu.memory_space<vmem>>) attributes {dimension_semantics = [#tpu.dimension_semantics<parallel>], iteration_bounds = array<i64: 2>, scalar_prefetch = 0 : i64, scratch_operands = 0 : i64, tpu.core_type = #tpu.core_type<tc>, window_params = [{transform_indices = @transform_0, window_bounds = array<i64: 1, 256, 128>}, {pipeline_mode = #tpu.pipeline_mode<synchronous>, transform_indices = @transform_1, window_bounds = array<i64: 1, 128>}, {pipeline_mode = #tpu.pipeline_mode<synchronous>, transform_indices = @transform_2, window_bounds = array<i64: 1, 128>}, {transform_indices = @transform_3, window_bounds = array<i64: 1, 256, 128>}, {transform_indices = @transform_4, window_bounds = array<i64: 1, 256, 128>}]} {
    %c0 = arith.constant 0 : index
    %c0_0 = arith.constant 0 : index
    %c0_1 = arith.constant 0 : index
    %0 = vector.load %arg1[%c0, %c0_0, %c0_1] : memref<1x256x128xf32, #tpu.memory_space<vmem>>, vector<1x256x128xf32>
    %1 = vector.shape_cast %0 : vector<1x256x128xf32> to vector<256x128xf32>
    %c0_2 = arith.constant 0 : index
    %c0_3 = arith.constant 0 : index
    %2 = vector.load %arg2[%c0_2, %c0_3] : memref<1x128xf32, #tpu.memory_space<vmem>>, vector<1x128xf32>
    %3 = vector.broadcast %2 : vector<1x128xf32> to vector<256x128xf32>
    %4 = arith.mulf %1, %3 : vector<256x128xf32>
    %c0_4 = arith.constant 0 : index
    %c0_5 = arith.constant 0 : index
    %5 = vector.load %arg3[%c0_4, %c0_5] : memref<1x128xf32, #tpu.memory_space<vmem>>, vector<1x128xf32>
    %6 = vector.broadcast %5 : vector<1x128xf32> to vector<256x128xf32>
    %7 = arith.addf %4, %6 : vector<256x128xf32>
    %c0_6 = arith.constant 0 : index
    %c0_7 = arith.constant 0 : index
    %c0_8 = arith.constant 0 : index
    %8 = vector.load %arg4[%c0_6, %c0_7, %c0_8] : memref<1x256x128xf32, #tpu.memory_space<vmem>>, vector<1x256x128xf32>
    %9 = vector.shape_cast %8 : vector<1x256x128xf32> to vector<256x128xf32>
    %10 = arith.addf %7, %9 : vector<256x128xf32>
    %cst = arith.constant 0.000000e+00 : f32
    %11 = vector.broadcast %cst : f32 to vector<256x128xf32>
    %12 = arith.maximumf %10, %11 : vector<256x128xf32>
    %c0_9 = arith.constant 0 : index
    %c0_10 = arith.constant 0 : index
    %c0_11 = arith.constant 0 : index
    %13 = vector.load %arg5[%c0_9, %c0_10, %c0_11] : memref<1x256x128xf32, #tpu.memory_space<vmem>>, vector<1x256x128xf32>
    %14 = vector.shape_cast %13 : vector<1x256x128xf32> to vector<256x128xf32>
    %15 = vector.shape_cast %12 : vector<256x128xf32> to vector<1x256x128xf32>
    tpu.vector_store %arg5[%c0_9, %c0_10, %c0_11], %15 {strides = array<i32>} : memref<1x256x128xf32, #tpu.memory_space<vmem>>, vector<1x256x128xf32>,
    return
  }
  func.func @transform_0(%arg0: i32) -> (i32, i32, i32) {
    %c0_i32 = arith.constant 0 : i32
    %c0_i32_0 = arith.constant 0 : i32
    %c0_i32_1 = arith.constant 0 : i32
    return %arg0, %c0_i32, %c0_i32_0 : i32, i32, i32
  }
  func.func @transform_1(%arg0: i32) -> (i32, i32) {
    %c0_i32 = arith.constant 0 : i32
    %c0_i32_0 = arith.constant 0 : i32
    %c0_i32_1 = arith.constant 0 : i32
    return %c0_i32, %c0_i32_0 : i32, i32
  }
  func.func @transform_2(%arg0: i32) -> (i32, i32) {
    %c0_i32 = arith.constant 0 : i32
    %c0_i32_0 = arith.constant 0 : i32
    %c0_i32_1 = arith.constant 0 : i32
    return %c0_i32, %c0_i32_0 : i32, i32
  }
  func.func @transform_3(%arg0: i32) -> (i32, i32, i32) {
    %c0_i32 = arith.constant 0 : i32
    %c0_i32_0 = arith.constant 0 : i32
    %c0_i32_1 = arith.constant 0 : i32
    return %arg0, %c0_i32, %c0_i32_0 : i32, i32, i32
  }
  func.func @transform_4(%arg0: i32) -> (i32, i32, i32) {
    %c0_i32 = arith.constant 0 : i32
    %c0_i32_0 = arith.constant 0 : i32
    %c0_i32_1 = arith.constant 0 : i32
    return %arg0, %c0_i32, %c0_i32_0 : i32, i32, i32
  }
}

module attributes {stable_mosaic.version = 11 : i64} {
  func.func @conv1_stats_kernel(%arg0: i32, %arg1: memref<1x18x18x128xf32, #tpu.memory_space<vmem>>, %arg2: memref<1152x128xf32, #tpu.memory_space<vmem>>, %arg3: memref<1x256x128xf32, #tpu.memory_space<vmem>>, %arg4: memref<1x2x128xf32, #tpu.memory_space<vmem>>) attributes {dimension_semantics = [#tpu.dimension_semantics<parallel>], iteration_bounds = array<i64: 2>, scalar_prefetch = 0 : i64, scratch_operands = 0 : i64, tpu.core_type = #tpu.core_type<tc>, window_params = [{transform_indices = @transform_0, window_bounds = array<i64: 1, 18, 18, 128>}, {pipeline_mode = #tpu.pipeline_mode<synchronous>, transform_indices = @transform_1, window_bounds = array<i64: 1152, 128>}, {transform_indices = @transform_2, window_bounds = array<i64: 1, 256, 128>}, {transform_indices = @transform_3, window_bounds = array<i64: 1, 2, 128>}]} {
    %c0 = arith.constant 0 : index
    %c0_0 = arith.constant 0 : index
    %c0_1 = arith.constant 0 : index
    %c0_2 = arith.constant 0 : index
    %0 = vector.load %arg1[%c0, %c0_0, %c0_1, %c0_2] : memref<1x18x18x128xf32, #tpu.memory_space<vmem>>, vector<1x18x18x128xf32>
    %1 = vector.shape_cast %0 : vector<1x18x18x128xf32> to vector<18x18x128xf32>
    %2 = vector.extract_strided_slice %1 {offsets = [0, 0, 0], sizes = [16, 16, 128], strides = [1, 1, 1]} : vector<18x18x128xf32> to vector<16x16x128xf32>
    %3 = vector.shape_cast %2 : vector<16x16x128xf32> to vector<256x128xf32>
    %4 = vector.extract_strided_slice %1 {offsets = [0, 1, 0], sizes = [16, 16, 128], strides = [1, 1, 1]} : vector<18x18x128xf32> to vector<16x16x128xf32>
    %5 = vector.shape_cast %4 : vector<16x16x128xf32> to vector<256x128xf32>
    %6 = vector.extract_strided_slice %1 {offsets = [0, 2, 0], sizes = [16, 16, 128], strides = [1, 1, 1]} : vector<18x18x128xf32> to vector<16x16x128xf32>
    %7 = vector.shape_cast %6 : vector<16x16x128xf32> to vector<256x128xf32>
    %8 = vector.extract_strided_slice %1 {offsets = [1, 0, 0], sizes = [16, 16, 128], strides = [1, 1, 1]} : vector<18x18x128xf32> to vector<16x16x128xf32>
    %9 = vector.shape_cast %8 : vector<16x16x128xf32> to vector<256x128xf32>
    %10 = vector.extract_strided_slice %1 {offsets = [1, 1, 0], sizes = [16, 16, 128], strides = [1, 1, 1]} : vector<18x18x128xf32> to vector<16x16x128xf32>
    %11 = vector.shape_cast %10 : vector<16x16x128xf32> to vector<256x128xf32>
    %12 = vector.extract_strided_slice %1 {offsets = [1, 2, 0], sizes = [16, 16, 128], strides = [1, 1, 1]} : vector<18x18x128xf32> to vector<16x16x128xf32>
    %13 = vector.shape_cast %12 : vector<16x16x128xf32> to vector<256x128xf32>
    %14 = vector.extract_strided_slice %1 {offsets = [2, 0, 0], sizes = [16, 16, 128], strides = [1, 1, 1]} : vector<18x18x128xf32> to vector<16x16x128xf32>
    %15 = vector.shape_cast %14 : vector<16x16x128xf32> to vector<256x128xf32>
    %16 = vector.extract_strided_slice %1 {offsets = [2, 1, 0], sizes = [16, 16, 128], strides = [1, 1, 1]} : vector<18x18x128xf32> to vector<16x16x128xf32>
    %17 = vector.shape_cast %16 : vector<16x16x128xf32> to vector<256x128xf32>
    %18 = vector.extract_strided_slice %1 {offsets = [2, 2, 0], sizes = [16, 16, 128], strides = [1, 1, 1]} : vector<18x18x128xf32> to vector<16x16x128xf32>
    %19 = vector.shape_cast %18 : vector<16x16x128xf32> to vector<256x128xf32>
    %20 = tpu.concatenate %3, %5, %7, %9, %11, %13, %15, %17, %19 in 1 : vector<256x128xf32>, vector<256x128xf32>, vector<256x128xf32>, vector<256x128xf32>, vector<256x128xf32>, vector<256x128xf32>, vector<256x128xf32>, vector<256x128xf32>, vector<256x128xf32> -> vector<256x1152xf32>
    %c0_3 = arith.constant 0 : index
    %c0_4 = arith.constant 0 : index
    %21 = vector.load %arg2[%c0_3, %c0_4] : memref<1152x128xf32, #tpu.memory_space<vmem>>, vector<1152x128xf32>
    %cst = arith.constant dense<0.000000e+00> : vector<256x128xf32>
    %22 = tpu.matmul %20, %21, %cst {dimension_numbers = #tpu.dot_dimension_numbers<[1], [0], [0], [1], [0, 0, 1, 1], [], []>} : vector<256x1152xf32>, vector<1152x128xf32>, vector<256x128xf32> -> vector<256x128xf32>
    %c0_5 = arith.constant 0 : index
    %c0_6 = arith.constant 0 : index
    %c0_7 = arith.constant 0 : index
    %23 = vector.load %arg3[%c0_5, %c0_6, %c0_7] : memref<1x256x128xf32, #tpu.memory_space<vmem>>, vector<1x256x128xf32>
    %24 = vector.shape_cast %23 : vector<1x256x128xf32> to vector<256x128xf32>
    %25 = vector.shape_cast %22 : vector<256x128xf32> to vector<1x256x128xf32>
    tpu.vector_store %arg3[%c0_5, %c0_6, %c0_7], %25 {strides = array<i32>} : memref<1x256x128xf32, #tpu.memory_space<vmem>>, vector<1x256x128xf32>,
    %cst_8 = arith.constant dense<0.000000e+00> : vector<128xf32>
    %26 = vector.multi_reduction <add>, %22, %cst_8 [0] : vector<256x128xf32> to vector<128xf32>
    %27 = vector.shape_cast %26 : vector<128xf32> to vector<1x128xf32>
    %28 = arith.mulf %22, %22 : vector<256x128xf32>
    %cst_9 = arith.constant dense<0.000000e+00> : vector<128xf32>
    %29 = vector.multi_reduction <add>, %28, %cst_9 [0] : vector<256x128xf32> to vector<128xf32>
    %30 = vector.shape_cast %29 : vector<128xf32> to vector<1x128xf32>
    %31 = tpu.concatenate %27, %30 in 0 : vector<1x128xf32>, vector<1x128xf32> -> vector<2x128xf32>
    %c0_10 = arith.constant 0 : index
    %c0_11 = arith.constant 0 : index
    %c0_12 = arith.constant 0 : index
    %32 = vector.load %arg4[%c0_10, %c0_11, %c0_12] : memref<1x2x128xf32, #tpu.memory_space<vmem>>, vector<1x2x128xf32>
    %33 = vector.shape_cast %32 : vector<1x2x128xf32> to vector<2x128xf32>
    %34 = vector.shape_cast %31 : vector<2x128xf32> to vector<1x2x128xf32>
    tpu.vector_store %arg4[%c0_10, %c0_11, %c0_12], %34 {strides = array<i32>} : memref<1x2x128xf32, #tpu.memory_space<vmem>>, vector<1x2x128xf32>,
    return
  }
  func.func @transform_0(%arg0: i32) -> (i32, i32, i32, i32) {
    %c0_i32 = arith.constant 0 : i32
    %c0_i32_0 = arith.constant 0 : i32
    %c0_i32_1 = arith.constant 0 : i32
    %c0_i32_2 = arith.constant 0 : i32
    return %arg0, %c0_i32, %c0_i32_0, %c0_i32_1 : i32, i32, i32, i32
  }
  func.func @transform_1(%arg0: i32) -> (i32, i32) {
    %c0_i32 = arith.constant 0 : i32
    %c0_i32_0 = arith.constant 0 : i32
    %c0_i32_1 = arith.constant 0 : i32
    return %c0_i32, %c0_i32_0 : i32, i32
  }
  func.func @transform_2(%arg0: i32) -> (i32, i32, i32) {
    %c0_i32 = arith.constant 0 : i32
    %c0_i32_0 = arith.constant 0 : i32
    %c0_i32_1 = arith.constant 0 : i32
    return %arg0, %c0_i32, %c0_i32_0 : i32, i32, i32
  }
  func.func @transform_3(%arg0: i32) -> (i32, i32, i32) {
    %c0_i32 = arith.constant 0 : i32
    %c0_i32_0 = arith.constant 0 : i32
    %c0_i32_1 = arith.constant 0 : i32
    return %arg0, %c0_i32, %c0_i32_0 : i32, i32, i32
  }
}

module attributes {stable_mosaic.version = 11 : i64} {
  func.func @bn_relu_conv2_stats_kernel(%arg0: i32, %arg1: memref<1x256x128xf32, #tpu.memory_space<vmem>>, %arg2: memref<1x128xf32, #tpu.memory_space<vmem>>, %arg3: memref<1x128xf32, #tpu.memory_space<vmem>>, %arg4: memref<1152x128xf32, #tpu.memory_space<vmem>>, %arg5: memref<1x256x128xf32, #tpu.memory_space<vmem>>, %arg6: memref<1x2x128xf32, #tpu.memory_space<vmem>>) attributes {dimension_semantics = [#tpu.dimension_semantics<parallel>], iteration_bounds = array<i64: 2>, scalar_prefetch = 0 : i64, scratch_operands = 0 : i64, tpu.core_type = #tpu.core_type<tc>, window_params = [{transform_indices = @transform_0, window_bounds = array<i64: 1, 256, 128>}, {pipeline_mode = #tpu.pipeline_mode<synchronous>, transform_indices = @transform_1, window_bounds = array<i64: 1, 128>}, {pipeline_mode = #tpu.pipeline_mode<synchronous>, transform_indices = @transform_2, window_bounds = array<i64: 1, 128>}, {pipeline_mode = #tpu.pipeline_mode<synchronous>, transform_indices = @transform_3, window_bounds = array<i64: 1152, 128>}, {transform_indices = @transform_4, window_bounds = array<i64: 1, 256, 128>}, {transform_indices = @transform_5, window_bounds = array<i64: 1, 2, 128>}]} {
    %c0 = arith.constant 0 : index
    %c0_0 = arith.constant 0 : index
    %c0_1 = arith.constant 0 : index
    %0 = vector.load %arg1[%c0, %c0_0, %c0_1] : memref<1x256x128xf32, #tpu.memory_space<vmem>>, vector<1x256x128xf32>
    %1 = vector.shape_cast %0 : vector<1x256x128xf32> to vector<256x128xf32>
    %c0_2 = arith.constant 0 : index
    %c0_3 = arith.constant 0 : index
    %2 = vector.load %arg2[%c0_2, %c0_3] : memref<1x128xf32, #tpu.memory_space<vmem>>, vector<1x128xf32>
    %3 = vector.broadcast %2 : vector<1x128xf32> to vector<256x128xf32>
    %4 = arith.mulf %1, %3 : vector<256x128xf32>
    %c0_4 = arith.constant 0 : index
    %c0_5 = arith.constant 0 : index
    %5 = vector.load %arg3[%c0_4, %c0_5] : memref<1x128xf32, #tpu.memory_space<vmem>>, vector<1x128xf32>
    %6 = vector.broadcast %5 : vector<1x128xf32> to vector<256x128xf32>
    %7 = arith.addf %4, %6 : vector<256x128xf32>
    %cst = arith.constant 0.000000e+00 : f32
    %8 = vector.broadcast %cst : f32 to vector<256x128xf32>
    %9 = arith.maximumf %7, %8 : vector<256x128xf32>
    %10 = vector.shape_cast %9 : vector<256x128xf32> to vector<16x16x128xf32>
    %cst_6 = arith.constant 0.000000e+00 : f32
    %11 = vector.broadcast %cst_6 : f32 to vector<16x1x128xf32>
    %cst_7 = arith.constant 0.000000e+00 : f32
    %12 = vector.broadcast %cst_7 : f32 to vector<1x18x128xf32>
    %13 = tpu.concatenate %11, %10, %11 in 1 : vector<16x1x128xf32>, vector<16x16x128xf32>, vector<16x1x128xf32> -> vector<16x18x128xf32>
    %14 = tpu.concatenate %12, %13, %12 in 0 : vector<1x18x128xf32>, vector<16x18x128xf32>, vector<1x18x128xf32> -> vector<18x18x128xf32>
    %15 = vector.extract_strided_slice %14 {offsets = [0, 0, 0], sizes = [16, 16, 128], strides = [1, 1, 1]} : vector<18x18x128xf32> to vector<16x16x128xf32>
    %16 = vector.shape_cast %15 : vector<16x16x128xf32> to vector<256x128xf32>
    %17 = vector.extract_strided_slice %14 {offsets = [0, 1, 0], sizes = [16, 16, 128], strides = [1, 1, 1]} : vector<18x18x128xf32> to vector<16x16x128xf32>
    %18 = vector.shape_cast %17 : vector<16x16x128xf32> to vector<256x128xf32>
    %19 = vector.extract_strided_slice %14 {offsets = [0, 2, 0], sizes = [16, 16, 128], strides = [1, 1, 1]} : vector<18x18x128xf32> to vector<16x16x128xf32>
    %20 = vector.shape_cast %19 : vector<16x16x128xf32> to vector<256x128xf32>
    %21 = vector.extract_strided_slice %14 {offsets = [1, 0, 0], sizes = [16, 16, 128], strides = [1, 1, 1]} : vector<18x18x128xf32> to vector<16x16x128xf32>
    %22 = vector.shape_cast %21 : vector<16x16x128xf32> to vector<256x128xf32>
    %23 = vector.extract_strided_slice %14 {offsets = [1, 1, 0], sizes = [16, 16, 128], strides = [1, 1, 1]} : vector<18x18x128xf32> to vector<16x16x128xf32>
    %24 = vector.shape_cast %23 : vector<16x16x128xf32> to vector<256x128xf32>
    %25 = vector.extract_strided_slice %14 {offsets = [1, 2, 0], sizes = [16, 16, 128], strides = [1, 1, 1]} : vector<18x18x128xf32> to vector<16x16x128xf32>
    %26 = vector.shape_cast %25 : vector<16x16x128xf32> to vector<256x128xf32>
    %27 = vector.extract_strided_slice %14 {offsets = [2, 0, 0], sizes = [16, 16, 128], strides = [1, 1, 1]} : vector<18x18x128xf32> to vector<16x16x128xf32>
    %28 = vector.shape_cast %27 : vector<16x16x128xf32> to vector<256x128xf32>
    %29 = vector.extract_strided_slice %14 {offsets = [2, 1, 0], sizes = [16, 16, 128], strides = [1, 1, 1]} : vector<18x18x128xf32> to vector<16x16x128xf32>
    %30 = vector.shape_cast %29 : vector<16x16x128xf32> to vector<256x128xf32>
    %31 = vector.extract_strided_slice %14 {offsets = [2, 2, 0], sizes = [16, 16, 128], strides = [1, 1, 1]} : vector<18x18x128xf32> to vector<16x16x128xf32>
    %32 = vector.shape_cast %31 : vector<16x16x128xf32> to vector<256x128xf32>
    %33 = tpu.concatenate %16, %18, %20, %22, %24, %26, %28, %30, %32 in 1 : vector<256x128xf32>, vector<256x128xf32>, vector<256x128xf32>, vector<256x128xf32>, vector<256x128xf32>, vector<256x128xf32>, vector<256x128xf32>, vector<256x128xf32>, vector<256x128xf32> -> vector<256x1152xf32>
    %c0_8 = arith.constant 0 : index
    %c0_9 = arith.constant 0 : index
    %34 = vector.load %arg4[%c0_8, %c0_9] : memref<1152x128xf32, #tpu.memory_space<vmem>>, vector<1152x128xf32>
    %cst_10 = arith.constant dense<0.000000e+00> : vector<256x128xf32>
    %35 = tpu.matmul %33, %34, %cst_10 {dimension_numbers = #tpu.dot_dimension_numbers<[1], [0], [0], [1], [0, 0, 1, 1], [], []>} : vector<256x1152xf32>, vector<1152x128xf32>, vector<256x128xf32> -> vector<256x128xf32>
    %c0_11 = arith.constant 0 : index
    %c0_12 = arith.constant 0 : index
    %c0_13 = arith.constant 0 : index
    %36 = vector.load %arg5[%c0_11, %c0_12, %c0_13] : memref<1x256x128xf32, #tpu.memory_space<vmem>>, vector<1x256x128xf32>
    %37 = vector.shape_cast %36 : vector<1x256x128xf32> to vector<256x128xf32>
    %38 = vector.shape_cast %35 : vector<256x128xf32> to vector<1x256x128xf32>
    tpu.vector_store %arg5[%c0_11, %c0_12, %c0_13], %38 {strides = array<i32>} : memref<1x256x128xf32, #tpu.memory_space<vmem>>, vector<1x256x128xf32>,
    %cst_14 = arith.constant dense<0.000000e+00> : vector<128xf32>
    %39 = vector.multi_reduction <add>, %35, %cst_14 [0] : vector<256x128xf32> to vector<128xf32>
    %40 = vector.shape_cast %39 : vector<128xf32> to vector<1x128xf32>
    %41 = arith.mulf %35, %35 : vector<256x128xf32>
    %cst_15 = arith.constant dense<0.000000e+00> : vector<128xf32>
    %42 = vector.multi_reduction <add>, %41, %cst_15 [0] : vector<256x128xf32> to vector<128xf32>
    %43 = vector.shape_cast %42 : vector<128xf32> to vector<1x128xf32>
    %44 = tpu.concatenate %40, %43 in 0 : vector<1x128xf32>, vector<1x128xf32> -> vector<2x128xf32>
    %c0_16 = arith.constant 0 : index
    %c0_17 = arith.constant 0 : index
    %c0_18 = arith.constant 0 : index
    %45 = vector.load %arg6[%c0_16, %c0_17, %c0_18] : memref<1x2x128xf32, #tpu.memory_space<vmem>>, vector<1x2x128xf32>
    %46 = vector.shape_cast %45 : vector<1x2x128xf32> to vector<2x128xf32>
    %47 = vector.shape_cast %44 : vector<2x128xf32> to vector<1x2x128xf32>
    tpu.vector_store %arg6[%c0_16, %c0_17, %c0_18], %47 {strides = array<i32>} : memref<1x2x128xf32, #tpu.memory_space<vmem>>, vector<1x2x128xf32>,
    return
  }
  func.func @transform_0(%arg0: i32) -> (i32, i32, i32) {
    %c0_i32 = arith.constant 0 : i32
    %c0_i32_0 = arith.constant 0 : i32
    %c0_i32_1 = arith.constant 0 : i32
    return %arg0, %c0_i32, %c0_i32_0 : i32, i32, i32
  }
  func.func @transform_1(%arg0: i32) -> (i32, i32) {
    %c0_i32 = arith.constant 0 : i32
    %c0_i32_0 = arith.constant 0 : i32
    %c0_i32_1 = arith.constant 0 : i32
    return %c0_i32, %c0_i32_0 : i32, i32
  }
  func.func @transform_2(%arg0: i32) -> (i32, i32) {
    %c0_i32 = arith.constant 0 : i32
    %c0_i32_0 = arith.constant 0 : i32
    %c0_i32_1 = arith.constant 0 : i32
    return %c0_i32, %c0_i32_0 : i32, i32
  }
  func.func @transform_3(%arg0: i32) -> (i32, i32) {
    %c0_i32 = arith.constant 0 : i32
    %c0_i32_0 = arith.constant 0 : i32
    %c0_i32_1 = arith.constant 0 : i32
    return %c0_i32, %c0_i32_0 : i32, i32
  }
  func.func @transform_4(%arg0: i32) -> (i32, i32, i32) {
    %c0_i32 = arith.constant 0 : i32
    %c0_i32_0 = arith.constant 0 : i32
    %c0_i32_1 = arith.constant 0 : i32
    return %arg0, %c0_i32, %c0_i32_0 : i32, i32, i32
  }
  func.func @transform_5(%arg0: i32) -> (i32, i32, i32) {
    %c0_i32 = arith.constant 0 : i32
    %c0_i32_0 = arith.constant 0 : i32
    %c0_i32_1 = arith.constant 0 : i32
    return %arg0, %c0_i32, %c0_i32_0 : i32, i32, i32
  }
}

</mosaic_0001>

<bundles_post_ra>
// kernel: basic_block.5
= control target key start
LH: loop header
LB: loop body
LE: loop exit
PB: predicated region body
PF: predicated region fallthrough
CT: control target
= control target key end

     0   :  { %s576_s15 = smov 0   ;;  %s777_s0 = inlined_call_operand.vmem [shape: f32[2,256,128], index: 0, kind: input, shape index: {}]   ;;  %s778_s1 = inlined_call_operand.vmem [shape: f32[1,128], index: 1, kind: input, shape index: {}]   ;;  %s779_s2 = inlined_call_operand.vmem [shape: f32[1,128], index: 2, kind: input, shape index: {}]   ;;  %s780_s3 = inlined_call_operand.vmem [shape: f32[2,256,128], index: 3, kind: input, shape index: {}]   ;;  %s781_s4 = inlined_call_operand.vmem [shape: f32[2,256,128], index: 4, kind: output, shape index: {}]  }
   0x1 LB: > { %s517_s16 = sadd.s32 4294967295, %s549_s15   ;;  %p521_p0 = scmp.ge.s32.totalorder %s549_s15, 1  ;;  %s549_s15 = sphi %s576_s15, %s14_s15  }
   0x2   : > { %p172_p1 = scmp.lt.s32.totalorder %s549_s15, 3 }
   0x4   : > { %p173_p2 = pnand %p521_p0, %p172_p1 }
   0x5   : > { %p203_p3 = scmp.lt.s32.totalorder (!%p173_p2), %s517_s16, 1 }
   0x6   : > { %176 = sbr.rel (%p173_p2) target bundleno = 55 (0x37), region = 36 }
   0xb   : > { %s783_s16 = smov (!%p203_p3, %s517_s16), 1  ;;  %v587_v0 = vld [vmem:[%s778_s1] ss:$0 sm:$0xff] }
   0xc   : > { %s589_s19 = sshll.u32 %s783_s16, 8  ;;  %v606_v1 = vld [vmem:[%s779_s2] ss:$0 sm:$0xff] }
   0xd   : > { %s595_s22 = scalar_lea.vmem %s777_s0, %s589_s19  ;;  %s601_s25 = scalar_lea.vmem %s780_s3, %s589_s19 }
   0xe   : > { %v218_v2 = vld [vmem:[%s595_s22] sm:$0xff]  ;;  %v219_v3 = vld [vmem:[%s595_s22 + $0x8] sm:$0xff]  ;;  %v220_v7 = vld [vmem:[%s595_s22 + $0x10] sm:$0xff]  ;;  %s637_s30 = scalar_lea.vmem %s781_s4, %s589_s19 }
   0xf   : > { %v254_v4 = vmul.f32 %v587_v0, %v218_v2  ;;  %v322_v5 = vld [vmem:[%s601_s25] sm:$0xff]  ;;  %v255_v6 = vmul.f32 %v587_v0, %v219_v3  ;;  %v323_v8 = vld [vmem:[%s601_s25 + $0x8] sm:$0xff]  ;;  %v256_v9 = vmul.f32 %v587_v0, %v220_v7  ;;  %v221_v10 = vld [vmem:[%s595_s22 + $0x18] sm:$0xff] }
  0x10   : > { %v222_v11 = vld [vmem:[%s595_s22 + $0x20] sm:$0xff]  ;;  %v324_v14 = vld [vmem:[%s601_s25 + $0x10] sm:$0xff]  ;;  %v257_v15 = vmul.f32 %v587_v0, %v221_v10  ;;  %v325_v16 = vld [vmem:[%s601_s25 + $0x18] sm:$0xff] }
  0x11   : > { %v290_v12 = vadd.f32 %v606_v1, %v254_v4  ;;  %v291_v13 = vadd.f32 %v606_v1, %v255_v6  ;;  %v258_v17 = vmul.f32 %v587_v0, %v222_v11  ;;  %v223_v18 = vld [vmem:[%s595_s22 + $0x28] sm:$0xff]  ;;  %v292_v19 = vadd.f32 %v606_v1, %v256_v9  ;;  %v326_v20 = vld [vmem:[%s601_s25 + $0x20] sm:$0xff]  ;;  %v224_v22 = vld [vmem:[%s595_s22 + $0x30] sm:$0xff] }
  0x12   : > { %v259_v21 = vmul.f32 %v587_v0, %v223_v18  ;;  %v225_v23 = vld [vmem:[%s595_s22 + $0x38] sm:$0xff]  ;;  %v293_v26 = vadd.f32 %v606_v1, %v257_v15  ;;  %v327_v28 = vld [vmem:[%s601_s25 + $0x28] sm:$0xff]  ;;  %v260_v31 = vmul.f32 %v587_v0, %v224_v22  ;;  %v226_v33 = vld [vmem:[%s595_s22 + $0x40] sm:$0xff] }
  0x13   : > { %v354_v24 = vadd.f32 %v322_v5, %v290_v12  ;;  %v355_v25 = vadd.f32 %v323_v8, %v291_v13  ;;  %v294_v27 = vadd.f32 %v606_v1, %v258_v17  ;;  %v356_v29 = vadd.f32 %v324_v14, %v292_v19  ;;  %v227_v34 = vld [vmem:[%s595_s22 + $0x48] sm:$0xff]  ;;  %v328_v39 = vld [vmem:[%s601_s25 + $0x30] sm:$0xff]  ;;  %v329_v40 = vld [vmem:[%s601_s25 + $0x38] sm:$0xff] }
  0x14   : > { %v295_v30 = vadd.f32 %v606_v1, %v259_v21  ;;  %v261_v32 = vmul.f32 %v587_v0, %v225_v23  ;;  %v357_v37 = vadd.f32 %v325_v16, %v293_v26  ;;  %v228_v41 = vld [vmem:[%s595_s22 + $0x50] sm:$0xff]  ;;  %v296_v44 = vadd.f32 %v606_v1, %v260_v31  ;;  %v229_v46 = vld [vmem:[%s595_s22 + $0x58] sm:$0xff]  ;;  %v230_v47 = vld [vmem:[%s595_s22 + $0x60] sm:$0xff] }
  0x15   : > { %v386_v35 = vmax.f32 %v354_v24, 0.0  ;;  %v387_v36 = vmax.f32 %v355_v25, 0.0  ;;  %v358_v38 = vadd.f32 %v326_v20, %v294_v27  ;;  %v388_v42 = vmax.f32 %v356_v29, 0.0  ;;  %v231_v52 = vld [vmem:[%s595_s22 + $0x68] sm:$0xff]  ;;  %v330_v56 = vld [vmem:[%s601_s25 + $0x40] sm:$0xff]  ;;  %v332_v61 = vld [vmem:[%s601_s25 + $0x50] sm:$0xff] }
  0x16   : > { %v359_v43 = vadd.f32 %v327_v28, %v295_v30  ;;  %v297_v45 = vadd.f32 %v606_v1, %v261_v32  ;;  %v389_v48 = vmax.f32 %v357_v37, 0.0  ;;  %v262_v50 = vmul.f32 %v587_v0, %v226_v33  ;;  %v331_v57 = vld [vmem:[%s601_s25 + $0x48] sm:$0xff]  ;;  %v232_v2 = vld [vmem:[%s595_s22 + $0x70] sm:$0xff]  ;;  %v233_v3 = vld [vmem:[%s595_s22 + $0x78] sm:$0xff] }
  0x17   : > { %418 = vst [vmem:[%s637_s30] sm:$0xff] %v386_v35  ;;  %v390_v49 = vmax.f32 %v358_v38, 0.0  ;;  %v263_v51 = vmul.f32 %v587_v0, %v227_v34  ;;  %v360_v54 = vadd.f32 %v328_v39, %v296_v44  ;;  %v264_v58 = vmul.f32 %v587_v0, %v228_v41  ;;  %v333_v7 = vld [vmem:[%s601_s25 + $0x58] sm:$0xff]  ;;  %v334_v8 = vld [vmem:[%s601_s25 + $0x60] sm:$0xff]  ;;  %v335_v14 = vld [vmem:[%s601_s25 + $0x68] sm:$0xff] }
  0x18   : > { %419 = vst [vmem:[%s637_s30 + $0x8] sm:$0xff] %v387_v36  ;;  %v391_v53 = vmax.f32 %v359_v43, 0.0  ;;  %v361_v55 = vadd.f32 %v329_v40, %v297_v45  ;;  %v298_v59 = vadd.f32 %v606_v1, %v262_v50  ;;  %v265_v62 = vmul.f32 %v587_v0, %v229_v46  ;;  %v234_v19 = vld [vmem:[%s595_s22 + $0x80] sm:$0xff]  ;;  %v235_v20 = vld [vmem:[%s595_s22 + $0x88] sm:$0xff]  ;;  %v336_v25 = vld [vmem:[%s601_s25 + $0x70] sm:$0xff] }
  0x19   : > { %420 = vst [vmem:[%s637_s30 + $0x10] sm:$0xff] %v388_v42  ;;  %v299_v60 = vadd.f32 %v606_v1, %v263_v51  ;;  %v266_v63 = vmul.f32 %v587_v0, %v230_v47  ;;  %v392_v4 = vmax.f32 %v360_v54, 0.0  ;;  %v300_v6 = vadd.f32 %v606_v1, %v264_v58  ;;  %v337_v26 = vld [vmem:[%s601_s25 + $0x78] sm:$0xff]  ;;  %v236_v27 = vld [vmem:[%s595_s22 + $0x90] sm:$0xff]  ;;  %v238_v33 = vld [vmem:[%s595_s22 + $0xa0] sm:$0xff] }
  0x1a   : > { %421 = vst [vmem:[%s637_s30 + $0x18] sm:$0xff] %v389_v48  ;;  %v393_v5 = vmax.f32 %v361_v55, 0.0  ;;  %v267_v9 = vmul.f32 %v587_v0, %v231_v52  ;;  %v362_v10 = vadd.f32 %v330_v56, %v298_v59  ;;  %v301_v12 = vadd.f32 %v606_v1, %v265_v62  ;;  %v237_v32 = vld [vmem:[%s595_s22 + $0x98] sm:$0xff]  ;;  %v239_v38 = vld [vmem:[%s595_s22 + $0xa8] sm:$0xff]  ;;  %v338_v42 = vld [vmem:[%s601_s25 + $0x80] sm:$0xff] }
  0x1b   : > { %422 = vst [vmem:[%s637_s30 + $0x20] sm:$0xff] %v390_v49  ;;  %v363_v11 = vadd.f32 %v331_v57, %v299_v60  ;;  %v302_v13 = vadd.f32 %v606_v1, %v266_v63  ;;  %v364_v15 = vadd.f32 %v332_v61, %v300_v6  ;;  %v268_v17 = vmul.f32 %v587_v0, %v232_v2  ;;  %v339_v43 = vld [vmem:[%s601_s25 + $0x88] sm:$0xff]  ;;  %v340_v47 = vld [vmem:[%s601_s25 + $0x90] sm:$0xff]  ;;  %v241_v51 = vld [vmem:[%s595_s22 + $0xb8] sm:$0xff] }
  0x1c   : > { %423 = vst [vmem:[%s637_s30 + $0x28] sm:$0xff] %v391_v53  ;;  %v303_v16 = vadd.f32 %v606_v1, %v267_v9  ;;  %v269_v18 = vmul.f32 %v587_v0, %v233_v3  ;;  %v394_v21 = vmax.f32 %v362_v10, 0.0  ;;  %v365_v23 = vadd.f32 %v333_v7, %v301_v12  ;;  %v240_v50 = vld [vmem:[%s595_s22 + $0xb0] sm:$0xff]  ;;  %v341_v55 = vld [vmem:[%s601_s25 + $0x98] sm:$0xff]  ;;  %v342_v56 = vld [vmem:[%s601_s25 + $0xa0] sm:$0xff] }
  0x1d   : > { %424 = vst [vmem:[%s637_s30 + $0x30] sm:$0xff] %v392_v4  ;;  %v395_v22 = vmax.f32 %v363_v11, 0.0  ;;  %v366_v24 = vadd.f32 %v334_v8, %v302_v13  ;;  %v396_v28 = vmax.f32 %v364_v15, 0.0  ;;  %v304_v30 = vadd.f32 %v606_v1, %v268_v17  ;;  %v343_v62 = vld [vmem:[%s601_s25 + $0xa8] sm:$0xff]  ;;  %v344_v11 = vld [vmem:[%s601_s25 + $0xb0] sm:$0xff]  ;;  %v345_v12 = vld [vmem:[%s601_s25 + $0xb8] sm:$0xff] }
  0x1e   : > { %425 = vst [vmem:[%s637_s30 + $0x38] sm:$0xff] %v393_v5  ;;  %v367_v29 = vadd.f32 %v335_v14, %v303_v16  ;;  %v305_v31 = vadd.f32 %v606_v1, %v269_v18  ;;  %v397_v34 = vmax.f32 %v365_v23, 0.0  ;;  %v270_v36 = vmul.f32 %v587_v0, %v234_v19  ;;  %v242_v5 = vld [vmem:[%s595_s22 + $0xc0] sm:$0xff]  ;;  %v243_v6 = vld [vmem:[%s595_s22 + $0xc8] sm:$0xff]  ;;  %v244_v13 = vld [vmem:[%s595_s22 + $0xd0] sm:$0xff] }
  0x1f   : > { %426 = vst [vmem:[%s637_s30 + $0x40] sm:$0xff] %v394_v21  ;;  %v398_v35 = vmax.f32 %v366_v24, 0.0  ;;  %v271_v37 = vmul.f32 %v587_v0, %v235_v20  ;;  %v368_v40 = vadd.f32 %v336_v25, %v304_v30  ;;  %v272_v44 = vmul.f32 %v587_v0, %v236_v27  ;;  %v245_v18 = vld [vmem:[%s595_s22 + $0xd8] sm:$0xff]  ;;  %v246_v19 = vld [vmem:[%s595_s22 + $0xe0] sm:$0xff]  ;;  %v247_v24 = vld [vmem:[%s595_s22 + $0xe8] sm:$0xff] }
  0x20   : > { %427 = vst [vmem:[%s637_s30 + $0x48] sm:$0xff] %v395_v22  ;;  %v399_v39 = vmax.f32 %v367_v29, 0.0  ;;  %v369_v41 = vadd.f32 %v337_v26, %v305_v31  ;;  %v306_v45 = vadd.f32 %v606_v1, %v270_v36  ;;  %v273_v48 = vmul.f32 %v587_v0, %v237_v32  ;;  %v347_v29 = vld [vmem:[%s601_s25 + $0xc8] sm:$0xff]  ;;  %v248_v36 = vld [vmem:[%s595_s22 + $0xf0] sm:$0xff] }
  0x21   : > { %428 = vst [vmem:[%s637_s30 + $0x50] sm:$0xff] %v396_v28  ;;  %v307_v46 = vadd.f32 %v606_v1, %v271_v37  ;;  %v274_v49 = vmul.f32 %v587_v0, %v238_v33  ;;  %v400_v52 = vmax.f32 %v368_v40, 0.0  ;;  %v308_v54 = vadd.f32 %v606_v1, %v272_v44  ;;  %v346_v28 = vld [vmem:[%s601_s25 + $0xc0] sm:$0xff]  ;;  %v348_v33 = vld [vmem:[%s601_s25 + $0xd0] sm:$0xff]  ;;  %v249_v37 = vld [vmem:[%s595_s22 + $0xf8] sm:$0xff] }
  0x22   : > { %429 = vst [vmem:[%s637_s30 + $0x58] sm:$0xff] %v397_v34  ;;  %v401_v53 = vmax.f32 %v369_v41, 0.0  ;;  %v275_v57 = vmul.f32 %v587_v0, %v239_v38  ;;  %v370_v58 = vadd.f32 %v338_v42, %v306_v45  ;;  %v309_v60 = vadd.f32 %v606_v1, %v273_v48  ;;  %v349_v41 = vld [vmem:[%s601_s25 + $0xd8] sm:$0xff]  ;;  %v350_v42 = vld [vmem:[%s601_s25 + $0xe0] sm:$0xff]  ;;  %v351_v48 = vld [vmem:[%s601_s25 + $0xe8] sm:$0xff] }
  0x23   : > { %430 = vst [vmem:[%s637_s30 + $0x60] sm:$0xff] %v398_v35  ;;  %v371_v59 = vadd.f32 %v339_v43, %v307_v46  ;;  %v310_v61 = vadd.f32 %v606_v1, %v274_v49  ;;  %v372_v63 = vadd.f32 %v340_v47, %v308_v54  ;;  %v276_v3 = vmul.f32 %v587_v0, %v240_v50 }
  0x24   : > { %431 = vst [vmem:[%s637_s30 + $0x68] sm:$0xff] %v399_v39  ;;  %v311_v2 = vadd.f32 %v606_v1, %v275_v57  ;;  %v277_v4 = vmul.f32 %v587_v0, %v241_v51  ;;  %v402_v7 = vmax.f32 %v370_v58, 0.0  ;;  %v373_v9 = vadd.f32 %v341_v55, %v309_v60  ;;  %v352_v57 = vld [vmem:[%s601_s25 + $0xf0] sm:$0xff]  ;;  %v353_v58 = vld [vmem:[%s601_s25 + $0xf8] sm:$0xff] }
  0x25   : > { %432 = vst [vmem:[%s637_s30 + $0x70] sm:$0xff] %v400_v52  ;;  %v403_v8 = vmax.f32 %v371_v59, 0.0  ;;  %v374_v10 = vadd.f32 %v342_v56, %v310_v61  ;;  %v404_v14 = vmax.f32 %v372_v63, 0.0  ;;  %v312_v16 = vadd.f32 %v606_v1, %v276_v3 }
  0x26   : > { %433 = vst [vmem:[%s637_s30 + $0x78] sm:$0xff] %v401_v53  ;;  %v375_v15 = vadd.f32 %v343_v62, %v311_v2  ;;  %v313_v17 = vadd.f32 %v606_v1, %v277_v4  ;;  %v405_v20 = vmax.f32 %v373_v9, 0.0  ;;  %v278_v22 = vmul.f32 %v587_v0, %v242_v5 }
  0x27   : > { %434 = vst [vmem:[%s637_s30 + $0x80] sm:$0xff] %v402_v7  ;;  %v406_v21 = vmax.f32 %v374_v10, 0.0  ;;  %v279_v23 = vmul.f32 %v587_v0, %v243_v6  ;;  %v376_v26 = vadd.f32 %v344_v11, %v312_v16  ;;  %v280_v30 = vmul.f32 %v587_v0, %v244_v13 }
  0x28   : > { %435 = vst [vmem:[%s637_s30 + $0x88] sm:$0xff] %v403_v8  ;;  %v407_v25 = vmax.f32 %v375_v15, 0.0  ;;  %v377_v27 = vadd.f32 %v345_v12, %v313_v17  ;;  %v314_v31 = vadd.f32 %v606_v1, %v278_v22  ;;  %v281_v34 = vmul.f32 %v587_v0, %v245_v18 }
  0x29   : > { %436 = vst [vmem:[%s637_s30 + $0x90] sm:$0xff] %v404_v14  ;;  %v315_v32 = vadd.f32 %v606_v1, %v279_v23  ;;  %v282_v35 = vmul.f32 %v587_v0, %v246_v19  ;;  %v408_v38 = vmax.f32 %v376_v26, 0.0  ;;  %v316_v40 = vadd.f32 %v606_v1, %v280_v30 }
  0x2a   : > { %437 = vst [vmem:[%s637_s30 + $0x98] sm:$0xff] %v405_v20  ;;  %v409_v39 = vmax.f32 %v377_v27, 0.0  ;;  %v283_v43 = vmul.f32 %v587_v0, %v247_v24  ;;  %v378_v44 = vadd.f32 %v346_v28, %v314_v31  ;;  %v317_v46 = vadd.f32 %v606_v1, %v281_v34 }
  0x2b   : > { %438 = vst [vmem:[%s637_s30 + $0xa0] sm:$0xff] %v406_v21  ;;  %v379_v45 = vadd.f32 %v347_v29, %v315_v32  ;;  %v318_v47 = vadd.f32 %v606_v1, %v282_v35  ;;  %v380_v49 = vadd.f32 %v348_v33, %v316_v40  ;;  %v284_v51 = vmul.f32 %v587_v0, %v248_v36 }
  0x2c   : > { %439 = vst [vmem:[%s637_s30 + $0xa8] sm:$0xff] %v407_v25  ;;  %v319_v50 = vadd.f32 %v606_v1, %v283_v43  ;;  %v285_v52 = vmul.f32 %v587_v0, %v249_v37  ;;  %v410_v53 = vmax.f32 %v378_v44, 0.0  ;;  %v381_v55 = vadd.f32 %v349_v41, %v317_v46 }
  0x2d   : > { %440 = vst [vmem:[%s637_s30 + $0xb0] sm:$0xff] %v408_v38  ;;  %v411_v54 = vmax.f32 %v379_v45, 0.0  ;;  %v382_v56 = vadd.f32 %v350_v42, %v318_v47  ;;  %v412_v59 = vmax.f32 %v380_v49, 0.0  ;;  %v320_v61 = vadd.f32 %v606_v1, %v284_v51 }
  0x2e   : > { %441 = vst [vmem:[%s637_s30 + $0xb8] sm:$0xff] %v409_v39  ;;  %v383_v60 = vadd.f32 %v351_v48, %v319_v50  ;;  %v321_v0 = vadd.f32 %v606_v1, %v285_v52  ;;  %v413_v62 = vmax.f32 %v381_v55, 0.0 }
  0x2f   : > { %442 = vst [vmem:[%s637_s30 + $0xc0] sm:$0xff] %v410_v53  ;;  %v414_v63 = vmax.f32 %v382_v56, 0.0  ;;  %v384_v3 = vadd.f32 %v352_v57, %v320_v61 }
  0x30   : > { %443 = vst [vmem:[%s637_s30 + $0xc8] sm:$0xff] %v411_v54  ;;  %v415_v2 = vmax.f32 %v383_v60, 0.0  ;;  %v385_v4 = vadd.f32 %v353_v58, %v321_v0 }
  0x31   : > { %444 = vst [vmem:[%s637_s30 + $0xd0] sm:$0xff] %v412_v59  ;;  %v416_v5 = vmax.f32 %v384_v3, 0.0 }
  0x32   : > { %445 = vst [vmem:[%s637_s30 + $0xd8] sm:$0xff] %v413_v62  ;;  %v417_v6 = vmax.f32 %v385_v4, 0.0 }
  0x33   : > { %446 = vst [vmem:[%s637_s30 + $0xe0] sm:$0xff] %v414_v63 }
  0x34   : > { %447 = vst [vmem:[%s637_s30 + $0xe8] sm:$0xff] %v415_v2 }
  0x35   : > { %448 = vst [vmem:[%s637_s30 + $0xf0] sm:$0xff] %v416_v5 }
  0x36   : > { %449 = vst [vmem:[%s637_s30 + $0xf8] sm:$0xff] %v417_v6 }
  0x37 PF: > { %s14_s15 = sadd.s32 1, %s549_s15  }
  0x38   : > { %p11_p4 = scmp.ge.s32.totalorder %s14_s15, 4  }
  0x3a   :  { %13 = sbr.rel (!%p11_p4) target bundleno = 1 (0x1), region = 69 }

// kernel: basic_block.3
= control target key start
LH: loop header
LB: loop body
LE: loop exit
PB: predicated region body
PF: predicated region fallthrough
CT: control target
= control target key end

     0   :  { %s2057_s12 = smov 0   ;;  %s3402_s0 = inlined_call_operand.vmem [shape: f32[2,18,18,128], index: 0, kind: input, shape index: {}]   ;;  %s3403_s1 = inlined_call_operand.vmem [shape: f32[1152,128], index: 1, kind: input, shape index: {}]   ;;  %s3404_s2 = inlined_call_operand.vmem [shape: f32[2,256,128], index: 2, kind: output, shape index: {0}]   ;;  %s3405_s3 = inlined_call_operand.vmem [shape: f32[2,2,128], index: 3, kind: output, shape index: {1}]  }
   0x1 LB: > { %s1932_s13 = sadd.s32 4294967295, %s2035_s12   ;;  %p1936_p0 = scmp.ge.s32.totalorder %s2035_s12, 1  ;;  %s2035_s12 = sphi %s2057_s12, %s14_s12  }
   0x2   : > { %p140_p1 = scmp.lt.s32.totalorder %s2035_s12, 3 }
   0x4   : > { %p141_p2 = pnand %p1936_p0, %p140_p1 }
   0x6   : > { %144 = sbr.rel (%p141_p2) target bundleno = 767 (0x2ff), region = 28 }
   0xb   : > { %v559_v0 = vld [vmem:[%s3403_s1 + $0x78] sm:$0xff]  ;;  %v558_v1 = vld [vmem:[%s3403_s1 + $0x70] sm:$0xff]  ;;  %v557_v2 = vld [vmem:[%s3403_s1 + $0x68] sm:$0xff]  ;;  %p168_p3 = scmp.lt.s32.totalorder %s1932_s13, 1  ;;  %vm284_vm0 = vcmask 1046528   ;;  %vm397_vm1 = vcmask 1045504  }
   0xc   : > { %1944 = vmatpush.msra.mxu1 %v559_v0  ;;  %1945 = vmatpush.msra.mxu2 %v559_v0  ;;  %v556_v3 = vld [vmem:[%s3403_s1 + $0x60] sm:$0xff]  ;;  %v555_v4 = vld [vmem:[%s3403_s1 + $0x58] sm:$0xff]  ;;  %v554_v5 = vld [vmem:[%s3403_s1 + $0x50] sm:$0xff]  ;;  %vm1843_vm2 = vcmask 1040384  }
   0xd   : > { %1946 = vmatpush.msra.mxu3 %v559_v0  ;;  %688 = vmatpush.msra.mxu0 %v559_v0  ;;  %v553_v6 = vld [vmem:[%s3403_s1 + $0x48] sm:$0xff]  ;;  %v552_v7 = vld [vmem:[%s3403_s1 + $0x40] sm:$0xff]  ;;  %v551_v8 = vld [vmem:[%s3403_s1 + $0x38] sm:$0xff]  ;;  %s3551_s13 = smov (!%p168_p3, %s1932_s13), 1 }
   0xe   : > { %1947 = vmatpush.msra.mxu1 %v558_v1  ;;  %1948 = vmatpush.msra.mxu2 %v558_v1  ;;  %v550_v9 = vld [vmem:[%s3403_s1 + $0x30] sm:$0xff]  ;;  %v549_v10 = vld [vmem:[%s3403_s1 + $0x28] sm:$0xff]  ;;  %v548_v11 = vld [vmem:[%s3403_s1 + $0x20] sm:$0xff]  ;;  %s1992_s15 = smul.u32 432, %s3551_s13  ;;  %s1943_s16 = sshll.u32 %s3551_s13, 8 }
   0xf   : > { %1949 = vmatpush.msra.mxu3 %v558_v1  ;;  %689 = vmatpush.msra.mxu0 %v558_v1  ;;  %v547_v12 = vld [vmem:[%s3403_s1 + $0x18] sm:$0xff]  ;;  %v546_v13 = vld [vmem:[%s3403_s1 + $0x10] sm:$0xff]  ;;  %v545_v14 = vld [vmem:[%s3403_s1 + $0x8] sm:$0xff]  ;;  %s3268_s19 = scalar_lea.vmem %s3404_s2, %s1943_s16 }
  0x10   : > { %1950 = vmatpush.msra.mxu1 %v557_v2  ;;  %1951 = vmatpush.msra.mxu2 %v557_v2  ;;  %s2120_s22 = scalar_lea.vmem %s3402_s0, %s1992_s15  ;;  %v544_v15 = vld [vmem:[%s3403_s1] sm:$0xff]  ;;  %v591_v18 = vld [vmem:[%s3403_s1 + $0x178] sm:$0xff]  ;;  %v590_v22 = vld [vmem:[%s3403_s1 + $0x170] sm:$0xff] }
  0x11   : > { %1952 = vmatpush.msra.mxu3 %v557_v2  ;;  %690 = vmatpush.msra.mxu0 %v557_v2  ;;  %v2126_v16 = vld [vmem:[%s2120_s22 + $0x60] sm:$0xff]  ;;  %v575_v20 = vld [vmem:[%s3403_s1 + $0xf8] sm:$0xff]  ;;  %v574_v23 = vld [vmem:[%s3403_s1 + $0xf0] sm:$0xff] }
  0x12   : > { %1953 = vmatpush.msra.mxu1 %v556_v3  ;;  %1954 = vmatpush.msra.mxu2 %v556_v3  ;;  %v2129_v17 = vld [vmem:[%s2120_s22 + $0xc0] sm:$0xff]  ;;  %v607_v21 = vld [vmem:[%s3403_s1 + $0x1f8] sm:$0xff]  ;;  %v606_v24 = vld [vmem:[%s3403_s1 + $0x1f0] sm:$0xff] }
  0x13   : > { %1955 = vmatpush.msra.mxu3 %v556_v3  ;;  %691 = vmatpush.msra.mxu0 %v556_v3  ;;  %v218_v19 = vld [vmem:[%s2120_s22 + $0x120] sm:$0xff]  ;;  %v589_v25 = vld [vmem:[%s3403_s1 + $0x168] sm:$0xff]  ;;  %v623_v29 = vld [vmem:[%s3403_s1 + $0x278] sm:$0xff] }
  0x14   : > { %1956 = vmatpush.msra.mxu1 %v555_v4  ;;  %1957 = vmatpush.msra.mxu2 %v555_v4  ;;  %v2156_v26 = vld [vmem:[%s2120_s22] sm:$0xff]  ;;  %v573_v27 = vld [vmem:[%s3403_s1 + $0xe8] sm:$0xff]  ;;  %v622_v35 = vld [vmem:[%s3403_s1 + $0x270] sm:$0xff] }
  0x15   : > { %1958 = vmatpush.msra.mxu3 %v555_v4  ;;  %692 = vmatpush.msra.mxu0 %v555_v4  ;;  %v605_v28 = vld [vmem:[%s3403_s1 + $0x1e8] sm:$0xff]  ;;  %v588_v32 = vld [vmem:[%s3403_s1 + $0x160] sm:$0xff]  ;;  %v587_v37 = vld [vmem:[%s3403_s1 + $0x158] sm:$0xff] }
  0x16   : > { %1959 = vmatpush.msra.mxu1 %v554_v5  ;;  %1960 = vmatpush.msra.mxu2 %v554_v5  ;;  %v2168_v30 = vld [vmem:[%s2120_s22 + $0x68] sm:$0xff]  ;;  %v604_v33 = vld [vmem:[%s3403_s1 + $0x1e0] sm:$0xff]  ;;  %v603_v38 = vld [vmem:[%s3403_s1 + $0x1d8] sm:$0xff] }
  0x17   : > { %1961 = vmatpush.msra.mxu3 %v554_v5  ;;  %693 = vmatpush.msra.mxu0 %v554_v5  ;;  %v2171_v31 = vld [vmem:[%s2120_s22 + $0xc8] sm:$0xff]  ;;  %v572_v36 = vld [vmem:[%s3403_s1 + $0xe0] sm:$0xff]  ;;  %v571_v40 = vld [vmem:[%s3403_s1 + $0xd8] sm:$0xff] }
  0x18   : > { %1962 = vmatpush.msra.mxu1 %v553_v6  ;;  %1963 = vmatpush.msra.mxu2 %v553_v6  ;;  %v219_v34 = vld [vmem:[%s2120_s22 + $0x128] sm:$0xff]  ;;  %v586_v41 = vld [vmem:[%s3403_s1 + $0x150] sm:$0xff]  ;;  %v620_v44 = vld [vmem:[%s3403_s1 + $0x260] sm:$0xff] }
  0x19   : > { %1964 = vmatpush.msra.mxu3 %v553_v6  ;;  %694 = vmatpush.msra.mxu0 %v553_v6  ;;  %v621_v39 = vld [vmem:[%s3403_s1 + $0x268] sm:$0xff]  ;;  %v602_v43 = vld [vmem:[%s3403_s1 + $0x1d0] sm:$0xff]  ;;  %v2217_v46 = vld [vmem:[%s2120_s22 + $0x78] sm:$0xff] }
  0x1a   : > { %1965 = vmatpush.msra.mxu1 %v552_v7  ;;  %1966 = vmatpush.msra.mxu2 %v552_v7  ;;  %v2205_v42 = vld [vmem:[%s2120_s22 + $0x8] sm:$0xff]  ;;  %v570_v45 = vld [vmem:[%s3403_s1 + $0xd0] sm:$0xff]  ;;  %v2220_v47 = vld [vmem:[%s2120_s22 + $0xd8] sm:$0xff] }
  0x1b   : > { %1967 = vmatpush.msra.mxu3 %v552_v7  ;;  %695 = vmatpush.msra.mxu0 %v552_v7  ;;  %v585_v48 = vld [vmem:[%s3403_s1 + $0x148] sm:$0xff]  ;;  %v221_v50 = vld [vmem:[%s2120_s22 + $0x138] sm:$0xff]  ;;  %v584_v53 = vld [vmem:[%s3403_s1 + $0x140] sm:$0xff] }
  0x1c   : > { %1968 = vmatpush.msra.mxu1 %v551_v8  ;;  %1969 = vmatpush.msra.mxu2 %v551_v8  ;;  %v601_v49 = vld [vmem:[%s3403_s1 + $0x1c8] sm:$0xff]  ;;  %v619_v51 = vld [vmem:[%s3403_s1 + $0x258] sm:$0xff]  ;;  %v600_v54 = vld [vmem:[%s3403_s1 + $0x1c0] sm:$0xff] }
  0x1d   : > { %1970 = vmatpush.msra.mxu3 %v551_v8  ;;  %696 = vmatpush.msra.mxu0 %v551_v8  ;;  %v569_v52 = vld [vmem:[%s3403_s1 + $0xc8] sm:$0xff]  ;;  %v618_v55 = vld [vmem:[%s3403_s1 + $0x250] sm:$0xff]  ;;  %v568_v56 = vld [vmem:[%s3403_s1 + $0xc0] sm:$0xff] }
  0x1e   : > { %1971 = vmatpush.msra.mxu1 %v550_v9  ;;  %1972 = vmatpush.msra.mxu2 %v550_v9  ;;  %v583_v57 = vld [vmem:[%s3403_s1 + $0x138] sm:$0xff]  ;;  %v617_v60 = vld [vmem:[%s3403_s1 + $0x248] sm:$0xff]  ;;  %v2266_v62 = vld [vmem:[%s2120_s22 + $0x80] sm:$0xff] }
  0x1f   : > { %1973 = vmatpush.msra.mxu3 %v550_v9  ;;  %697 = vmatpush.msra.mxu0 %v550_v9  ;;  %v2254_v58 = vld [vmem:[%s2120_s22 + $0x18] sm:$0xff]  ;;  %v2269_v63 = vld [vmem:[%s2120_s22 + $0xe0] sm:$0xff]  ;;  %v582_v0 = vld [vmem:[%s3403_s1 + $0x130] sm:$0xff] }
  0x20   : > { %1974 = vmatpush.msra.mxu1 %v549_v10  ;;  %1975 = vmatpush.msra.mxu2 %v549_v10  ;;  %v599_v59 = vld [vmem:[%s3403_s1 + $0x1b8] sm:$0xff]  ;;  %v598_v1 = vld [vmem:[%s3403_s1 + $0x1b0] sm:$0xff]  ;;  %v222_v2 = vld [vmem:[%s2120_s22 + $0x140] sm:$0xff] }
  0x21   : > { %1976 = vmatpush.msra.mxu3 %v549_v10  ;;  %698 = vmatpush.msra.mxu0 %v549_v10  ;;  %v567_v61 = vld [vmem:[%s3403_s1 + $0xb8] sm:$0xff]  ;;  %v616_v3 = vld [vmem:[%s3403_s1 + $0x240] sm:$0xff]  ;;  %v566_v4 = vld [vmem:[%s3403_s1 + $0xb0] sm:$0xff] }
  0x22   : > { %1977 = vmatpush.msra.mxu1 %v548_v11  ;;  %1978 = vmatpush.msra.mxu2 %v548_v11  ;;  %v581_v5 = vld [vmem:[%s3403_s1 + $0x128] sm:$0xff]  ;;  %v615_v7 = vld [vmem:[%s3403_s1 + $0x238] sm:$0xff]  ;;  %v580_v9 = vld [vmem:[%s3403_s1 + $0x120] sm:$0xff] }
  0x23   : > { %1979 = vmatpush.msra.mxu3 %v548_v11  ;;  %699 = vmatpush.msra.mxu0 %v548_v11  ;;  %v597_v6 = vld [vmem:[%s3403_s1 + $0x1a8] sm:$0xff]  ;;  %v2303_v10 = vld [vmem:[%s2120_s22 + $0x20] sm:$0xff] }
  0x24   : > { %1980 = vmatpush.msra.mxu1 %v547_v12  ;;  %1981 = vmatpush.msra.mxu2 %v547_v12  ;;  %v565_v8 = vld [vmem:[%s3403_s1 + $0xa8] sm:$0xff]  ;;  %v596_v11 = vld [vmem:[%s3403_s1 + $0x1a0] sm:$0xff] }
  0x25   : > { %1982 = vmatpush.msra.mxu3 %v547_v12  ;;  %700 = vmatpush.msra.mxu0 %v547_v12  ;;  %v614_v12 = vld [vmem:[%s3403_s1 + $0x230] sm:$0xff] }
  0x26   : > { %1983 = vmatpush.msra.mxu1 %v546_v13  ;;  %1984 = vmatpush.msra.mxu2 %v546_v13 }
  0x27   : > { %1985 = vmatpush.msra.mxu3 %v546_v13  ;;  %701 = vmatpush.msra.mxu0 %v546_v13  ;;  %v564_v13 = vld [vmem:[%s3403_s1 + $0xa0] sm:$0xff] }
  0x28   : > { %1986 = vmatpush.msra.mxu1 %v545_v14  ;;  %1987 = vmatpush.msra.mxu2 %v545_v14 }
  0x29   : > { %1988 = vmatpush.msra.mxu3 %v545_v14  ;;  %702 = vmatpush.msra.mxu0 %v545_v14  ;;  %v2315_v14 = vld [vmem:[%s2120_s22 + $0x90] sm:$0xff] }
  0x2a   : > { %1989 = vmatpush.msra.mxu1 %v544_v15  ;;  %1990 = vmatpush.msra.mxu2 %v544_v15 }
  0x2b   : > { %728 = vmatmul.f32.vlgmr.msra.gmra.mxu1 %v2126_v16  ;;  %752 = vmatmul.f32.vlgmr.msra.gmra.mxu2 %v2129_v17 }
  0x2c   : > { %914 = vmatpush.msrb.mxu2 %v591_v18  ;;  %1991 = vmatpush.msra.mxu3 %v544_v15  ;;  %v579_v18 = vld [vmem:[%s3403_s1 + $0x118] sm:$0xff] }
  0x2d   : > { %776 = vmatmul.f32.vlgmr.msra.gmra.mxu3 %v218_v19  ;;  %801 = vmatpush.msrb.mxu1 %v575_v20  ;;  %v595_v19 = vld [vmem:[%s3403_s1 + $0x198] sm:$0xff]  ;;  %v224_v20 = vld [vmem:[%s2120_s22 + $0x150] sm:$0xff] }
  0x2e   : > { %1027 = vmatpush.msrb.mxu3 %v607_v21  ;;  %915 = vmatpush.msrb.mxu2 %v590_v22  ;;  %v613_v21 = vld [vmem:[%s3403_s1 + $0x228] sm:$0xff]  ;;  %v563_v22 = vld [vmem:[%s3403_s1 + $0x98] sm:$0xff] }
  0x2f   : > { %802 = vmatpush.msrb.mxu1 %v574_v23  ;;  %703 = vmatpush.msra.mxu0 %v544_v15  ;;  %v2318_v15 = vld [vmem:[%s2120_s22 + $0xf0] sm:$0xff] }
  0x30   : > { %1028 = vmatpush.msrb.mxu3 %v606_v24  ;;  %916 = vmatpush.msrb.mxu2 %v589_v25  ;;  %v578_v23 = vld [vmem:[%s3403_s1 + $0x110] sm:$0xff]  ;;  %v612_v25 = vld [vmem:[%s3403_s1 + $0x220] sm:$0xff] }
  0x31   : > { %704 = vmatmul.f32.vlgmr.msra.gmra.mxu0 %v2156_v26  ;;  %803 = vmatpush.msrb.mxu1 %v573_v27  ;;  %v594_v24 = vld [vmem:[%s3403_s1 + $0x190] sm:$0xff] }
  0x32   : > { %1029 = vmatpush.msrb.mxu3 %v605_v28  ;;  %1140 = vmatpush.msrb.mxu0 %v623_v29  ;;  %v562_v27 = vld [vmem:[%s3403_s1 + $0x90] sm:$0xff]  ;;  %v577_v28 = vld [vmem:[%s3403_s1 + $0x108] sm:$0xff] }
  0x33   : > { %731 = vmatmul.f32.gmra.mxu1 %v2168_v30  ;;  %755 = vmatmul.f32.gmra.mxu2 %v2171_v31  ;;  %v2352_v29 = vld [vmem:[%s2120_s22 + $0x30] sm:$0xff] }
  0x34   : > { %917 = vmatpush.msrb.mxu2 %v588_v32  ;;  %1030 = vmatpush.msrb.mxu3 %v604_v33  ;;  %v593_v32 = vld [vmem:[%s3403_s1 + $0x188] sm:$0xff]  ;;  %v611_v33 = vld [vmem:[%s3403_s1 + $0x218] sm:$0xff] }
  0x35   : > { %779 = vmatmul.f32.gmra.mxu3 %v219_v34  ;;  %1141 = vmatpush.msrb.mxu0 %v622_v35  ;;  %v561_v34 = vld [vmem:[%s3403_s1 + $0x88] sm:$0xff]  ;;  %v2364_v35 = vld [vmem:[%s2120_s22 + $0x98] sm:$0xff] }
  0x36   : > { %804 = vmatpush.msrb.mxu1 %v572_v36  ;;  %918 = vmatpush.msrb.mxu2 %v587_v37  ;;  %v2367_v36 = vld [vmem:[%s2120_s22 + $0xf8] sm:$0xff]  ;;  %v576_v37 = vld [vmem:[%s3403_s1 + $0x100] sm:$0xff] }
  0x37   : > { %1031 = vmatpush.msrb.mxu3 %v603_v38  ;;  %1142 = vmatpush.msrb.mxu0 %v621_v39  ;;  %v592_v38 = vld [vmem:[%s3403_s1 + $0x180] sm:$0xff]  ;;  %v225_v39 = vld [vmem:[%s2120_s22 + $0x158] sm:$0xff] }
  0x38   : > { %805 = vmatpush.msrb.mxu1 %v571_v40  ;;  %919 = vmatpush.msrb.mxu2 %v586_v41  ;;  %v610_v40 = vld [vmem:[%s3403_s1 + $0x210] sm:$0xff]  ;;  %v560_v41 = vld [vmem:[%s3403_s1 + $0x80] sm:$0xff] }
  0x39   : > { %707 = vmatmul.f32.gmra.mxu0 %v2205_v42  ;;  %1032 = vmatpush.msrb.mxu3 %v602_v43  ;;  %v655_v43 = vld [vmem:[%s3403_s1 + $0x378] sm:$0xff] }
  0x3a   : > { %1143 = vmatpush.msrb.mxu0 %v620_v44  ;;  %806 = vmatpush.msrb.mxu1 %v570_v45  ;;  %v609_v44 = vld [vmem:[%s3403_s1 + $0x208] sm:$0xff]  ;;  %v671_v45 = vld [vmem:[%s3403_s1 + $0x3f8] sm:$0xff] }
  0x3b   : > { %734 = vmatmul.f32.gmra.mxu1 %v2217_v46  ;;  %758 = vmatmul.f32.gmra.mxu2 %v2220_v47 }
  0x3c   : > { %920 = vmatpush.msrb.mxu2 %v585_v48  ;;  %1033 = vmatpush.msrb.mxu3 %v601_v49  ;;  %v639_v48 = vld [vmem:[%s3403_s1 + $0x2f8] sm:$0xff] }
  0x3d   : > { %782 = vmatmul.f32.gmra.mxu3 %v221_v50  ;;  %1144 = vmatpush.msrb.mxu0 %v619_v51  ;;  %v2398_v49 = vld [vmem:[%s2120_s22 + $0x38] sm:$0xff]  ;;  %v608_v50 = vld [vmem:[%s3403_s1 + $0x200] sm:$0xff]  ;;  %v2404_v51 = vld [vmem:[%s2120_s22 + $0xa8] sm:$0xff] }
  0x3e   : > { %807 = vmatpush.msrb.mxu1 %v569_v52  ;;  %921 = vmatpush.msrb.mxu2 %v584_v53  ;;  %v2407_v52 = vld [vmem:[%s2120_s22 + $0x108] sm:$0xff]  ;;  %v687_v53 = vld [vmem:[%s3403_s1 + $0x478] sm:$0xff] }
  0x3f   : > { %1034 = vmatpush.msrb.mxu3 %v600_v54  ;;  %1145 = vmatpush.msrb.mxu0 %v618_v55  ;;  %v227_v54 = vld [vmem:[%s2120_s22 + $0x168] sm:$0xff]  ;;  %v654_v55 = vld [vmem:[%s3403_s1 + $0x370] sm:$0xff] }
  0x40   : > { %808 = vmatpush.msrb.mxu1 %v568_v56  ;;  %922 = vmatpush.msrb.mxu2 %v583_v57  ;;  %v670_v56 = vld [vmem:[%s3403_s1 + $0x3f0] sm:$0xff] }
  0x41   : > { %710 = vmatmul.f32.gmra.mxu0 %v2254_v58  ;;  %1035 = vmatpush.msrb.mxu3 %v599_v59  ;;  %v638_v57 = vld [vmem:[%s3403_s1 + $0x2f0] sm:$0xff]  ;;  %v2426_v59 = vld [vmem:[%s2120_s22 + $0x48] sm:$0xff] }
  0x42   : > { %1146 = vmatpush.msrb.mxu0 %v617_v60  ;;  %809 = vmatpush.msrb.mxu1 %v567_v61  ;;  %v2429_v60 = vld [vmem:[%s2120_s22 + $0xb0] sm:$0xff] }
  0x43   : > { %737 = vmatmul.f32.gmra.mxu1 %v2266_v62  ;;  %761 = vmatmul.f32.gmra.mxu2 %v2269_v63  ;;  %v2432_v61 = vld [vmem:[%s2120_s22 + $0x110] sm:$0xff] }
  0x44   : > { %923 = vmatpush.msrb.mxu2 %v582_v0  ;;  %1036 = vmatpush.msrb.mxu3 %v598_v1  ;;  %v228_v0 = vld [vmem:[%s2120_s22 + $0x170] sm:$0xff]  ;;  %v285_v1 = vrot.slane %v2156_v26, 1 }
  0x45   : > { %785 = vmatmul.f32.gmra.mxu3 %v222_v2  ;;  %1147 = vmatpush.msrb.mxu0 %v616_v3  ;;  %v398_v2 = vrot.slane %v2156_v26, 2  ;;  %v286_v3 = vrot.slane %v2205_v42, 1  ;;  %v184_v26 = vld [vmem:[%s2120_s22 + $0x10] sm:$0x3] }
  0x46   : > { %810 = vmatpush.msrb.mxu1 %v566_v4  ;;  %924 = vmatpush.msrb.mxu2 %v581_v5  ;;  %v399_v4 = vrot.slane %v2205_v42, 2  ;;  %v686_v5 = vld [vmem:[%s3403_s1 + $0x470] sm:$0xff]  ;;  %v290_v42 = vrot.slane %v2254_v58, 1 }
  0x47   : > { %1037 = vmatpush.msrb.mxu3 %v597_v6  ;;  %1148 = vmatpush.msrb.mxu0 %v615_v7  ;;  %v2446_v6 = vld [vmem:[%s2120_s22 + $0x50] sm:$0xff]  ;;  %v287_v7 = vsel %vm284_vm0, %v285_v1, %v286_v3  ;;  %v635_v1 = vld [vmem:[%s3403_s1 + $0x2d8] sm:$0xff] }
  0x48   : > { %811 = vmatpush.msrb.mxu1 %v565_v8  ;;  %925 = vmatpush.msrb.mxu2 %v580_v9  ;;  %v400_v8 = vsel %vm397_vm1, %v398_v2, %v399_v4  ;;  %v291_v9 = vrot.slane %v2303_v10, 1  ;;  %v193_v2 = vld [vmem:[%s2120_s22 + $0x58] sm:$0x3] }
  0x49   : > { %713 = vmatmul.f32.gmra.mxu0 %v2303_v10  ;;  %1038 = vmatpush.msrb.mxu3 %v596_v11  ;;  %v653_v11 = vld [vmem:[%s3403_s1 + $0x368] sm:$0xff] }
  0x4a   : > { %1149 = vmatpush.msrb.mxu0 %v614_v12  ;;  %812 = vmatpush.msrb.mxu1 %v564_v13  ;;  %v288_v12 = vrot.slane %v184_v26, 1  ;;  %v401_v13 = vrot.slane %v184_v26, 2 }
  0x4b   : > { %740 = vmatmul.f32.gmra.mxu1 %v2315_v14  ;;  %764 = vmatmul.f32.gmra.mxu2 %v2318_v15 }
  0x4c   : > { %926 = vmatpush.msrb.mxu2 %v579_v18  ;;  %1039 = vmatpush.msrb.mxu3 %v595_v19  ;;  %v669_v18 = vld [vmem:[%s3403_s1 + $0x3e8] sm:$0xff] }
  0x4d   : > { %788 = vmatmul.f32.gmra.mxu3 %v224_v20  ;;  %1150 = vmatpush.msrb.mxu0 %v613_v21  ;;  %v637_v19 = vld [vmem:[%s3403_s1 + $0x2e8] sm:$0xff]  ;;  %v292_v20 = vsel %vm284_vm0, %v290_v42, %v291_v9 }
  0x4e   : > { %813 = vmatpush.msrb.mxu1 %v563_v22  ;;  %927 = vmatpush.msrb.mxu2 %v578_v23  ;;  %v187_v21 = vld [vmem:[%s2120_s22 + $0x28] sm:$0x3]  ;;  %v289_v22 = vsel %vm284_vm0, %v286_v3, %v288_v12  ;;  %v402_v23 = vsel %vm397_vm1, %v399_v4, %v401_v13  ;;  %v303_v4 = vrot.slane %v193_v2, 1  ;;  %v666_v12 = vld [vmem:[%s3403_s1 + $0x3d0] sm:$0xff] }
  0x4f   : > { %1040 = vmatpush.msrb.mxu3 %v594_v24  ;;  %1151 = vmatpush.msrb.mxu0 %v612_v25  ;;  %v293_v24 = vrot.slane %v187_v21, 1  ;;  %v403_v25 = vrot.slane %v2254_v58, 2 }
  0x50   : > { %814 = vmatpush.msrb.mxu1 %v562_v27  ;;  %928 = vmatpush.msrb.mxu2 %v577_v28  ;;  %v404_v27 = vrot.slane %v2303_v10, 2  ;;  %v685_v28 = vld [vmem:[%s3403_s1 + $0x468] sm:$0xff] }
  0x51   : > { %716 = vmatmul.f32.gmra.mxu0 %v2352_v29  ;;  %1041 = vmatpush.msrb.mxu3 %v593_v32  ;;  %v294_v32 = vsel %vm284_vm0, %v291_v9, %v293_v24  ;;  %v306_v9 = vrot.slane %v2168_v30, 1  ;;  %v682_v24 = vld [vmem:[%s3403_s1 + $0x450] sm:$0xff] }
  0x52   : > { %1152 = vmatpush.msrb.mxu0 %v611_v33  ;;  %815 = vmatpush.msrb.mxu1 %v561_v34  ;;  %v2476_v33 = vsel %vm397_vm1, %v403_v25, %v404_v27  ;;  %v295_v34 = vrot.slane %v2352_v29, 1 }
  0x53   : > { %743 = vmatmul.f32.gmra.mxu1 %v2364_v35  ;;  %767 = vmatmul.f32.gmra.mxu2 %v2367_v36 }
  0x54   : > { %929 = vmatpush.msrb.mxu2 %v576_v37  ;;  %1042 = vmatpush.msrb.mxu3 %v592_v38  ;;  %v406_v37 = vrot.slane %v187_v21, 2  ;;  %v668_v38 = vld [vmem:[%s3403_s1 + $0x3e0] sm:$0xff] }
  0x55   : > { %791 = vmatmul.f32.gmra.mxu3 %v225_v39  ;;  %1153 = vmatpush.msrb.mxu0 %v610_v40  ;;  %v636_v39 = vld [vmem:[%s3403_s1 + $0x2e0] sm:$0xff] }
  0x56   : > { %816 = vmatpush.msrb.mxu1 %v560_v41  ;;  %1366 = vmatpush.msra.mxu2 %v655_v43  ;;  %v190_v41 = vld [vmem:[%s2120_s22 + $0x40] sm:$0x3]  ;;  %v2496_v43 = vsel %vm397_vm1, %v404_v27, %v406_v37 }
  0x57   : > { %1154 = vmatpush.msrb.mxu0 %v609_v44  ;;  %1479 = vmatpush.msra.mxu3 %v671_v45  ;;  %v298_v44 = vrot.slane %v190_v41, 1  ;;  %v408_v45 = vrot.slane %v2352_v29, 2 }
  0x58   : > { %1253 = vmatpush.msra.mxu1 %v639_v48  ;;  %1367 = vmatpush.msra.mxu2 %v654_v55  ;;  %v409_v48 = vrot.slane %v2398_v49, 2  ;;  %v301_v55 = vrot.slane %v2446_v6, 1 }
  0x59   : > { %719 = vmatmul.f32.gmra.mxu0 %v2398_v49  ;;  %1480 = vmatpush.msra.mxu3 %v670_v56  ;;  %v411_v56 = vrot.slane %v190_v41, 2  ;;  %v199_v41 = vld [vmem:[%s2120_s22 + $0x88] sm:$0x3] }
  0x5a   : > { %1155 = vmatpush.msrb.mxu0 %v608_v50  ;;  %1254 = vmatpush.msra.mxu1 %v638_v57  ;;  %v684_v50 = vld [vmem:[%s3403_s1 + $0x460] sm:$0xff]  ;;  %v667_v57 = vld [vmem:[%s3403_s1 + $0x3d8] sm:$0xff]  ;;  %v2544_v26 = vsel %vm284_vm0, %v301_v55, %v303_v4 }
  0x5b   : > { %746 = vmatmul.f32.gmra.mxu1 %v2404_v51  ;;  %770 = vmatmul.f32.gmra.mxu2 %v2407_v52  ;;  %v2532_v3 = vsel %vm397_vm1, %v409_v48, %v411_v56 }
  0x5c   : > { %1592 = vmatpush.msra.mxu0 %v687_v53  ;;  %1368 = vmatpush.msra.mxu2 %v653_v11  ;;  %v416_v11 = vrot.slane %v193_v2, 2 }
  0x5d   : > { %794 = vmatmul.f32.gmra.mxu3 %v227_v54  ;;  %1255 = vmatpush.msra.mxu1 %v637_v19  ;;  %v2510_v54 = vsel %vm397_vm1, %v408_v45, %v409_v48  ;;  %v196_v19 = vld [vmem:[%s2120_s22 + $0x70] sm:$0x3] }
  0x5e   : > { %1593 = vmatpush.msra.mxu0 %v686_v5  ;;  %1481 = vmatpush.msra.mxu3 %v669_v18  ;;  %v413_v5 = vrot.slane %v2426_v59, 2  ;;  %v634_v18 = vld [vmem:[%s3403_s1 + $0x2d0] sm:$0xff]  ;;  %v308_v21 = vrot.slane %v196_v19, 1 }
  0x5f   : > { %1256 = vmatpush.msra.mxu1 %v636_v39  ;;  %v633_v39 = vld [vmem:[%s3403_s1 + $0x2c8] sm:$0xff] }
  0x60   : > { %1594 = vmatpush.msra.mxu0 %v685_v28  ;;  %1482 = vmatpush.msra.mxu3 %v668_v38  ;;  %v2581_v25 = vsel %vm284_vm0, %v306_v9, %v308_v21 }
  0x61   : > { %722 = vmatmul.f32.gmra.mxu0 %v2426_v59  ;;  %1257 = vmatpush.msra.mxu1 %v635_v1 }
  0x62   : > { %1595 = vmatpush.msra.mxu0 %v684_v50  ;;  %1483 = vmatpush.msra.mxu3 %v667_v57  ;;  %v313_v50 = vrot.slane %v199_v41, 1 }
  0x63   : > { %749 = vmatmul.f32.gmra.mxu1 %v2429_v60  ;;  %773 = vmatmul.f32.gmra.mxu2 %v2432_v61 }
  0x64   : > { %1484 = vmatpush.msra.mxu3 %v666_v12  ;;  %1258 = vmatpush.msra.mxu1 %v634_v18  ;;  %v632_v12 = vld [vmem:[%s3403_s1 + $0x2c0] sm:$0xff] }
  0x65   : > { %797 = vmatmul.f32.gmra.mxu3 %v228_v0  ;;  %v202_v18 = vld [vmem:[%s2120_s22 + $0xa0] sm:$0x3] }
  0x66   : > { %1259 = vmatpush.msra.mxu1 %v633_v39 }
  0x68   : > { %1260 = vmatpush.msra.mxu1 %v632_v12 }
  0x69   : > { %725 = vmatmul.f32.gmra.mxu0 %v2446_v6 }
  0x6b   : > { %817 = vmatmul.f32.vlgmr.msrb.gmra.mxu1 %v287_v7  ;;  %930 = vmatmul.f32.vlgmr.msrb.gmra.mxu2 %v400_v8  ;;  %v414_v7 = vrot.slane %v2446_v6, 2  ;;  %v683_v8 = vld [vmem:[%s3403_s1 + $0x458] sm:$0xff] }
  0x6c   : > { %1596 = vmatpush.msra.mxu0 %v683_v8  ;;  %v426_v8 = vrot.slane %v199_v41, 2 }
  0x6d   : > { %1043 = vmatmul.f32.vlgmr.msrb.gmra.mxu3 %v2254_v58  ;;  %v296_v58 = vrot.slane %v2398_v49, 1  ;;  %v2547_v42 = vsel %vm397_vm1, %v413_v5, %v414_v7  ;;  %v316_v5 = vrot.slane %v2364_v35, 1 }
  0x6e   : > { %1597 = vmatpush.msra.mxu0 %v682_v24  ;;  %v428_v24 = vrot.slane %v2315_v14, 2 }
  0x6f   : > { %v2492_v40 = vsel %vm284_vm0, %v295_v34, %v296_v58  ;;  %v2507_v53 = vsel %vm284_vm0, %v296_v58, %v298_v44  ;;  %v421_v34 = vrot.slane %v196_v19, 2  ;;  %v665_v58 = vld [vmem:[%s3403_s1 + $0x3c8] sm:$0xff] }
  0x70   : > { %1485 = vmatpush.msra.mxu3 %v665_v58 }
  0x71   : > { %1156 = vmatmul.f32.vlgmr.msrb.gmra.mxu0 %v292_v20 }
  0x73   : > { %820 = vmatmul.f32.gmra.mxu1 %v289_v22  ;;  %933 = vmatmul.f32.gmra.mxu2 %v402_v23  ;;  %v418_v22 = vrot.slane %v2126_v16, 2  ;;  %v419_v23 = vrot.slane %v2168_v30, 2 }
  0x75   : > { %1046 = vmatmul.f32.gmra.mxu3 %v2303_v10  ;;  %v652_v10 = vld [vmem:[%s3403_s1 + $0x360] sm:$0xff]  ;;  %v2586_v28 = vsel %vm397_vm1, %v418_v22, %v419_v23  ;;  %v2616_v48 = vsel %vm397_vm1, %v419_v23, %v421_v34  ;;  %v318_v23 = vrot.slane %v202_v18, 1 }
  0x76   : > { %1369 = vmatpush.msra.mxu2 %v652_v10 }
  0x77   : > { %v2685_v58 = vsel %vm284_vm0, %v316_v5, %v318_v23 }
  0x78   : > { %3452 = vst [vmem:[#allocation8_spill] sm:$0xff] %v2685_v58 }
  0x79   : > { %1159 = vmatmul.f32.gmra.mxu0 %v294_v32 }
  0x7b   : > { %823 = vmatmul.f32.gmra.mxu1 %v292_v20  ;;  %936 = vmatmul.f32.gmra.mxu2 %v2476_v33  ;;  %v2569_v20 = vsel %vm397_vm1, %v414_v7, %v416_v11  ;;  %v648_v7 = vld [vmem:[%s3403_s1 + $0x340] sm:$0xff] }
  0x7d   : > { %1049 = vmatmul.f32.gmra.mxu3 %v2352_v29  ;;  %v300_v29 = vrot.slane %v2426_v59, 1 }
  0x7f   : > { %v2525_v0 = vsel %vm284_vm0, %v300_v29, %v301_v55  ;;  %v423_v29 = vrot.slane %v2217_v46, 2  ;;  %v424_v55 = vrot.slane %v2266_v62, 2 }
  0x81   : > { %1162 = vmatmul.f32.gmra.mxu0 %v2492_v40  ;;  %v2669_v22 = vsel %vm397_vm1, %v424_v55, %v426_v8  ;;  %v205_v8 = vld [vmem:[%s2120_s22 + $0xb8] sm:$0x3] }
  0x82   : > { %3451 = vst [vmem:[#allocation7_spill] sm:$0xff] %v2669_v22 }
  0x83   : > { %826 = vmatmul.f32.gmra.mxu1 %v294_v32  ;;  %939 = vmatmul.f32.gmra.mxu2 %v2496_v43  ;;  %v649_v32 = vld [vmem:[%s3403_s1 + $0x348] sm:$0xff] }
  0x85   : > { %1052 = vmatmul.f32.gmra.mxu3 %v2398_v49  ;;  %v651_v49 = vld [vmem:[%s3403_s1 + $0x358] sm:$0xff] }
  0x86   : > { %1370 = vmatpush.msra.mxu2 %v651_v49  ;;  %v681_v49 = vld [vmem:[%s3403_s1 + $0x448] sm:$0xff] }
  0x87   : > { %1598 = vmatpush.msra.mxu0 %v681_v49  ;;  %v663_v49 = vld [vmem:[%s3403_s1 + $0x3b8] sm:$0xff] }
  0x89   : > { %1165 = vmatmul.f32.gmra.mxu0 %v2507_v53 }
  0x8b   : > { %829 = vmatmul.f32.gmra.mxu1 %v2492_v40  ;;  %942 = vmatmul.f32.gmra.mxu2 %v2510_v54 }
  0x8d   : > { %1055 = vmatmul.f32.gmra.mxu3 %v2426_v59  ;;  %v305_v59 = vrot.slane %v2126_v16, 1 }
  0x8f   : > { %v2562_v13 = vsel %vm284_vm0, %v305_v59, %v306_v9  ;;  %v664_v59 = vld [vmem:[%s3403_s1 + $0x3c0] sm:$0xff] }
  0x90   : > { %1486 = vmatpush.msra.mxu3 %v664_v59  ;;  %v631_v59 = vld [vmem:[%s3403_s1 + $0x2b8] sm:$0xff] }
  0x91   : > { %1168 = vmatmul.f32.gmra.mxu0 %v2525_v0  ;;  %1261 = vmatpush.msra.mxu1 %v631_v59 }
  0x92   : > { %1487 = vmatpush.msra.mxu3 %v663_v49 }
  0x93   : > { %832 = vmatmul.f32.gmra.mxu1 %v2507_v53  ;;  %945 = vmatmul.f32.gmra.mxu2 %v2532_v3 }
  0x95   : > { %1058 = vmatmul.f32.gmra.mxu3 %v2446_v6  ;;  %v650_v6 = vld [vmem:[%s3403_s1 + $0x350] sm:$0xff] }
  0x96   : > { %1371 = vmatpush.msra.mxu2 %v650_v6 }
  0x98   : > { %1372 = vmatpush.msra.mxu2 %v649_v32 }
  0x99   : > { %1171 = vmatmul.f32.gmra.mxu0 %v2544_v26 }
  0x9a   : > { %1373 = vmatpush.msra.mxu2 %v648_v7 }
  0x9b   : > { %835 = vmatmul.f32.gmra.mxu1 %v2525_v0  ;;  %948 = vmatmul.f32.gmra.mxu2 %v2547_v42 }
  0x9d   : > { %1061 = vmatmul.f32.gmra.mxu3 %v2126_v16  ;;  %v310_v16 = vrot.slane %v2217_v46, 1 }
  0xa1   : > { %1174 = vmatmul.f32.gmra.mxu0 %v2562_v13 }
  0xa3   : > { %838 = vmatmul.f32.gmra.mxu1 %v2544_v26  ;;  %951 = vmatmul.f32.gmra.mxu2 %v2569_v20 }
  0xa5   : > { %1064 = vmatmul.f32.gmra.mxu3 %v2168_v30  ;;  %v311_v30 = vrot.slane %v2266_v62, 1 }
  0xa7   : > { %v2605_v38 = vsel %vm284_vm0, %v310_v16, %v311_v30  ;;  %v2632_v1 = vsel %vm284_vm0, %v311_v30, %v313_v50  ;;  %v429_v16 = vrot.slane %v2364_v35, 2  ;;  %v680_v30 = vld [vmem:[%s3403_s1 + $0x440] sm:$0xff]  ;;  %v321_v50 = vrot.slane %v2429_v60, 1 }
  0xa8   : > { %v2583_v27 = vpop.f32.mrf.mxu1  ;;  %3447 = vst [vmem:[#allocation3_spill] sm:$0xff] %v2632_v1  ;;  %1599 = vmatpush.msra.mxu0 %v680_v30  ;;  %v433_v30 = vrot.slane %v2404_v51, 2 }
  0xa9   : > { %1177 = vmatmul.f32.gmra.mxu0 %v2581_v25 }
  0xab   : > { %841 = vmatmul.f32.gmra.mxu1 %v2562_v13  ;;  %954 = vmatmul.f32.gmra.mxu2 %v2586_v28 }
  0xad   : > { %1067 = vmatmul.f32.gmra.mxu3 %v2217_v46  ;;  %v2639_v46 = vsel %vm397_vm1, %v423_v29, %v424_v55  ;;  %v647_v29 = vld [vmem:[%s3403_s1 + $0x338] sm:$0xff]  ;;  %v431_v55 = vrot.slane %v202_v18, 2 }
  0xae   : > { %v2600_v10 = vpop.f32.mrf.mxu2  ;;  %v2602_v37 = vpop.f32.mrf.mxu0  ;;  %1374 = vmatpush.msra.mxu2 %v647_v29  ;;  %v679_v29 = vld [vmem:[%s3403_s1 + $0x438] sm:$0xff] }
  0xaf   : > { %v2722_v23 = vsel %vm397_vm1, %v429_v16, %v431_v55  ;;  %1600 = vmatpush.msra.mxu0 %v679_v29 }
  0xb0   : > { %v2611_v44 = vpop.f32.mrf.mxu1  ;;  %v2613_v45 = vpop.f32.mrf.mxu3  ;;  %3457 = vst [vmem:[#allocation13_spill] sm:$0xff] %v2722_v23 }
  0xb1   : > { %3446 = vst [vmem:[#allocation2_spill] sm:$0xff] %v2613_v45  ;;  %1180 = vmatmul.f32.gmra.mxu0 %v2605_v38 }
  0xb3   : > { %844 = vmatmul.f32.gmra.mxu1 %v2581_v25  ;;  %957 = vmatmul.f32.gmra.mxu2 %v2616_v48 }
  0xb5   : > { %1070 = vmatmul.f32.gmra.mxu3 %v2266_v62  ;;  %v315_v62 = vrot.slane %v2315_v14, 1 }
  0xb6   : > { %v2627_v56 = vpop.f32.mrf.mxu2  ;;  %v2629_v57 = vpop.f32.mrf.mxu0 }
  0xb7   : > { %v2658_v11 = vsel %vm284_vm0, %v315_v62, %v316_v5 }
  0xb8   : > { %v2634_v2 = vpop.f32.mrf.mxu1  ;;  %v2636_v4 = vpop.f32.mrf.mxu3  ;;  %3449 = vst [vmem:[#allocation5_spill] sm:$0xff] %v2658_v11 }
  0xb9   : > { %3448 = vst [vmem:[#allocation4_spill] sm:$0xff] %v2636_v4  ;;  %1183 = vmatmul.f32.gmra.mxu0 %v2632_v1  ;;  %v331_v4 = vrot.slane %v2269_v63, 1 }
  0xbb   : > { %847 = vmatmul.f32.gmra.mxu1 %v2605_v38  ;;  %960 = vmatmul.f32.gmra.mxu2 %v2639_v46 }
  0xbd   : > { %1073 = vmatmul.f32.gmra.mxu3 %v2315_v14  ;;  %v2692_v14 = vsel %vm397_vm1, %v428_v24, %v429_v16  ;;  %v323_v24 = vrot.slane %v205_v8, 1 }
  0xbe   : > { %v2653_v9 = vpop.f32.mrf.mxu2  ;;  %v2655_v6 = vpop.f32.mrf.mxu0  ;;  %3454 = vst [vmem:[#allocation10_spill] sm:$0xff] %v2692_v14 }
  0xbf   : > { %v2738_v49 = vsel %vm284_vm0, %v321_v50, %v323_v24  ;;  %v436_v24 = vrot.slane %v205_v8, 2  ;;  %v630_v8 = vld [vmem:[%s3403_s1 + $0x2b0] sm:$0xff] }
  0xc0   : > { %v2664_v19 = vpop.f32.mrf.mxu1  ;;  %v2666_v21 = vpop.f32.mrf.mxu3  ;;  %3458 = vst [vmem:[#allocation14_spill] sm:$0xff] %v2738_v49  ;;  %1262 = vmatpush.msra.mxu1 %v630_v8 }
  0xc1   : > { %3450 = vst [vmem:[#allocation6_spill] sm:$0xff] %v2666_v21  ;;  %1186 = vmatmul.f32.gmra.mxu0 %v2658_v11 }
  0xc3   : > { %850 = vmatmul.f32.gmra.mxu1 %v2632_v1  ;;  %963 = vmatmul.f32.gmra.mxu2 %v2669_v22 }
  0xc5   : > { %1076 = vmatmul.f32.gmra.mxu3 %v2364_v35  ;;  %v320_v35 = vrot.slane %v2404_v51, 1 }
  0xc6   : > { %v2680_v32 = vpop.f32.mrf.mxu2  ;;  %v2682_v34 = vpop.f32.mrf.mxu0 }
  0xc7   : > { %v2711_v7 = vsel %vm284_vm0, %v320_v35, %v321_v50  ;;  %v434_v35 = vrot.slane %v2429_v60, 2  ;;  %v646_v50 = vld [vmem:[%s3403_s1 + $0x330] sm:$0xff] }
  0xc8   : > { %v2687_v39 = vpop.f32.mrf.mxu1  ;;  %v2689_v41 = vpop.f32.mrf.mxu3  ;;  %3455 = vst [vmem:[#allocation11_spill] sm:$0xff] %v2711_v7  ;;  %1375 = vmatpush.msra.mxu2 %v646_v50 }
  0xc9   : > { %3453 = vst [vmem:[#allocation9_spill] sm:$0xff] %v2689_v41  ;;  %1189 = vmatmul.f32.gmra.mxu0 %v2685_v58  ;;  %v326_v41 = vrot.slane %v2171_v31, 1 }
  0xcb   : > { %853 = vmatmul.f32.gmra.mxu1 %v2658_v11  ;;  %966 = vmatmul.f32.gmra.mxu2 %v2692_v14  ;;  %v211_v11 = vld [vmem:[%s2120_s22 + $0xe8] sm:$0x3] }
  0xcc   : > { %v333_v22 = vrot.slane %v211_v11, 1 }
  0xcd   : > { %1079 = vmatmul.f32.gmra.mxu3 %v2404_v51  ;;  %v2745_v51 = vsel %vm397_vm1, %v433_v30, %v434_v35  ;;  %v662_v30 = vld [vmem:[%s3403_s1 + $0x3b0] sm:$0xff] }
  0xce   : > { %v2706_v62 = vpop.f32.mrf.mxu2  ;;  %v2708_v5 = vpop.f32.mrf.mxu0  ;;  %3460 = vst [vmem:[#allocation16_spill] sm:$0xff] %v2745_v51  ;;  %1488 = vmatpush.msra.mxu3 %v662_v30  ;;  %v439_v30 = vrot.slane %v2171_v31, 2 }
  0xd0   : > { %v2717_v12 = vpop.f32.mrf.mxu1  ;;  %v2719_v18 = vpop.f32.mrf.mxu3 }
  0xd1   : > { %3456 = vst [vmem:[#allocation12_spill] sm:$0xff] %v2719_v18  ;;  %1192 = vmatmul.f32.gmra.mxu0 %v2711_v7 }
  0xd3   : > { %856 = vmatmul.f32.gmra.mxu1 %v2685_v58  ;;  %969 = vmatmul.f32.gmra.mxu2 %v2722_v23  ;;  %v2775_v23 = vsel %vm397_vm1, %v434_v35, %v436_v24 }
  0xd4   : > { %3463 = vst [vmem:[#allocation19_spill] sm:$0xff] %v2775_v23 }
  0xd5   : > { %1082 = vmatmul.f32.gmra.mxu3 %v2429_v60  ;;  %v325_v60 = vrot.slane %v2129_v17, 1 }
  0xd6   : > { %v2733_v16 = vpop.f32.mrf.mxu2  ;;  %v2735_v55 = vpop.f32.mrf.mxu0 }
  0xd8   : > { %v2740_v59 = vpop.f32.mrf.mxu1  ;;  %v2742_v18 = vpop.f32.mrf.mxu3 }
  0xd9   : > { %3459 = vst [vmem:[#allocation15_spill] sm:$0xff] %v2742_v18  ;;  %1195 = vmatmul.f32.gmra.mxu0 %v2738_v49 }
  0xdb   : > { %859 = vmatmul.f32.gmra.mxu1 %v2711_v7  ;;  %972 = vmatmul.f32.gmra.mxu2 %v2745_v51  ;;  %v2764_v7 = vsel %vm284_vm0, %v325_v60, %v326_v41  ;;  %v208_v51 = vld [vmem:[%s2120_s22 + $0xd0] sm:$0x3]  ;;  %v438_v60 = vrot.slane %v2129_v17, 2 }
  0xdc   : > { %3461 = vst [vmem:[#allocation17_spill] sm:$0xff] %v2764_v7  ;;  %v328_v58 = vrot.slane %v208_v51, 1 }
  0xdd   : > { %1085 = vmatmul.f32.gmra.mxu3 %v2129_v17  ;;  %v2796_v17 = vsel %vm397_vm1, %v438_v60, %v439_v30  ;;  %v661_v60 = vld [vmem:[%s3403_s1 + $0x3a8] sm:$0xff] }
  0xde   : > { %v2759_v29 = vpop.f32.mrf.mxu2  ;;  %v2761_v18 = vpop.f32.mrf.mxu0  ;;  %v2791_v8 = vsel %vm284_vm0, %v326_v41, %v328_v58  ;;  %3465 = vst [vmem:[#allocation21_spill] sm:$0xff] %v2796_v17  ;;  %v441_v58 = vrot.slane %v208_v51, 2  ;;  %1489 = vmatpush.msra.mxu3 %v661_v60  ;;  %v629_v51 = vld [vmem:[%s3403_s1 + $0x2a8] sm:$0xff] }
  0xdf   : > { %1263 = vmatpush.msra.mxu1 %v629_v51 }
  0xe0   : > { %v2770_v50 = vpop.f32.mrf.mxu1  ;;  %v2772_v21 = vpop.f32.mrf.mxu3 }
  0xe1   : > { %3462 = vst [vmem:[#allocation18_spill] sm:$0xff] %v2772_v21  ;;  %1198 = vmatmul.f32.gmra.mxu0 %v2764_v7  ;;  %v678_v21 = vld [vmem:[%s3403_s1 + $0x430] sm:$0xff] }
  0xe2   : > { %1601 = vmatpush.msra.mxu0 %v678_v21  ;;  %v645_v21 = vld [vmem:[%s3403_s1 + $0x328] sm:$0xff] }
  0xe3   : > { %862 = vmatmul.f32.gmra.mxu1 %v2738_v49  ;;  %975 = vmatmul.f32.gmra.mxu2 %v2775_v23 }
  0xe4   : > { %1376 = vmatpush.msra.mxu2 %v645_v21 }
  0xe5   : > { %1088 = vmatmul.f32.gmra.mxu3 %v2171_v31  ;;  %v330_v31 = vrot.slane %v2220_v47, 1 }
  0xe6   : > { %v2786_v35 = vpop.f32.mrf.mxu2  ;;  %v2788_v24 = vpop.f32.mrf.mxu0 }
  0xe8   : > { %v2793_v49 = vpop.f32.mrf.mxu3  ;;  %v818_v23 = vpop.f32.mrf.mxu1 }
  0xe9   : > { %3464 = vst [vmem:[#allocation20_spill] sm:$0xff] %v2793_v49  ;;  %1201 = vmatmul.f32.gmra.mxu0 %v2791_v8  ;;  %v819_v41 = vadd.f32 %v818_v23, %v2602_v37  ;;  %v2819_v23 = vsel %vm397_vm1, %v439_v30, %v441_v58  ;;  %v677_v30 = vld [vmem:[%s3403_s1 + $0x428] sm:$0xff] }
  0xea   : > { %1602 = vmatpush.msra.mxu0 %v677_v30 }
  0xeb   : > { %865 = vmatmul.f32.gmra.mxu1 %v2764_v7  ;;  %978 = vmatmul.f32.gmra.mxu2 %v2796_v17  ;;  %v2812_v7 = vsel %vm284_vm0, %v330_v31, %v331_v4  ;;  %v444_v31 = vrot.slane %v2269_v63, 2 }
  0xed   : > { %1091 = vmatmul.f32.gmra.mxu3 %v2220_v47 }
  0xee   : > { %v931_v49 = vpop.f32.mrf.mxu2  ;;  %v1157_v14 = vpop.f32.mrf.mxu0 }
  0xef   : > { %v932_v17 = vadd.f32 %v931_v49, %v819_v41  ;;  %v443_v49 = vrot.slane %v2220_v47, 2 }
  0xf0   : > { %v821_v21 = vpop.f32.mrf.mxu1  ;;  %v1044_v37 = vpop.f32.mrf.mxu3 }
  0xf1   : > { %v1045_v45 = vadd.f32 %v1044_v37, %v932_v17  ;;  %1204 = vmatmul.f32.gmra.mxu0 %v2812_v7  ;;  %v822_v41 = vadd.f32 %v821_v21, %v2629_v57  ;;  %v2837_v47 = vsel %vm397_vm1, %v443_v49, %v444_v31  ;;  %v336_v57 = vrot.slane %v2367_v36, 1 }
  0xf3   : > { %v2822_v1 = vadd.f32 %v1157_v14, %v1045_v45  ;;  %868 = vmatmul.f32.gmra.mxu1 %v2791_v8  ;;  %981 = vmatmul.f32.gmra.mxu2 %v2819_v23  ;;  %v2834_v45 = vsel %vm284_vm0, %v331_v4, %v333_v22  ;;  %v644_v4 = vld [vmem:[%s3403_s1 + $0x320] sm:$0xff]  ;;  %v446_v22 = vrot.slane %v211_v11, 2 }
  0xf4   : > { %1377 = vmatpush.msra.mxu2 %v644_v4  ;;  %v628_v11 = vld [vmem:[%s3403_s1 + $0x2a0] sm:$0xff] }
  0xf5   : > { %3466 = vst [vmem:[#allocation22_spill] sm:$0xff] %v2822_v1  ;;  %1094 = vmatmul.f32.gmra.mxu3 %v2269_v63  ;;  %v335_v63 = vrot.slane %v2318_v15, 1  ;;  %1264 = vmatpush.msra.mxu1 %v628_v11 }
  0xf6   : > { %v934_v17 = vpop.f32.mrf.mxu2  ;;  %v1160_v58 = vpop.f32.mrf.mxu0 }
  0xf7   : > { %v935_v14 = vadd.f32 %v934_v17, %v822_v41  ;;  %v660_v41 = vld [vmem:[%s3403_s1 + $0x3a0] sm:$0xff] }
  0xf8   : > { %v824_v60 = vpop.f32.mrf.mxu1  ;;  %v1047_v51 = vpop.f32.mrf.mxu3  ;;  %1490 = vmatpush.msra.mxu3 %v660_v41 }
  0xf9   : > { %v1048_v37 = vadd.f32 %v1047_v51, %v935_v14  ;;  %1207 = vmatmul.f32.gmra.mxu0 %v2834_v45  ;;  %v825_v49 = vadd.f32 %v824_v60, %v2655_v6  ;;  %v214_v51 = vld [vmem:[%s2120_s22 + $0x100] sm:$0x3]  ;;  %v2862_v60 = vsel %vm397_vm1, %v444_v31, %v446_v22 }
  0xfa   : > { %v676_v31 = vld [vmem:[%s3403_s1 + $0x420] sm:$0xff] }
  0xfb   : > { %v2842_v21 = vadd.f32 %v1160_v58, %v1048_v37  ;;  %871 = vmatmul.f32.gmra.mxu1 %v2812_v7  ;;  %984 = vmatmul.f32.gmra.mxu2 %v2837_v47  ;;  %v2855_v58 = vsel %vm284_vm0, %v335_v63, %v336_v57  ;;  %v448_v63 = vrot.slane %v2318_v15, 2 }
  0xfc   : > { %1603 = vmatpush.msra.mxu0 %v676_v31 }
  0xfd   : > { %3467 = vst [vmem:[#allocation23_spill] sm:$0xff] %v2842_v21  ;;  %1097 = vmatmul.f32.gmra.mxu3 %v2318_v15  ;;  %v338_v21 = vrot.slane %v214_v51, 1 }
  0xfe   : > { %v937_v30 = vpop.f32.mrf.mxu2  ;;  %v1163_v17 = vpop.f32.mrf.mxu0 }
  0xff   : > { %v938_v14 = vadd.f32 %v937_v30, %v825_v49  ;;  %v449_v49 = vrot.slane %v2367_v36, 2 }
 0x100   : > { %v827_v37 = vpop.f32.mrf.mxu1  ;;  %v1050_v6 = vpop.f32.mrf.mxu3 }
 0x101   : > { %v1051_v4 = vadd.f32 %v1050_v6, %v938_v14  ;;  %1210 = vmatmul.f32.gmra.mxu0 %v2855_v58  ;;  %v828_v41 = vadd.f32 %v827_v37, %v2682_v34  ;;  %v2880_v15 = vsel %vm397_vm1, %v448_v63, %v449_v49  ;;  %v341_v34 = vrot.slane %v2432_v61, 1 }
 0x103   : > { %v2865_v1 = vadd.f32 %v1163_v17, %v1051_v4  ;;  %874 = vmatmul.f32.gmra.mxu1 %v2834_v45  ;;  %987 = vmatmul.f32.gmra.mxu2 %v2862_v60  ;;  %v2877_v17 = vsel %vm284_vm0, %v336_v57, %v338_v21  ;;  %v643_v57 = vld [vmem:[%s3403_s1 + $0x318] sm:$0xff]  ;;  %v451_v21 = vrot.slane %v214_v51, 2 }
 0x104   : > { %1378 = vmatpush.msra.mxu2 %v643_v57  ;;  %v627_v51 = vld [vmem:[%s3403_s1 + $0x298] sm:$0xff] }
 0x105   : > { %3468 = vst [vmem:[#allocation24_spill] sm:$0xff] %v2865_v1  ;;  %1100 = vmatmul.f32.gmra.mxu3 %v2367_v36  ;;  %v340_v36 = vrot.slane %v2407_v52, 1  ;;  %1265 = vmatpush.msra.mxu1 %v627_v51 }
 0x106   : > { %v940_v22 = vpop.f32.mrf.mxu2  ;;  %v1166_v30 = vpop.f32.mrf.mxu0 }
 0x107   : > { %v941_v14 = vadd.f32 %v940_v22, %v828_v41  ;;  %v659_v41 = vld [vmem:[%s3403_s1 + $0x398] sm:$0xff] }
 0x108   : > { %v830_v11 = vpop.f32.mrf.mxu1  ;;  %v1053_v6 = vpop.f32.mrf.mxu3  ;;  %1491 = vmatpush.msra.mxu3 %v659_v41 }
 0x109   : > { %v1054_v4 = vadd.f32 %v1053_v6, %v941_v14  ;;  %1213 = vmatmul.f32.gmra.mxu0 %v2877_v17  ;;  %v831_v63 = vadd.f32 %v830_v11, %v2708_v5  ;;  %v217_v6 = vld [vmem:[%s2120_s22 + $0x118] sm:$0x3]  ;;  %v2905_v11 = vsel %vm397_vm1, %v449_v49, %v451_v21 }
 0x10a   : > { %v675_v21 = vld [vmem:[%s3403_s1 + $0x418] sm:$0xff] }
 0x10b   : > { %v2885_v37 = vadd.f32 %v1166_v30, %v1054_v4  ;;  %877 = vmatmul.f32.gmra.mxu1 %v2855_v58  ;;  %990 = vmatmul.f32.gmra.mxu2 %v2880_v15  ;;  %v2898_v30 = vsel %vm284_vm0, %v340_v36, %v341_v34  ;;  %v453_v36 = vrot.slane %v2407_v52, 2 }
 0x10c   : > { %3470 = vst [vmem:[#allocation26_spill] sm:$0xff] %v2898_v30  ;;  %1604 = vmatpush.msra.mxu0 %v675_v21 }
 0x10d   : > { %3469 = vst [vmem:[#allocation25_spill] sm:$0xff] %v2885_v37  ;;  %1103 = vmatmul.f32.gmra.mxu3 %v2407_v52  ;;  %v343_v37 = vrot.slane %v217_v6, 1 }
 0x10e   : > { %v943_v31 = vpop.f32.mrf.mxu2  ;;  %v1169_v22 = vpop.f32.mrf.mxu0 }
 0x10f   : > { %v944_v14 = vadd.f32 %v943_v31, %v831_v63  ;;  %v454_v63 = vrot.slane %v2432_v61, 2 }
 0x110   : > { %v833_v4 = vpop.f32.mrf.mxu1  ;;  %v1056_v5 = vpop.f32.mrf.mxu3 }
 0x111   : > { %v1057_v57 = vadd.f32 %v1056_v5, %v944_v14  ;;  %1216 = vmatmul.f32.gmra.mxu0 %v2898_v30  ;;  %v834_v49 = vadd.f32 %v833_v4, %v2735_v55  ;;  %v2923_v5 = vsel %vm397_vm1, %v453_v36, %v454_v63  ;;  %v2931_v4 = vld [vmem:[%s2120_s22 + $0x128] sm:$0xff]  ;;  %v642_v36 = vld [vmem:[%s3403_s1 + $0x310] sm:$0xff] }
 0x112   : > { %3472 = vst [vmem:[#allocation28_spill] sm:$0xff] %v2923_v5  ;;  %1379 = vmatpush.msra.mxu2 %v642_v36 }
 0x113   : > { %v2908_v1 = vadd.f32 %v1169_v22, %v1057_v57  ;;  %880 = vmatmul.f32.gmra.mxu1 %v2877_v17  ;;  %993 = vmatmul.f32.gmra.mxu2 %v2905_v11  ;;  %v2920_v22 = vsel %vm284_vm0, %v341_v34, %v343_v37  ;;  %3474 = vst [vmem:[#allocation30_spill] sm:$0xff] %v2931_v4  ;;  %v346_v34 = vrot.slane %v2931_v4, 1 }
 0x115   : > { %3471 = vst [vmem:[#allocation27_spill] sm:$0xff] %v2908_v1  ;;  %1106 = vmatmul.f32.gmra.mxu3 %v2432_v61  ;;  %v2927_v61 = vld [vmem:[%s2120_s22 + $0x120] sm:$0xff] }
 0x116   : > { %v946_v41 = vpop.f32.mrf.mxu2  ;;  %v1172_v31 = vpop.f32.mrf.mxu0  ;;  %3473 = vst [vmem:[#allocation29_spill] sm:$0xff] %v2927_v61  ;;  %v345_v55 = vrot.slane %v2927_v61, 1 }
 0x117   : > { %v947_v14 = vadd.f32 %v946_v41, %v834_v49  ;;  %v456_v49 = vrot.slane %v217_v6, 2  ;;  %v658_v41 = vld [vmem:[%s3403_s1 + $0x390] sm:$0xff] }
 0x118   : > { %v836_v51 = vpop.f32.mrf.mxu1  ;;  %v1059_v52 = vpop.f32.mrf.mxu3  ;;  %1492 = vmatpush.msra.mxu3 %v658_v41  ;;  %v626_v6 = vld [vmem:[%s3403_s1 + $0x290] sm:$0xff] }
 0x119   : > { %v1060_v57 = vadd.f32 %v1059_v52, %v947_v14  ;;  %1219 = vmatmul.f32.gmra.mxu0 %v2920_v22  ;;  %v837_v21 = vadd.f32 %v836_v51, %v2761_v18  ;;  %v2947_v52 = vsel %vm284_vm0, %v345_v55, %v346_v34  ;;  %v2954_v51 = vsel %vm397_vm1, %v454_v63, %v456_v49  ;;  %v674_v49 = vld [vmem:[%s3403_s1 + $0x410] sm:$0xff] }
 0x11a   : > { %3476 = vst [vmem:[#allocation32_spill] sm:$0xff] %v2947_v52  ;;  %1266 = vmatpush.msra.mxu1 %v626_v6  ;;  %v458_v55 = vrot.slane %v2927_v61, 2  ;;  %1605 = vmatpush.msra.mxu0 %v674_v49 }
 0x11b   : > { %v2934_v37 = vadd.f32 %v1172_v31, %v1060_v57  ;;  %883 = vmatmul.f32.gmra.mxu1 %v2898_v30  ;;  %996 = vmatmul.f32.gmra.mxu2 %v2923_v5 }
 0x11d   : > { %3475 = vst [vmem:[#allocation31_spill] sm:$0xff] %v2934_v37  ;;  %1109 = vmatmul.f32.gmra.mxu3 %v2927_v61  ;;  %v220_v37 = vld [vmem:[%s2120_s22 + $0x130] sm:$0x3] }
 0x11e   : > { %v949_v31 = vpop.f32.mrf.mxu2  ;;  %v1175_v14 = vpop.f32.mrf.mxu0  ;;  %v348_v5 = vrot.slane %v220_v37, 1 }
 0x11f   : > { %v950_v57 = vadd.f32 %v949_v31, %v837_v21  ;;  %v459_v21 = vrot.slane %v2931_v4, 2 }
 0x120   : > { %v839_v36 = vpop.f32.mrf.mxu1  ;;  %v1062_v18 = vpop.f32.mrf.mxu3  ;;  %v2969_v31 = vsel %vm284_vm0, %v346_v34, %v348_v5 }
 0x121   : > { %v1063_v1 = vadd.f32 %v1062_v18, %v950_v57  ;;  %1222 = vmatmul.f32.gmra.mxu0 %v2947_v52  ;;  %v840_v63 = vadd.f32 %v839_v36, %v2788_v24  ;;  %v2972_v18 = vsel %vm397_vm1, %v458_v55, %v459_v21  ;;  %v2976_v24 = vld [vmem:[%s2120_s22 + $0x138] sm:$0xff]  ;;  %v641_v55 = vld [vmem:[%s3403_s1 + $0x308] sm:$0xff] }
 0x122   : > { %3478 = vst [vmem:[#allocation34_spill] sm:$0xff] %v2972_v18  ;;  %v350_v36 = vrot.slane %v2976_v24, 1  ;;  %1380 = vmatpush.msra.mxu2 %v641_v55 }
 0x123   : > { %v2957_v30 = vadd.f32 %v1175_v14, %v1063_v1  ;;  %886 = vmatmul.f32.gmra.mxu1 %v2920_v22  ;;  %999 = vmatmul.f32.gmra.mxu2 %v2954_v51  ;;  %3479 = vst [vmem:[#allocation35_spill] sm:$0xff] %v2976_v24 }
 0x125   : > { %3477 = vst [vmem:[#allocation33_spill] sm:$0xff] %v2957_v30  ;;  %1112 = vmatmul.f32.gmra.mxu3 %v2931_v4  ;;  %v2980_v4 = vld [vmem:[%s2120_s22 + $0x140] sm:$0xff] }
 0x126   : > { %v952_v1 = vpop.f32.mrf.mxu2  ;;  %v1178_v41 = vpop.f32.mrf.mxu0  ;;  %3480 = vst [vmem:[#allocation36_spill] sm:$0xff] %v2980_v4  ;;  %v351_v5 = vrot.slane %v2980_v4, 1 }
 0x127   : > { %v953_v14 = vadd.f32 %v952_v1, %v840_v63  ;;  %v461_v63 = vrot.slane %v220_v37, 2  ;;  %v657_v1 = vld [vmem:[%s3403_s1 + $0x388] sm:$0xff] }
 0x128   : > { %v842_v57 = vpop.f32.mrf.mxu1  ;;  %v1065_v6 = vpop.f32.mrf.mxu3  ;;  %1493 = vmatpush.msra.mxu3 %v657_v1  ;;  %v625_v37 = vld [vmem:[%s3403_s1 + $0x288] sm:$0xff] }
 0x129   : > { %v1066_v30 = vadd.f32 %v1065_v6, %v953_v14  ;;  %1225 = vmatmul.f32.gmra.mxu0 %v2969_v31  ;;  %v843_v49 = vadd.f32 %v842_v57, %v2583_v27  ;;  %v2996_v14 = vsel %vm284_vm0, %v350_v36, %v351_v5  ;;  %v3003_v57 = vsel %vm397_vm1, %v459_v21, %v461_v63  ;;  %v673_v63 = vld [vmem:[%s3403_s1 + $0x408] sm:$0xff] }
 0x12a   : > { %3482 = vst [vmem:[#allocation38_spill] sm:$0xff] %v2996_v14  ;;  %1267 = vmatpush.msra.mxu1 %v625_v37  ;;  %v463_v36 = vrot.slane %v2976_v24, 2  ;;  %1606 = vmatpush.msra.mxu0 %v673_v63 }
 0x12b   : > { %v2983_v34 = vadd.f32 %v1178_v41, %v1066_v30  ;;  %889 = vmatmul.f32.gmra.mxu1 %v2947_v52  ;;  %1002 = vmatmul.f32.gmra.mxu2 %v2972_v18 }
 0x12d   : > { %3481 = vst [vmem:[#allocation37_spill] sm:$0xff] %v2983_v34  ;;  %1115 = vmatmul.f32.gmra.mxu3 %v2976_v24  ;;  %v223_v34 = vld [vmem:[%s2120_s22 + $0x148] sm:$0x3] }
 0x12e   : > { %v955_v30 = vpop.f32.mrf.mxu2  ;;  %v1181_v41 = vpop.f32.mrf.mxu0  ;;  %v353_v52 = vrot.slane %v223_v34, 1 }
 0x12f   : > { %v956_v6 = vadd.f32 %v955_v30, %v843_v49  ;;  %v464_v49 = vrot.slane %v2980_v4, 2 }
 0x130   : > { %v845_v55 = vpop.f32.mrf.mxu1  ;;  %v1068_v27 = vpop.f32.mrf.mxu3  ;;  %v3018_v30 = vsel %vm284_vm0, %v351_v5, %v353_v52 }
 0x131   : > { %v1069_v18 = vadd.f32 %v1068_v27, %v956_v6  ;;  %1228 = vmatmul.f32.gmra.mxu0 %v2996_v14  ;;  %v846_v21 = vadd.f32 %v845_v55, %v2611_v44  ;;  %3484 = vst [vmem:[#allocation40_spill] sm:$0xff] %v3018_v30  ;;  %v3021_v27 = vsel %vm397_vm1, %v463_v36, %v464_v49  ;;  %v3025_v44 = vld [vmem:[%s2120_s22 + $0x150] sm:$0xff]  ;;  %v640_v36 = vld [vmem:[%s3403_s1 + $0x300] sm:$0xff] }
 0x132   : > { %3485 = vst [vmem:[#allocation41_spill] sm:$0xff] %v3021_v27  ;;  %v355_v55 = vrot.slane %v3025_v44, 1  ;;  %1381 = vmatpush.msra.mxu2 %v640_v36 }
 0x133   : > { %v3006_v61 = vadd.f32 %v1181_v41, %v1069_v18  ;;  %892 = vmatmul.f32.gmra.mxu1 %v2969_v31  ;;  %1005 = vmatmul.f32.gmra.mxu2 %v3003_v57  ;;  %3486 = vst [vmem:[#allocation42_spill] sm:$0xff] %v3025_v44 }
 0x135   : > { %3483 = vst [vmem:[#allocation39_spill] sm:$0xff] %v3006_v61  ;;  %1118 = vmatmul.f32.gmra.mxu3 %v2980_v4  ;;  %v3029_v4 = vld [vmem:[%s2120_s22 + $0x158] sm:$0xff] }
 0x136   : > { %v958_v18 = vpop.f32.mrf.mxu2  ;;  %v1184_v1 = vpop.f32.mrf.mxu0  ;;  %3487 = vst [vmem:[#allocation43_spill] sm:$0xff] %v3029_v4  ;;  %v356_v52 = vrot.slane %v3029_v4, 1 }
 0x137   : > { %v959_v41 = vadd.f32 %v958_v18, %v846_v21  ;;  %v466_v21 = vrot.slane %v223_v34, 2  ;;  %v656_v18 = vld [vmem:[%s3403_s1 + $0x380] sm:$0xff] }
 0x138   : > { %v848_v6 = vpop.f32.mrf.mxu1  ;;  %v1071_v37 = vpop.f32.mrf.mxu3  ;;  %1494 = vmatpush.msra.mxu3 %v656_v18  ;;  %v624_v34 = vld [vmem:[%s3403_s1 + $0x280] sm:$0xff] }
 0x139   : > { %v1072_v61 = vadd.f32 %v1071_v37, %v959_v41  ;;  %1231 = vmatmul.f32.gmra.mxu0 %v3018_v30  ;;  %v849_v63 = vadd.f32 %v848_v6, %v2634_v2  ;;  %v3045_v41 = vsel %vm284_vm0, %v355_v55, %v356_v52  ;;  %v3052_v6 = vsel %vm397_vm1, %v464_v49, %v466_v21  ;;  %v672_v21 = vld [vmem:[%s3403_s1 + $0x400] sm:$0xff] }
 0x13a   : > { %3489 = vst [vmem:[#allocation45_spill] sm:$0xff] %v3052_v6  ;;  %1268 = vmatpush.msra.mxu1 %v624_v34  ;;  %v468_v55 = vrot.slane %v3025_v44, 2  ;;  %1607 = vmatpush.msra.mxu0 %v672_v21 }
 0x13b   : > { %v3032_v5 = vadd.f32 %v1184_v1, %v1072_v61  ;;  %895 = vmatmul.f32.gmra.mxu1 %v2996_v14  ;;  %1008 = vmatmul.f32.gmra.mxu2 %v3021_v27 }
 0x13d   : > { %3488 = vst [vmem:[#allocation44_spill] sm:$0xff] %v3032_v5  ;;  %1121 = vmatmul.f32.gmra.mxu3 %v3025_v44  ;;  %v226_v5 = vld [vmem:[%s2120_s22 + $0x160] sm:$0x3]  ;;  %v229_v44 = vld [vmem:[%s2120_s22 + $0x178] sm:$0x3] }
 0x13e   : > { %v961_v61 = vpop.f32.mrf.mxu2  ;;  %v1187_v1 = vpop.f32.mrf.mxu0  ;;  %v358_v14 = vrot.slane %v226_v5, 1 }
 0x13f   : > { %v962_v37 = vadd.f32 %v961_v61, %v849_v63  ;;  %v469_v63 = vrot.slane %v3029_v4, 2 }
 0x140   : > { %v851_v36 = vpop.f32.mrf.mxu1  ;;  %v1074_v2 = vpop.f32.mrf.mxu3  ;;  %v3067_v61 = vsel %vm284_vm0, %v356_v52, %v358_v14 }
 0x141   : > { %v1075_v27 = vadd.f32 %v1074_v2, %v962_v37  ;;  %1234 = vmatmul.f32.gmra.mxu0 %v3045_v41  ;;  %v852_v49 = vadd.f32 %v851_v36, %v2664_v19  ;;  %v3070_v2 = vsel %vm397_vm1, %v468_v55, %v469_v63  ;;  %v3074_v19 = vld [vmem:[%s2120_s22 + $0x168] sm:$0xff]  ;;  %v471_v55 = vrot.slane %v226_v5, 2 }
 0x142   : > { %3491 = vst [vmem:[#allocation47_spill] sm:$0xff] %v3074_v19  ;;  %v360_v36 = vrot.slane %v3074_v19, 1  ;;  %v363_v5 = vrot.slane %v229_v44, 1 }
 0x143   : > { %v3055_v24 = vadd.f32 %v1187_v1, %v1075_v27  ;;  %898 = vmatmul.f32.gmra.mxu1 %v3018_v30  ;;  %1011 = vmatmul.f32.gmra.mxu2 %v3052_v6 }
 0x145   : > { %3490 = vst [vmem:[#allocation46_spill] sm:$0xff] %v3055_v24  ;;  %1124 = vmatmul.f32.gmra.mxu3 %v3029_v4  ;;  %v3078_v4 = vld [vmem:[%s2120_s22 + $0x170] sm:$0xff] }
 0x146   : > { %v964_v27 = vpop.f32.mrf.mxu2  ;;  %v1190_v18 = vpop.f32.mrf.mxu0  ;;  %3492 = vst [vmem:[#allocation48_spill] sm:$0xff] %v3078_v4  ;;  %v361_v14 = vrot.slane %v3078_v4, 1 }
 0x147   : > { %v965_v1 = vadd.f32 %v964_v27, %v852_v49 }
 0x148   : > { %v854_v37 = vpop.f32.mrf.mxu1  ;;  %v1077_v34 = vpop.f32.mrf.mxu3 }
 0x149   : > { %v1078_v24 = vadd.f32 %v1077_v34, %v965_v1  ;;  %1237 = vmatmul.f32.gmra.mxu0 %v3067_v61  ;;  %v855_v49 = vadd.f32 %v854_v37, %v2687_v39  ;;  %v3088_v1 = vsel %vm284_vm0, %v360_v36, %v361_v14  ;;  %v473_v37 = vrot.slane %v3074_v19, 2 }
 0x14a   : > { %v474_v36 = vrot.slane %v3078_v4, 2 }
 0x14b   : > { %v3081_v52 = vadd.f32 %v1190_v18, %v1078_v24  ;;  %901 = vmatmul.f32.gmra.mxu1 %v3045_v41  ;;  %1014 = vmatmul.f32.gmra.mxu2 %v3070_v2  ;;  %v3092_v24 = vsel %vm397_vm1, %v469_v63, %v471_v55  ;;  %v3104_v55 = vsel %vm284_vm0, %v361_v14, %v363_v5  ;;  %v476_v5 = vrot.slane %v229_v44, 2 }
 0x14c   : > { %3494 = vst [vmem:[#allocation50_spill] sm:$0xff] %v3092_v24 }
 0x14d   : > { %3493 = vst [vmem:[#allocation49_spill] sm:$0xff] %v3081_v52  ;;  %1127 = vmatmul.f32.gmra.mxu3 %v3074_v19  ;;  %v3113_v19 = vld [vmem:[%s2120_s22 + $0x180] sm:$0xff] }
 0x14e   : > { %v967_v21 = vpop.f32.mrf.mxu2  ;;  %v1193_v27 = vpop.f32.mrf.mxu0 }
 0x14f   : > { %v968_v34 = vadd.f32 %v967_v21, %v855_v49 }
 0x150   : > { %v857_v6 = vpop.f32.mrf.mxu1  ;;  %v1080_v30 = vpop.f32.mrf.mxu3 }
 0x151   : > { %v1081_v18 = vadd.f32 %v1080_v30, %v968_v34  ;;  %1240 = vmatmul.f32.gmra.mxu0 %v3088_v1  ;;  %v858_v49 = vadd.f32 %v857_v6, %v2717_v12  ;;  %v513_v12 = vrot.slane %v3113_v19, 1 }
 0x153   : > { %v3095_v39 = vadd.f32 %v1193_v27, %v1081_v18  ;;  %904 = vmatmul.f32.gmra.mxu1 %v3067_v61  ;;  %1017 = vmatmul.f32.gmra.mxu2 %v3092_v24  ;;  %v3107_v27 = vld [vmem:[%s2120_s22 + $0x188] sm:$0xff] }
 0x154   : > { %v514_v6 = vrot.slane %v3107_v27, 1 }
 0x155   : > { %3495 = vst [vmem:[#allocation51_spill] sm:$0xff] %v3095_v39  ;;  %1130 = vmatmul.f32.gmra.mxu3 %v3078_v4  ;;  %v3110_v39 = vsel %vm397_vm1, %v473_v37, %v474_v36  ;;  %v3128_v4 = vld [vmem:[%s2120_s22 + $0x190] sm:$0x3] }
 0x156   : > { %v970_v63 = vpop.f32.mrf.mxu2  ;;  %v1196_v30 = vpop.f32.mrf.mxu0 }
 0x157   : > { %v971_v21 = vadd.f32 %v970_v63, %v858_v49 }
 0x158   : > { %v860_v34 = vpop.f32.mrf.mxu1  ;;  %v1083_v18 = vpop.f32.mrf.mxu3 }
 0x159   : > { %v1084_v52 = vadd.f32 %v1083_v18, %v971_v21  ;;  %1243 = vmatmul.f32.gmra.mxu0 %v3104_v55  ;;  %v861_v37 = vadd.f32 %v860_v34, %v2740_v59  ;;  %v3125_v21 = vsel %vm284_vm0, %v513_v12, %v514_v6  ;;  %v516_v59 = vrot.slane %v3128_v4, 1 }
 0x15b   : > { %v3118_v14 = vadd.f32 %v1196_v30, %v1084_v52  ;;  %907 = vmatmul.f32.gmra.mxu1 %v3088_v1  ;;  %1020 = vmatmul.f32.gmra.mxu2 %v3110_v39  ;;  %v3131_v30 = vsel %vm397_vm1, %v474_v36, %v476_v5  ;;  %v3142_v36 = vsel %vm284_vm0, %v514_v6, %v516_v59 }
 0x15d   : > { %3496 = vst [vmem:[#allocation52_spill] sm:$0xff] %v3118_v14  ;;  %1133 = vmatmul.f32.gmra.mxu3 %v3113_v19 }
 0x15e   : > { %v973_v49 = vpop.f32.mrf.mxu2  ;;  %v1199_v63 = vpop.f32.mrf.mxu0 }
 0x15f   : > { %v974_v18 = vadd.f32 %v973_v49, %v861_v37 }
 0x160   : > { %v863_v24 = vpop.f32.mrf.mxu1  ;;  %v1086_v52 = vpop.f32.mrf.mxu3 }
 0x161   : > { %v1087_v14 = vadd.f32 %v1086_v52, %v974_v18  ;;  %1246 = vmatmul.f32.gmra.mxu0 %v3125_v21  ;;  %v864_v34 = vadd.f32 %v863_v24, %v2770_v50 }
 0x163   : > { %v3135_v44 = vadd.f32 %v1199_v63, %v1087_v14  ;;  %910 = vmatmul.f32.gmra.mxu1 %v3104_v55  ;;  %1023 = vmatmul.f32.gmra.mxu2 %v3131_v30  ;;  %v2009_v63 = vld [vmem:[%s2120_s22 + $0x30] sm:$0xff] }
 0x165   : > { %3497 = vst [vmem:[#allocation53_spill] sm:$0xff] %v3135_v44  ;;  %1136 = vmatmul.f32.gmra.mxu3 %v3107_v27 }
 0x166   : > { %v976_v12 = vpop.f32.mrf.mxu2  ;;  %v1202_v37 = vpop.f32.mrf.mxu0 }
 0x167   : > { %v977_v5 = vadd.f32 %v976_v12, %v864_v34 }
 0x168   : > { %v866_v49 = vpop.f32.mrf.mxu1  ;;  %v1089_v18 = vpop.f32.mrf.mxu3 }
 0x169   : > { %v1090_v52 = vadd.f32 %v1089_v18, %v977_v5  ;;  %1249 = vmatmul.f32.gmra.mxu0 %v3142_v36  ;;  %v867_v50 = vadd.f32 %v866_v49, %v2600_v10 }
 0x16b   : > { %v3145_v14 = vadd.f32 %v1202_v37, %v1090_v52  ;;  %1269 = vmatmul.f32.vlgmr.msra.gmra.mxu1 %v2476_v33  ;;  %1382 = vmatmul.f32.vlgmr.msra.gmra.mxu2 %v2009_v63  ;;  %v2010_v33 = vld [vmem:[%s2120_s22 + $0x38] sm:$0xff] }
 0x16d   : > { %1495 = vmatmul.f32.vlgmr.msra.gmra.mxu3 %v2492_v40 }
 0x16e   : > { %v979_v24 = vpop.f32.mrf.mxu2  ;;  %v1205_v6 = vpop.f32.mrf.mxu0 }
 0x16f   : > { %v980_v59 = vadd.f32 %v979_v24, %v867_v50 }
 0x170   : > { %v869_v34 = vpop.f32.mrf.mxu1  ;;  %v1092_v12 = vpop.f32.mrf.mxu3 }
 0x171   : > { %v1093_v44 = vadd.f32 %v1092_v12, %v980_v59  ;;  %1608 = vmatmul.f32.vlgmr.msra.gmra.mxu0 %v2510_v54  ;;  %v870_v37 = vadd.f32 %v869_v34, %v2627_v56 }
 0x173   : > { %v3152_v5 = vadd.f32 %v1205_v6, %v1093_v44  ;;  %1272 = vmatmul.f32.gmra.mxu1 %v2496_v43  ;;  %1385 = vmatmul.f32.gmra.mxu2 %v2010_v33  ;;  %v2011_v43 = vld [vmem:[%s2120_s22 + $0x48] sm:$0xff] }
 0x175   : > { %1498 = vmatmul.f32.gmra.mxu3 %v2507_v53 }
 0x176   : > { %v982_v40 = vpop.f32.mrf.mxu2  ;;  %v1208_v10 = vpop.f32.mrf.mxu0 }
 0x177   : > { %v983_v49 = vadd.f32 %v982_v40, %v870_v37 }
 0x178   : > { %v872_v18 = vpop.f32.mrf.mxu1  ;;  %v1095_v52 = vpop.f32.mrf.mxu3 }
 0x179   : > { %v1096_v63 = vadd.f32 %v1095_v52, %v983_v49  ;;  %1611 = vmatmul.f32.gmra.mxu0 %v2532_v3  ;;  %v873_v44 = vadd.f32 %v872_v18, %v2653_v9 }
 0x17b   : > { %v3159_v50 = vadd.f32 %v1208_v10, %v1096_v63  ;;  %1275 = vmatmul.f32.gmra.mxu1 %v2510_v54  ;;  %1388 = vmatmul.f32.gmra.mxu2 %v2011_v43  ;;  %v2012_v54 = vld [vmem:[%s2120_s22 + $0x50] sm:$0xff] }
 0x17d   : > { %1501 = vmatmul.f32.gmra.mxu3 %v2525_v0 }
 0x17e   : > { %v985_v53 = vpop.f32.mrf.mxu2  ;;  %v1211_v56 = vpop.f32.mrf.mxu0 }
 0x17f   : > { %v986_v24 = vadd.f32 %v985_v53, %v873_v44 }
 0x180   : > { %v875_v6 = vpop.f32.mrf.mxu1  ;;  %v1098_v59 = vpop.f32.mrf.mxu3 }
 0x181   : > { %v1099_v34 = vadd.f32 %v1098_v59, %v986_v24  ;;  %1614 = vmatmul.f32.gmra.mxu0 %v2547_v42  ;;  %v876_v33 = vadd.f32 %v875_v6, %v2680_v32 }
 0x183   : > { %v3166_v12 = vadd.f32 %v1211_v56, %v1099_v34  ;;  %1278 = vmatmul.f32.gmra.mxu1 %v2532_v3  ;;  %1391 = vmatmul.f32.gmra.mxu2 %v2012_v54  ;;  %v2013_v3 = vld [vmem:[%s2120_s22 + $0x60] sm:$0xff] }
 0x185   : > { %1504 = vmatmul.f32.gmra.mxu3 %v2544_v26 }
 0x186   : > { %v988_v0 = vpop.f32.mrf.mxu2  ;;  %v1214_v9 = vpop.f32.mrf.mxu0 }
 0x187   : > { %v989_v37 = vadd.f32 %v988_v0, %v876_v33 }
 0x188   : > { %v878_v40 = vpop.f32.mrf.mxu1  ;;  %v1101_v10 = vpop.f32.mrf.mxu3 }
 0x189   : > { %v1102_v49 = vadd.f32 %v1101_v10, %v989_v37  ;;  %1617 = vmatmul.f32.gmra.mxu0 %v2569_v20  ;;  %v879_v52 = vadd.f32 %v878_v40, %v2706_v62 }
 0x18b   : > { %v3173_v18 = vadd.f32 %v1214_v9, %v1102_v49  ;;  %1281 = vmatmul.f32.gmra.mxu1 %v2547_v42  ;;  %1394 = vmatmul.f32.gmra.mxu2 %v2013_v3  ;;  %v2014_v42 = vld [vmem:[%s2120_s22 + $0x68] sm:$0xff] }
 0x18d   : > { %1507 = vmatmul.f32.gmra.mxu3 %v2562_v13 }
 0x18e   : > { %v991_v26 = vpop.f32.mrf.mxu2  ;;  %v1217_v32 = vpop.f32.mrf.mxu0 }
 0x18f   : > { %v992_v63 = vadd.f32 %v991_v26, %v879_v52 }
 0x190   : > { %v881_v43 = vpop.f32.mrf.mxu1  ;;  %v1104_v44 = vpop.f32.mrf.mxu3 }
 0x191   : > { %v1105_v53 = vadd.f32 %v1104_v44, %v992_v63  ;;  %1620 = vmatmul.f32.gmra.mxu0 %v2586_v28  ;;  %v882_v24 = vadd.f32 %v881_v43, %v2733_v16  ;;  %v3499_v44 = vld [vmem:[#allocation7_spill] sm:$0xff] }
 0x193   : > { %v3180_v56 = vadd.f32 %v1217_v32, %v1105_v53  ;;  %1284 = vmatmul.f32.gmra.mxu1 %v2569_v20  ;;  %1397 = vmatmul.f32.gmra.mxu2 %v2014_v42  ;;  %v2015_v20 = vld [vmem:[%s2120_s22 + $0x78] sm:$0xff]  ;;  %v3500_v42 = vld [vmem:[#allocation2_spill] sm:$0xff] }
 0x195   : > { %1510 = vmatmul.f32.gmra.mxu3 %v2581_v25 }
 0x196   : > { %v994_v13 = vpop.f32.mrf.mxu2  ;;  %v1220_v62 = vpop.f32.mrf.mxu0 }
 0x197   : > { %v995_v6 = vadd.f32 %v994_v13, %v882_v24 }
 0x198   : > { %v884_v59 = vpop.f32.mrf.mxu1  ;;  %v1107_v34 = vpop.f32.mrf.mxu3 }
 0x199   : > { %v1108_v54 = vadd.f32 %v1107_v34, %v995_v6  ;;  %1623 = vmatmul.f32.gmra.mxu0 %v2616_v48  ;;  %v885_v0 = vadd.f32 %v884_v59, %v2759_v29  ;;  %v3498_v29 = vld [vmem:[#allocation3_spill] sm:$0xff] }
 0x19b   : > { %v3187_v33 = vadd.f32 %v1220_v62, %v1108_v54  ;;  %1287 = vmatmul.f32.gmra.mxu1 %v2586_v28  ;;  %1400 = vmatmul.f32.gmra.mxu2 %v2015_v20  ;;  %v2016_v28 = vld [vmem:[%s2120_s22 + $0x80] sm:$0xff] }
 0x19c   : > { %v3502_v20 = vld [vmem:[#allocation10_spill] sm:$0xff] }
 0x19d   : > { %1513 = vmatmul.f32.gmra.mxu3 %v2605_v38 }
 0x19e   : > { %v997_v25 = vpop.f32.mrf.mxu2  ;;  %v1223_v16 = vpop.f32.mrf.mxu0 }
 0x19f   : > { %v998_v9 = vadd.f32 %v997_v25, %v885_v0  ;;  %v3503_v25 = vld [vmem:[#allocation4_spill] sm:$0xff] }
 0x1a0   : > { %v887_v37 = vpop.f32.mrf.mxu1  ;;  %v1110_v40 = vpop.f32.mrf.mxu3 }
 0x1a1   : > { %v1111_v10 = vadd.f32 %v1110_v40, %v998_v9  ;;  %1626 = vmatmul.f32.gmra.mxu0 %v2639_v46  ;;  %v888_v3 = vadd.f32 %v887_v37, %v2786_v35  ;;  %v3501_v35 = vld [vmem:[#allocation5_spill] sm:$0xff]  ;;  %v3504_v9 = vld [vmem:[#allocation8_spill] sm:$0xff] }
 0x1a3   : > { %v3194_v49 = vadd.f32 %v1223_v16, %v1111_v10  ;;  %1290 = vmatmul.f32.gmra.mxu1 %v2616_v48  ;;  %1403 = vmatmul.f32.gmra.mxu2 %v2016_v28  ;;  %v2017_v48 = vld [vmem:[%s2120_s22 + $0x90] sm:$0xff] }
 0x1a5   : > { %1516 = vmatmul.f32.gmra.mxu3 %v3498_v29 }
 0x1a6   : > { %v1000_v38 = vpop.f32.mrf.mxu2  ;;  %v1226_v52 = vpop.f32.mrf.mxu0 }
 0x1a7   : > { %v1001_v26 = vadd.f32 %v1000_v38, %v888_v3  ;;  %v3505_v38 = vld [vmem:[#allocation13_spill] sm:$0xff] }
 0x1a8   : > { %v890_v32 = vpop.f32.mrf.mxu1  ;;  %v1113_v63 = vpop.f32.mrf.mxu3 }
 0x1a9   : > { %v1114_v43 = vadd.f32 %v1113_v63, %v1001_v26  ;;  %1629 = vmatmul.f32.gmra.mxu0 %v3499_v44  ;;  %v891_v24 = vadd.f32 %v890_v32, %v3500_v42  ;;  %v2019_v26 = vld [vmem:[%s2120_s22 + $0xa8] sm:$0xff]  ;;  %v3506_v32 = vld [vmem:[#allocation6_spill] sm:$0xff] }
 0x1ab   : > { %v3201_v53 = vadd.f32 %v1226_v52, %v1114_v43  ;;  %1293 = vmatmul.f32.gmra.mxu1 %v2639_v46  ;;  %1406 = vmatmul.f32.gmra.mxu2 %v2017_v48  ;;  %v2018_v46 = vld [vmem:[%s2120_s22 + $0x98] sm:$0xff]  ;;  %v3507_v43 = vld [vmem:[#allocation11_spill] sm:$0xff] }
 0x1ad   : > { %1519 = vmatmul.f32.gmra.mxu3 %v3501_v35 }
 0x1ae   : > { %v1003_v13 = vpop.f32.mrf.mxu2  ;;  %v1229_v62 = vpop.f32.mrf.mxu0 }
 0x1af   : > { %v1004_v6 = vadd.f32 %v1003_v13, %v891_v24 }
 0x1b0   : > { %v893_v59 = vpop.f32.mrf.mxu1  ;;  %v1116_v34 = vpop.f32.mrf.mxu3 }
 0x1b1   : > { %v1117_v54 = vadd.f32 %v1116_v34, %v1004_v6  ;;  %1632 = vmatmul.f32.gmra.mxu0 %v3502_v20  ;;  %v894_v16 = vadd.f32 %v893_v59, %v3503_v25  ;;  %v2020_v59 = vld [vmem:[%s2120_s22 + $0xb0] sm:$0xff]  ;;  %v3509_v34 = vld [vmem:[#allocation9_spill] sm:$0xff] }
 0x1b3   : > { %v3208_v0 = vadd.f32 %v1229_v62, %v1117_v54  ;;  %1296 = vmatmul.f32.gmra.mxu1 %v3499_v44  ;;  %1409 = vmatmul.f32.gmra.mxu2 %v2018_v46  ;;  %v3508_v62 = vld [vmem:[#allocation16_spill] sm:$0xff] }
 0x1b5   : > { %1522 = vmatmul.f32.gmra.mxu3 %v3504_v9 }
 0x1b6   : > { %v1006_v37 = vpop.f32.mrf.mxu2  ;;  %v1232_v40 = vpop.f32.mrf.mxu0 }
 0x1b7   : > { %v1007_v10 = vadd.f32 %v1006_v37, %v894_v16 }
 0x1b8   : > { %v896_v28 = vpop.f32.mrf.mxu1  ;;  %v1119_v3 = vpop.f32.mrf.mxu3 }
 0x1b9   : > { %v1120_v29 = vadd.f32 %v1119_v3, %v1007_v10  ;;  %1635 = vmatmul.f32.gmra.mxu0 %v3505_v38  ;;  %v897_v63 = vadd.f32 %v896_v28, %v3506_v32  ;;  %v3511_v10 = vld [vmem:[#allocation19_spill] sm:$0xff]  ;;  %v2021_v3 = vld [vmem:[%s2120_s22 + $0xc0] sm:$0xff] }
 0x1bb   : > { %v3215_v52 = vadd.f32 %v1232_v40, %v1120_v29  ;;  %1299 = vmatmul.f32.gmra.mxu1 %v3502_v20  ;;  %1412 = vmatmul.f32.gmra.mxu2 %v2019_v26  ;;  %v3510_v20 = vld [vmem:[#allocation14_spill] sm:$0xff]  ;;  %v3512_v29 = vld [vmem:[#allocation12_spill] sm:$0xff]  ;;  %v3513_v26 = vld [vmem:[#allocation17_spill] sm:$0xff] }
 0x1bd   : > { %1525 = vmatmul.f32.gmra.mxu3 %v3507_v43 }
 0x1be   : > { %v1009_v44 = vpop.f32.mrf.mxu2  ;;  %v1235_v48 = vpop.f32.mrf.mxu0 }
 0x1bf   : > { %v1010_v42 = vadd.f32 %v1009_v44, %v897_v63 }
 0x1c0   : > { %v899_v24 = vpop.f32.mrf.mxu1  ;;  %v1122_v35 = vpop.f32.mrf.mxu3 }
 0x1c1   : > { %v1123_v13 = vadd.f32 %v1122_v35, %v1010_v42  ;;  %1638 = vmatmul.f32.gmra.mxu0 %v3508_v62  ;;  %v900_v54 = vadd.f32 %v899_v24, %v3509_v34  ;;  %v3514_v24 = vld [vmem:[#allocation21_spill] sm:$0xff] }
 0x1c3   : > { %v3222_v6 = vadd.f32 %v1235_v48, %v1123_v13  ;;  %1302 = vmatmul.f32.gmra.mxu1 %v3505_v38  ;;  %1415 = vmatmul.f32.gmra.mxu2 %v2020_v59  ;;  %v2022_v13 = vld [vmem:[%s2120_s22 + $0xc8] sm:$0xff] }
 0x1c5   : > { %1528 = vmatmul.f32.gmra.mxu3 %v3510_v20 }
 0x1c6   : > { %v1012_v46 = vpop.f32.mrf.mxu2  ;;  %v1238_v25 = vpop.f32.mrf.mxu0 }
 0x1c7   : > { %v1013_v16 = vadd.f32 %v1012_v46, %v900_v54 }
 0x1c8   : > { %v902_v9 = vpop.f32.mrf.mxu1  ;;  %v1125_v37 = vpop.f32.mrf.mxu3 }
 0x1c9   : > { %v1126_v40 = vadd.f32 %v1125_v37, %v1013_v16  ;;  %1641 = vmatmul.f32.gmra.mxu0 %v3511_v10  ;;  %v903_v38 = vadd.f32 %v902_v9, %v3512_v29  ;;  %v2023_v37 = vld [vmem:[%s2120_s22 + $0xd8] sm:$0xff] }
 0x1cb   : > { %v3229_v28 = vadd.f32 %v1238_v25, %v1126_v40  ;;  %1305 = vmatmul.f32.gmra.mxu1 %v3508_v62  ;;  %1418 = vmatmul.f32.gmra.mxu2 %v2021_v3  ;;  %v3515_v62 = vld [vmem:[#allocation15_spill] sm:$0xff]  ;;  %v3516_v40 = vld [vmem:[#allocation18_spill] sm:$0xff] }
 0x1cd   : > { %1531 = vmatmul.f32.gmra.mxu3 %v3513_v26 }
 0x1ce   : > { %v1015_v32 = vpop.f32.mrf.mxu2  ;;  %v1241_v63 = vpop.f32.mrf.mxu0 }
 0x1cf   : > { %v1016_v43 = vadd.f32 %v1015_v32, %v903_v38 }
 0x1d0   : > { %v905_v44 = vpop.f32.mrf.mxu1  ;;  %v1128_v48 = vpop.f32.mrf.mxu3 }
 0x1d1   : > { %v1129_v42 = vadd.f32 %v1128_v48, %v1016_v43  ;;  %1644 = vmatmul.f32.gmra.mxu0 %v3514_v24  ;;  %v906_v59 = vadd.f32 %v905_v44, %v3515_v62  ;;  %v2024_v43 = vld [vmem:[%s2120_s22 + $0xe0] sm:$0xff]  ;;  %v3517_v44 = vld [vmem:[#allocation20_spill] sm:$0xff] }
 0x1d3   : > { %v3236_v35 = vadd.f32 %v1241_v63, %v1129_v42  ;;  %1308 = vmatmul.f32.gmra.mxu1 %v3511_v10  ;;  %1421 = vmatmul.f32.gmra.mxu2 %v2022_v13 }
 0x1d5   : > { %1534 = vmatmul.f32.gmra.mxu3 %v2791_v8 }
 0x1d6   : > { %v1018_v34 = vpop.f32.mrf.mxu2  ;;  %v1244_v54 = vpop.f32.mrf.mxu0 }
 0x1d7   : > { %v1019_v20 = vadd.f32 %v1018_v34, %v906_v59 }
 0x1d8   : > { %v908_v46 = vpop.f32.mrf.mxu1  ;;  %v1131_v25 = vpop.f32.mrf.mxu3 }
 0x1d9   : > { %v1132_v16 = vadd.f32 %v1131_v25, %v1019_v20  ;;  %1647 = vmatmul.f32.gmra.mxu0 %v2819_v23  ;;  %v909_v10 = vadd.f32 %v908_v46, %v3516_v40 }
 0x1db   : > { %v3243_v9 = vadd.f32 %v1244_v54, %v1132_v16  ;;  %1311 = vmatmul.f32.gmra.mxu1 %v3514_v24  ;;  %1424 = vmatmul.f32.gmra.mxu2 %v2023_v37  ;;  %v3518_v54 = vld [vmem:[#allocation22_spill] sm:$0xff] }
 0x1dd   : > { %1537 = vmatmul.f32.gmra.mxu3 %v2812_v7 }
 0x1de   : > { %v1021_v8 = vpop.f32.mrf.mxu2  ;;  %v1247_v3 = vpop.f32.mrf.mxu0 }
 0x1df   : > { %v1022_v29 = vadd.f32 %v1021_v8, %v909_v10  ;;  %v3519_v10 = vld [vmem:[#allocation23_spill] sm:$0xff] }
 0x1e0   : > { %v911_v38 = vpop.f32.mrf.mxu1  ;;  %v1134_v26 = vpop.f32.mrf.mxu3 }
 0x1e1   : > { %v1135_v32 = vadd.f32 %v1134_v26, %v1022_v29  ;;  %1650 = vmatmul.f32.gmra.mxu0 %v2837_v47  ;;  %v912_v48 = vadd.f32 %v911_v38, %v3517_v44 }
 0x1e3   : > { %v3250_v63 = vadd.f32 %v1247_v3, %v1135_v32  ;;  %1314 = vmatmul.f32.gmra.mxu1 %v2819_v23  ;;  %1427 = vmatmul.f32.gmra.mxu2 %v2024_v43  ;;  %v2025_v23 = vld [vmem:[%s2120_s22 + $0xf0] sm:$0xff] }
 0x1e5   : > { %1540 = vmatmul.f32.gmra.mxu3 %v2834_v45 }
 0x1e6   : > { %v1024_v7 = vpop.f32.mrf.mxu2  ;;  %v1250_v42 = vpop.f32.mrf.mxu0 }
 0x1e7   : > { %v1025_v24 = vadd.f32 %v1024_v7, %v912_v48  ;;  %v3520_v7 = vld [vmem:[#allocation24_spill] sm:$0xff] }
 0x1e8   : > { %v1137_v13 = vpop.f32.mrf.mxu3  ;;  %v1270_v62 = vpop.f32.mrf.mxu1 }
 0x1e9   : > { %v1138_v59 = vadd.f32 %v1137_v13, %v1025_v24  ;;  %1653 = vmatmul.f32.gmra.mxu0 %v2862_v60  ;;  %v1271_v20 = vadd.f32 %v1270_v62, %v3518_v54  ;;  %v3521_v13 = vld [vmem:[#allocation26_spill] sm:$0xff] }
 0x1eb   : > { %v3257_v34 = vadd.f32 %v1250_v42, %v1138_v59  ;;  %1317 = vmatmul.f32.gmra.mxu1 %v2837_v47  ;;  %1430 = vmatmul.f32.gmra.mxu2 %v2025_v23 }
 0x1ed   : > { %1543 = vmatmul.f32.gmra.mxu3 %v2855_v58  ;;  %v2026_v58 = vld [vmem:[%s2120_s22 + $0xf8] sm:$0xff] }
 0x1ee   : > { %v1383_v45 = vpop.f32.mrf.mxu2  ;;  %v1609_v46 = vpop.f32.mrf.mxu0 }
 0x1ef   : > { %v1384_v25 = vadd.f32 %v1383_v45, %v1271_v20 }
 0x1f0   : > { %v1273_v16 = vpop.f32.mrf.mxu1  ;;  %v1496_v37 = vpop.f32.mrf.mxu3 }
 0x1f1   : > { %v1497_v40 = vadd.f32 %v1496_v37, %v1384_v25  ;;  %1656 = vmatmul.f32.gmra.mxu0 %v2880_v15  ;;  %v1274_v8 = vadd.f32 %v1273_v16, %v3519_v10  ;;  %v2028_v16 = vld [vmem:[%s2120_s22 + $0x110] sm:$0xff]  ;;  %v3523_v37 = vld [vmem:[#allocation25_spill] sm:$0xff] }
 0x1f3   : > { %v1610_v47 = vadd.f32 %v1609_v46, %v1497_v40  ;;  %1320 = vmatmul.f32.gmra.mxu1 %v2862_v60  ;;  %1433 = vmatmul.f32.gmra.mxu2 %v2026_v58  ;;  %v2027_v60 = vld [vmem:[%s2120_s22 + $0x108] sm:$0xff] }
 0x1f5   : > { %1705 = vst [vmem:[%s3268_s19] sm:$0xff] %v1610_v47  ;;  %1546 = vmatmul.f32.gmra.mxu3 %v2877_v17  ;;  %v1774_v48 = vmul.f32 %v1610_v47, %v1610_v47 }
 0x1f6   : > { %v1386_v3 = vpop.f32.mrf.mxu2  ;;  %v1612_v29 = vpop.f32.mrf.mxu0 }
 0x1f7   : > { %v1387_v38 = vadd.f32 %v1386_v3, %v1274_v8 }
 0x1f8   : > { %v1276_v26 = vpop.f32.mrf.mxu1  ;;  %v1499_v32 = vpop.f32.mrf.mxu3 }
 0x1f9   : > { %v1500_v43 = vadd.f32 %v1499_v32, %v1387_v38  ;;  %1659 = vmatmul.f32.gmra.mxu0 %v2905_v11  ;;  %v1277_v42 = vadd.f32 %v1276_v26, %v3520_v7  ;;  %v3526_v7 = vld [vmem:[#allocation32_spill] sm:$0xff] }
 0x1fb   : > { %v1613_v44 = vadd.f32 %v1612_v29, %v1500_v43  ;;  %1323 = vmatmul.f32.gmra.mxu1 %v2880_v15  ;;  %1436 = vmatmul.f32.gmra.mxu2 %v2027_v60  ;;  %v3522_v15 = vld [vmem:[#allocation28_spill] sm:$0xff]  ;;  %v3524_v43 = vld [vmem:[#allocation29_spill] sm:$0xff] }
 0x1fd   : > { %1706 = vst [vmem:[%s3268_s19 + $0x8] sm:$0xff] %v1613_v44  ;;  %v1737_v24 = vadd.f32 %v1613_v44, %v1610_v47  ;;  %v1775_v17 = vmul.f32 %v1613_v44, %v1613_v44  ;;  %1549 = vmatmul.f32.gmra.mxu3 %v3521_v13  ;;  %v3525_v44 = vld [vmem:[#allocation27_spill] sm:$0xff] }
 0x1fe   : > { %v1389_v62 = vpop.f32.mrf.mxu2  ;;  %v1615_v59 = vpop.f32.mrf.mxu0 }
 0x1ff   : > { %v1806_v23 = vadd.f32 %v1775_v17, %v1774_v48  ;;  %v1390_v54 = vadd.f32 %v1389_v62, %v1277_v42 }
 0x200   : > { %v1279_v20 = vpop.f32.mrf.mxu1  ;;  %v1502_v45 = vpop.f32.mrf.mxu3 }
 0x201   : > { %v1503_v46 = vadd.f32 %v1502_v45, %v1390_v54  ;;  %1662 = vmatmul.f32.gmra.mxu0 %v3522_v15  ;;  %v1280_v40 = vadd.f32 %v1279_v20, %v3523_v37  ;;  %v3527_v54 = vld [vmem:[#allocation34_spill] sm:$0xff] }
 0x202   : > { %v3528_v45 = vld [vmem:[#allocation30_spill] sm:$0xff] }
 0x203   : > { %v1616_v25 = vadd.f32 %v1615_v59, %v1503_v46  ;;  %1326 = vmatmul.f32.gmra.mxu1 %v2905_v11  ;;  %1439 = vmatmul.f32.gmra.mxu2 %v2028_v16  ;;  %v3529_v46 = vld [vmem:[#allocation31_spill] sm:$0xff] }
 0x205   : > { %1707 = vst [vmem:[%s3268_s19 + $0x10] sm:$0xff] %v1616_v25  ;;  %v1738_v47 = vadd.f32 %v1737_v24, %v1616_v25  ;;  %v1776_v58 = vmul.f32 %v1616_v25, %v1616_v25  ;;  %1552 = vmatmul.f32.gmra.mxu3 %v2920_v22 }
 0x206   : > { %v1392_v10 = vpop.f32.mrf.mxu2  ;;  %v1618_v8 = vpop.f32.mrf.mxu0 }
 0x207   : > { %v1807_v3 = vadd.f32 %v1806_v23, %v1776_v58  ;;  %v1393_v29 = vadd.f32 %v1392_v10, %v1280_v40 }
 0x208   : > { %v1282_v38 = vpop.f32.mrf.mxu1  ;;  %v1505_v26 = vpop.f32.mrf.mxu3 }
 0x209   : > { %v1506_v32 = vadd.f32 %v1505_v26, %v1393_v29  ;;  %1665 = vmatmul.f32.gmra.mxu0 %v2954_v51  ;;  %v1283_v60 = vadd.f32 %v1282_v38, %v3525_v44  ;;  %v3530_v29 = vld [vmem:[#allocation35_spill] sm:$0xff]  ;;  %v3531_v38 = vld [vmem:[#allocation33_spill] sm:$0xff] }
 0x20b   : > { %v1619_v11 = vadd.f32 %v1618_v8, %v1506_v32  ;;  %1329 = vmatmul.f32.gmra.mxu1 %v3522_v15  ;;  %1442 = vmatmul.f32.gmra.mxu2 %v3524_v43 }
 0x20d   : > { %1708 = vst [vmem:[%s3268_s19 + $0x18] sm:$0xff] %v1619_v11  ;;  %v1739_v48 = vadd.f32 %v1738_v47, %v1619_v11  ;;  %v1777_v22 = vmul.f32 %v1619_v11, %v1619_v11  ;;  %1555 = vmatmul.f32.gmra.mxu3 %v3526_v7  ;;  %v3532_v11 = vld [vmem:[#allocation38_spill] sm:$0xff] }
 0x20e   : > { %v1395_v42 = vpop.f32.mrf.mxu2  ;;  %v1621_v24 = vpop.f32.mrf.mxu0 }
 0x20f   : > { %v1808_v17 = vadd.f32 %v1807_v3, %v1777_v22  ;;  %v1396_v13 = vadd.f32 %v1395_v42, %v1283_v60 }
 0x210   : > { %v1285_v62 = vpop.f32.mrf.mxu1  ;;  %v1508_v59 = vpop.f32.mrf.mxu3 }
 0x211   : > { %v1509_v23 = vadd.f32 %v1508_v59, %v1396_v13  ;;  %1668 = vmatmul.f32.gmra.mxu0 %v3527_v54  ;;  %v1286_v15 = vadd.f32 %v1285_v62, %v3529_v46  ;;  %v3534_v13 = vld [vmem:[#allocation36_spill] sm:$0xff]  ;;  %v3535_v62 = vld [vmem:[#allocation37_spill] sm:$0xff] }
 0x213   : > { %v1622_v20 = vadd.f32 %v1621_v24, %v1509_v23  ;;  %1332 = vmatmul.f32.gmra.mxu1 %v2954_v51  ;;  %1445 = vmatmul.f32.gmra.mxu2 %v3528_v45  ;;  %v3533_v24 = vld [vmem:[#allocation41_spill] sm:$0xff] }
 0x215   : > { %1709 = vst [vmem:[%s3268_s19 + $0x20] sm:$0xff] %v1622_v20  ;;  %v1740_v25 = vadd.f32 %v1739_v48, %v1622_v20  ;;  %v1778_v16 = vmul.f32 %v1622_v20, %v1622_v20  ;;  %1558 = vmatmul.f32.gmra.mxu3 %v2969_v31  ;;  %v3536_v20 = vld [vmem:[#allocation40_spill] sm:$0xff] }
 0x216   : > { %v1398_v37 = vpop.f32.mrf.mxu2  ;;  %v1624_v40 = vpop.f32.mrf.mxu0 }
 0x217   : > { %v1809_v47 = vadd.f32 %v1808_v17, %v1778_v16  ;;  %v1399_v58 = vadd.f32 %v1398_v37, %v1286_v15 }
 0x218   : > { %v1288_v10 = vpop.f32.mrf.mxu1  ;;  %v1511_v8 = vpop.f32.mrf.mxu3 }
 0x219   : > { %v1512_v3 = vadd.f32 %v1511_v8, %v1399_v58  ;;  %1671 = vmatmul.f32.gmra.mxu0 %v3003_v57  ;;  %v1289_v26 = vadd.f32 %v1288_v10, %v3531_v38  ;;  %v3538_v58 = vld [vmem:[#allocation42_spill] sm:$0xff]  ;;  %v3539_v10 = vld [vmem:[#allocation39_spill] sm:$0xff] }
 0x21b   : > { %v1625_v51 = vadd.f32 %v1624_v40, %v1512_v3  ;;  %1335 = vmatmul.f32.gmra.mxu1 %v3527_v54  ;;  %1448 = vmatmul.f32.gmra.mxu2 %v3530_v29 }
 0x21d   : > { %1710 = vst [vmem:[%s3268_s19 + $0x28] sm:$0xff] %v1625_v51  ;;  %v1741_v32 = vadd.f32 %v1740_v25, %v1625_v51  ;;  %v1779_v31 = vmul.f32 %v1625_v51, %v1625_v51  ;;  %1561 = vmatmul.f32.gmra.mxu3 %v3532_v11 }
 0x21e   : > { %v1401_v43 = vpop.f32.mrf.mxu2  ;;  %v1627_v44 = vpop.f32.mrf.mxu0 }
 0x21f   : > { %v1810_v60 = vadd.f32 %v1809_v47, %v1779_v31  ;;  %v1402_v48 = vadd.f32 %v1401_v43, %v1289_v26  ;;  %v3537_v47 = vld [vmem:[#allocation45_spill] sm:$0xff] }
 0x220   : > { %v1291_v22 = vpop.f32.mrf.mxu1  ;;  %v1514_v7 = vpop.f32.mrf.mxu3 }
 0x221   : > { %v1515_v42 = vadd.f32 %v1514_v7, %v1402_v48  ;;  %1674 = vmatmul.f32.gmra.mxu0 %v3533_v24  ;;  %v1292_v59 = vadd.f32 %v1291_v22, %v3535_v62  ;;  %v3541_v48 = vld [vmem:[#allocation44_spill] sm:$0xff] }
 0x223   : > { %v1628_v17 = vadd.f32 %v1627_v44, %v1515_v42  ;;  %1338 = vmatmul.f32.gmra.mxu1 %v3003_v57  ;;  %1451 = vmatmul.f32.gmra.mxu2 %v3534_v13 }
 0x225   : > { %1711 = vst [vmem:[%s3268_s19 + $0x30] sm:$0xff] %v1628_v17  ;;  %v1742_v23 = vadd.f32 %v1741_v32, %v1628_v17  ;;  %v1780_v54 = vmul.f32 %v1628_v17, %v1628_v17  ;;  %1564 = vmatmul.f32.gmra.mxu3 %v3536_v20 }
 0x226   : > { %v1404_v45 = vpop.f32.mrf.mxu2  ;;  %v1630_v46 = vpop.f32.mrf.mxu0 }
 0x227   : > { %v1811_v15 = vadd.f32 %v1810_v60, %v1780_v54  ;;  %v1405_v25 = vadd.f32 %v1404_v45, %v1292_v59  ;;  %v3540_v60 = vld [vmem:[#allocation43_spill] sm:$0xff]  ;;  %v3542_v54 = vld [vmem:[#allocation50_spill] sm:$0xff] }
 0x228   : > { %v1294_v16 = vpop.f32.mrf.mxu1  ;;  %v1517_v37 = vpop.f32.mrf.mxu3  ;;  %v3543_v45 = vld [vmem:[#allocation47_spill] sm:$0xff] }
 0x229   : > { %v1518_v40 = vadd.f32 %v1517_v37, %v1405_v25  ;;  %1677 = vmatmul.f32.gmra.mxu0 %v3537_v47  ;;  %v1295_v8 = vadd.f32 %v1294_v16, %v3539_v10 }
 0x22b   : > { %v1631_v57 = vadd.f32 %v1630_v46, %v1518_v40  ;;  %1341 = vmatmul.f32.gmra.mxu1 %v3533_v24  ;;  %1454 = vmatmul.f32.gmra.mxu2 %v3538_v58  ;;  %v3544_v46 = vld [vmem:[#allocation46_spill] sm:$0xff] }
 0x22d   : > { %1712 = vst [vmem:[%s3268_s19 + $0x38] sm:$0xff] %v1631_v57  ;;  %v1743_v3 = vadd.f32 %v1742_v23, %v1631_v57  ;;  %v1781_v51 = vmul.f32 %v1631_v57, %v1631_v57  ;;  %1567 = vmatmul.f32.gmra.mxu3 %v3045_v41 }
 0x22e   : > { %v1407_v29 = vpop.f32.mrf.mxu2  ;;  %v1633_v38 = vpop.f32.mrf.mxu0 }
 0x22f   : > { %v1812_v26 = vadd.f32 %v1811_v15, %v1781_v51  ;;  %v1408_v32 = vadd.f32 %v1407_v29, %v1295_v8  ;;  %v3545_v8 = vld [vmem:[#allocation48_spill] sm:$0xff] }
 0x230   : > { %v1297_v31 = vpop.f32.mrf.mxu1  ;;  %v1520_v11 = vpop.f32.mrf.mxu3 }
 0x231   : > { %v1521_v43 = vadd.f32 %v1520_v11, %v1408_v32  ;;  %1680 = vmatmul.f32.gmra.mxu0 %v3070_v2  ;;  %v1298_v22 = vadd.f32 %v1297_v31, %v3541_v48  ;;  %v521_v48 = vrot.slane %v3107_v27, 2 }
 0x233   : > { %v1634_v44 = vadd.f32 %v1633_v38, %v1521_v43  ;;  %1344 = vmatmul.f32.gmra.mxu1 %v3537_v47  ;;  %1457 = vmatmul.f32.gmra.mxu2 %v3540_v60  ;;  %v520_v60 = vrot.slane %v3113_v19, 2 }
 0x235   : > { %1713 = vst [vmem:[%s3268_s19 + $0x40] sm:$0xff] %v1634_v44  ;;  %v1744_v7 = vadd.f32 %v1743_v3, %v1634_v44  ;;  %v1782_v41 = vmul.f32 %v1634_v44, %v1634_v44  ;;  %1570 = vmatmul.f32.gmra.mxu3 %v3067_v61  ;;  %v3546_v3 = vld [vmem:[#allocation49_spill] sm:$0xff] }
 0x236   : > { %v1410_v42 = vpop.f32.mrf.mxu2  ;;  %v1636_v24 = vpop.f32.mrf.mxu0 }
 0x237   : > { %v1813_v17 = vadd.f32 %v1812_v26, %v1782_v41  ;;  %v1411_v13 = vadd.f32 %v1410_v42, %v1298_v22 }
 0x238   : > { %v1300_v62 = vpop.f32.mrf.mxu1  ;;  %v1523_v59 = vpop.f32.mrf.mxu3 }
 0x239   : > { %v1524_v23 = vadd.f32 %v1523_v59, %v1411_v13  ;;  %1683 = vmatmul.f32.gmra.mxu0 %v3542_v54  ;;  %v1301_v15 = vadd.f32 %v1300_v62, %v3544_v46  ;;  %v522_v13 = vsel %vm397_vm1, %v520_v60, %v521_v48  ;;  %v3548_v46 = vld [vmem:[#allocation52_spill] sm:$0xff] }
 0x23b   : > { %v1637_v20 = vadd.f32 %v1636_v24, %v1524_v23  ;;  %1347 = vmatmul.f32.gmra.mxu1 %v3070_v2  ;;  %1460 = vmatmul.f32.gmra.mxu2 %v3543_v45  ;;  %v233_v45 = vld [vmem:[%s2120_s22 + $0x198] sm:$0xff] }
 0x23d   : > { %1714 = vst [vmem:[%s3268_s19 + $0x48] sm:$0xff] %v1637_v20  ;;  %v1745_v25 = vadd.f32 %v1744_v7, %v1637_v20  ;;  %v1783_v61 = vmul.f32 %v1637_v20, %v1637_v20  ;;  %1573 = vmatmul.f32.gmra.mxu3 %v3088_v1  ;;  %v3547_v7 = vld [vmem:[#allocation51_spill] sm:$0xff] }
 0x23e   : > { %v1413_v16 = vpop.f32.mrf.mxu2  ;;  %v1639_v37 = vpop.f32.mrf.mxu0 }
 0x23f   : > { %v1814_v40 = vadd.f32 %v1813_v17, %v1783_v61  ;;  %v1414_v47 = vadd.f32 %v1413_v16, %v1301_v15 }
 0x240   : > { %v1303_v57 = vpop.f32.mrf.mxu1  ;;  %v1526_v58 = vpop.f32.mrf.mxu3 }
 0x241   : > { %v1527_v10 = vadd.f32 %v1526_v58, %v1414_v47  ;;  %1686 = vmatmul.f32.gmra.mxu0 %v3110_v39  ;;  %v1304_v51 = vadd.f32 %v1303_v57, %v3546_v3 }
 0x243   : > { %v1640_v2 = vadd.f32 %v1639_v37, %v1527_v10  ;;  %1350 = vmatmul.f32.gmra.mxu1 %v3542_v54  ;;  %1463 = vmatmul.f32.gmra.mxu2 %v3545_v8 }
 0x245   : > { %1715 = vst [vmem:[%s3268_s19 + $0x50] sm:$0xff] %v1640_v2  ;;  %v1746_v29 = vadd.f32 %v1745_v25, %v1640_v2  ;;  %v1784_v38 = vmul.f32 %v1640_v2, %v1640_v2  ;;  %1576 = vmatmul.f32.gmra.mxu3 %v3104_v55  ;;  %v537_v2 = vrot.slane %v233_v45, 2 }
 0x246   : > { %v1416_v1 = vpop.f32.mrf.mxu2  ;;  %v1642_v26 = vpop.f32.mrf.mxu0 }
 0x247   : > { %v1815_v32 = vadd.f32 %v1814_v40, %v1784_v38  ;;  %v1417_v31 = vadd.f32 %v1416_v1, %v1304_v51  ;;  %v530_v40 = vrot.slane %v233_v45, 1 }
 0x248   : > { %v1306_v11 = vpop.f32.mrf.mxu1  ;;  %v1529_v43 = vpop.f32.mrf.mxu3 }
 0x249   : > { %v1530_v44 = vadd.f32 %v1529_v43, %v1417_v31  ;;  %1689 = vmatmul.f32.gmra.mxu0 %v3131_v30  ;;  %v1307_v55 = vadd.f32 %v1306_v11, %v3547_v7 }
 0x24b   : > { %v1643_v22 = vadd.f32 %v1642_v26, %v1530_v44  ;;  %1353 = vmatmul.f32.gmra.mxu1 %v3110_v39  ;;  %1466 = vmatmul.f32.gmra.mxu2 %v3113_v19  ;;  %v523_v19 = vrot.slane %v3128_v4, 2 }
 0x24d   : > { %1716 = vst [vmem:[%s3268_s19 + $0x58] sm:$0xff] %v1643_v22  ;;  %v1747_v41 = vadd.f32 %v1746_v29, %v1643_v22  ;;  %v1785_v42 = vmul.f32 %v1643_v22, %v1643_v22  ;;  %1579 = vmatmul.f32.gmra.mxu3 %v3125_v21  ;;  %v234_v21 = vld [vmem:[%s2120_s22 + $0x1a0] sm:$0xff]  ;;  %v524_v4 = vsel %vm397_vm1, %v521_v48, %v523_v19  ;;  %v3549_v29 = vld [vmem:[#allocation53_spill] sm:$0xff] }
 0x24e   : > { %v1419_v24 = vpop.f32.mrf.mxu2  ;;  %v1645_v17 = vpop.f32.mrf.mxu0  ;;  %v531_v47 = vrot.slane %v234_v21, 1  ;;  %v538_v3 = vrot.slane %v234_v21, 2 }
 0x24f   : > { %v1816_v62 = vadd.f32 %v1815_v32, %v1785_v42  ;;  %v1420_v59 = vadd.f32 %v1419_v24, %v1307_v55 }
 0x250   : > { %v1309_v23 = vpop.f32.mrf.mxu1  ;;  %v1532_v39 = vpop.f32.mrf.mxu3  ;;  %v532_v8 = vsel %vm284_vm0, %v530_v40, %v531_v47  ;;  %v539_v43 = vsel %vm397_vm1, %v537_v2, %v538_v3 }
 0x251   : > { %v1533_v54 = vadd.f32 %v1532_v39, %v1420_v59  ;;  %1692 = vmatmul.f32.gmra.mxu0 %v522_v13  ;;  %v1310_v15 = vadd.f32 %v1309_v23, %v3548_v46 }
 0x253   : > { %v1646_v20 = vadd.f32 %v1645_v17, %v1533_v54  ;;  %1356 = vmatmul.f32.gmra.mxu1 %v3131_v30  ;;  %1469 = vmatmul.f32.gmra.mxu2 %v3107_v27 }
 0x255   : > { %1717 = vst [vmem:[%s3268_s19 + $0x60] sm:$0xff] %v1646_v20  ;;  %v1748_v25 = vadd.f32 %v1747_v41, %v1646_v20  ;;  %v1786_v61 = vmul.f32 %v1646_v20, %v1646_v20  ;;  %1582 = vmatmul.f32.gmra.mxu3 %v3142_v36  ;;  %v235_v36 = vld [vmem:[%s2120_s22 + $0x1a8] sm:$0x3]  ;;  %s1940_s22 = sshll.u32 %s3551_s13, 1 }
 0x256   : > { %v1422_v16 = vpop.f32.mrf.mxu2  ;;  %v1648_v37 = vpop.f32.mrf.mxu0  ;;  %v533_v11 = vrot.slane %v235_v36, 1  ;;  %v540_v41 = vrot.slane %v235_v36, 2  ;;  %s181_s23 = scalar_lea.vmem %s3405_s3, %s1940_s22 }
 0x257   : > { %v1817_v30 = vadd.f32 %v1816_v62, %v1786_v61  ;;  %v1423_v57 = vadd.f32 %v1422_v16, %v1310_v15 }
 0x258   : > { %v1312_v27 = vpop.f32.mrf.mxu1  ;;  %v1535_v58 = vpop.f32.mrf.mxu3  ;;  %v534_v55 = vsel %vm284_vm0, %v531_v47, %v533_v11  ;;  %v541_v23 = vsel %vm397_vm1, %v538_v3, %v540_v41 }
 0x259   : > { %v1536_v10 = vadd.f32 %v1535_v58, %v1423_v57  ;;  %1695 = vmatmul.f32.gmra.mxu0 %v524_v4  ;;  %v1313_v38 = vadd.f32 %v1312_v27, %v3549_v29 }
 0x25b   : > { %v1649_v51 = vadd.f32 %v1648_v37, %v1536_v10  ;;  %1359 = vmatmul.f32.gmra.mxu1 %v522_v13  ;;  %1472 = vmatmul.f32.gmra.mxu2 %v233_v45 }
 0x25d   : > { %1718 = vst [vmem:[%s3268_s19 + $0x68] sm:$0xff] %v1649_v51  ;;  %v1749_v1 = vadd.f32 %v1748_v25, %v1649_v51  ;;  %v1787_v26 = vmul.f32 %v1649_v51, %v1649_v51  ;;  %1585 = vmatmul.f32.gmra.mxu3 %v532_v8 }
 0x25e   : > { %v1425_v32 = vpop.f32.mrf.mxu2  ;;  %v1651_v31 = vpop.f32.mrf.mxu0 }
 0x25f   : > { %v1818_v44 = vadd.f32 %v1817_v30, %v1787_v26  ;;  %v1426_v60 = vadd.f32 %v1425_v32, %v1313_v38 }
 0x260   : > { %v1315_v48 = vpop.f32.mrf.mxu1  ;;  %v1538_v22 = vpop.f32.mrf.mxu3 }
 0x261   : > { %v1539_v7 = vadd.f32 %v1538_v22, %v1426_v60  ;;  %1698 = vmatmul.f32.gmra.mxu0 %v539_v43  ;;  %v1316_v24 = vadd.f32 %v1315_v48, %v3145_v14 }
 0x263   : > { %v1652_v42 = vadd.f32 %v1651_v31, %v1539_v7  ;;  %1362 = vmatmul.f32.gmra.mxu1 %v524_v4  ;;  %1475 = vmatmul.f32.gmra.mxu2 %v234_v21 }
 0x265   : > { %1719 = vst [vmem:[%s3268_s19 + $0x70] sm:$0xff] %v1652_v42  ;;  %v1750_v17 = vadd.f32 %v1749_v1, %v1652_v42  ;;  %v1788_v13 = vmul.f32 %v1652_v42, %v1652_v42  ;;  %1588 = vmatmul.f32.gmra.mxu3 %v534_v55 }
 0x266   : > { %v1428_v62 = vpop.f32.mrf.mxu2  ;;  %v1654_v59 = vpop.f32.mrf.mxu0 }
 0x267   : > { %v1819_v39 = vadd.f32 %v1818_v44, %v1788_v13  ;;  %v1429_v54 = vadd.f32 %v1428_v62, %v1316_v24 }
 0x268   : > { %v1318_v19 = vpop.f32.mrf.mxu1  ;;  %v1541_v20 = vpop.f32.mrf.mxu3 }
 0x269   : > { %v1542_v45 = vadd.f32 %v1541_v20, %v1429_v54  ;;  %1701 = vmatmul.f32.gmra.mxu0 %v541_v23  ;;  %v1319_v21 = vadd.f32 %v1318_v19, %v3152_v5 }
 0x26b   : > { %v1655_v46 = vadd.f32 %v1654_v59, %v1542_v45 }
 0x26d   : > { %1720 = vst [vmem:[%s3268_s19 + $0x78] sm:$0xff] %v1655_v46  ;;  %v1751_v14 = vadd.f32 %v1750_v17, %v1655_v46  ;;  %v1789_v15 = vmul.f32 %v1655_v46, %v1655_v46 }
 0x26e   : > { %v1431_v25 = vpop.f32.mrf.mxu2  ;;  %v1657_v61 = vpop.f32.mrf.mxu0 }
 0x26f   : > { %v1820_v16 = vadd.f32 %v1819_v39, %v1789_v15  ;;  %v1432_v37 = vadd.f32 %v1431_v25, %v1319_v21 }
 0x270   : > { %v1321_v40 = vpop.f32.mrf.mxu1  ;;  %v1544_v47 = vpop.f32.mrf.mxu3 }
 0x271   : > { %v1545_v4 = vadd.f32 %v1544_v47, %v1432_v37  ;;  %v1322_v57 = vadd.f32 %v1321_v40, %v3159_v50 }
 0x273   : > { %v1658_v30 = vadd.f32 %v1657_v61, %v1545_v4 }
 0x275   : > { %1721 = vst [vmem:[%s3268_s19 + $0x80] sm:$0xff] %v1658_v30  ;;  %v1752_v27 = vadd.f32 %v1751_v14, %v1658_v30  ;;  %v1790_v58 = vmul.f32 %v1658_v30, %v1658_v30 }
 0x276   : > { %v1434_v10 = vpop.f32.mrf.mxu2  ;;  %v1660_v2 = vpop.f32.mrf.mxu0 }
 0x277   : > { %v1821_v5 = vadd.f32 %v1820_v16, %v1790_v58  ;;  %v1435_v8 = vadd.f32 %v1434_v10, %v1322_v57 }
 0x278   : > { %v1324_v3 = vpop.f32.mrf.mxu1  ;;  %v1547_v51 = vpop.f32.mrf.mxu3 }
 0x279   : > { %v1548_v36 = vadd.f32 %v1547_v51, %v1435_v8  ;;  %v1325_v38 = vadd.f32 %v1324_v3, %v3166_v12 }
 0x27b   : > { %v1661_v29 = vadd.f32 %v1660_v2, %v1548_v36 }
 0x27d   : > { %1722 = vst [vmem:[%s3268_s19 + $0x88] sm:$0xff] %v1661_v29  ;;  %v1753_v1 = vadd.f32 %v1752_v27, %v1661_v29  ;;  %v1791_v26 = vmul.f32 %v1661_v29, %v1661_v29 }
 0x27e   : > { %v1437_v32 = vpop.f32.mrf.mxu2  ;;  %v1663_v31 = vpop.f32.mrf.mxu0 }
 0x27f   : > { %v1822_v50 = vadd.f32 %v1821_v5, %v1791_v26  ;;  %v1438_v11 = vadd.f32 %v1437_v32, %v1325_v38 }
 0x280   : > { %v1327_v43 = vpop.f32.mrf.mxu1  ;;  %v1550_v44 = vpop.f32.mrf.mxu3 }
 0x281   : > { %v1551_v60 = vadd.f32 %v1550_v44, %v1438_v11  ;;  %v1328_v22 = vadd.f32 %v1327_v43, %v3173_v18 }
 0x283   : > { %v1664_v48 = vadd.f32 %v1663_v31, %v1551_v60 }
 0x285   : > { %1723 = vst [vmem:[%s3268_s19 + $0x90] sm:$0xff] %v1664_v48  ;;  %v1754_v7 = vadd.f32 %v1753_v1, %v1664_v48  ;;  %v1792_v55 = vmul.f32 %v1664_v48, %v1664_v48 }
 0x286   : > { %v1440_v41 = vpop.f32.mrf.mxu2  ;;  %v1666_v42 = vpop.f32.mrf.mxu0 }
 0x287   : > { %v1823_v12 = vadd.f32 %v1822_v50, %v1792_v55  ;;  %v1441_v24 = vadd.f32 %v1440_v41, %v1328_v22 }
 0x288   : > { %v1330_v17 = vpop.f32.mrf.mxu1  ;;  %v1553_v13 = vpop.f32.mrf.mxu3 }
 0x289   : > { %v1554_v62 = vadd.f32 %v1553_v13, %v1441_v24  ;;  %v1331_v23 = vadd.f32 %v1330_v17, %v3180_v56 }
 0x28b   : > { %v1667_v59 = vadd.f32 %v1666_v42, %v1554_v62 }
 0x28d   : > { %1724 = vst [vmem:[%s3268_s19 + $0x98] sm:$0xff] %v1667_v59  ;;  %v1755_v39 = vadd.f32 %v1754_v7, %v1667_v59  ;;  %v1793_v54 = vmul.f32 %v1667_v59, %v1667_v59 }
 0x28e   : > { %v1443_v19 = vpop.f32.mrf.mxu2  ;;  %v1669_v20 = vpop.f32.mrf.mxu0 }
 0x28f   : > { %v1824_v18 = vadd.f32 %v1823_v12, %v1793_v54  ;;  %v1444_v45 = vadd.f32 %v1443_v19, %v1331_v23 }
 0x290   : > { %v1333_v46 = vpop.f32.mrf.mxu1  ;;  %v1556_v21 = vpop.f32.mrf.mxu3 }
 0x291   : > { %v1557_v14 = vadd.f32 %v1556_v21, %v1444_v45  ;;  %v1334_v25 = vadd.f32 %v1333_v46, %v3187_v33 }
 0x293   : > { %v1670_v15 = vadd.f32 %v1669_v20, %v1557_v14 }
 0x295   : > { %1725 = vst [vmem:[%s3268_s19 + $0xa0] sm:$0xff] %v1670_v15  ;;  %v1756_v61 = vadd.f32 %v1755_v39, %v1670_v15  ;;  %v1794_v16 = vmul.f32 %v1670_v15, %v1670_v15 }
 0x296   : > { %v1446_v37 = vpop.f32.mrf.mxu2  ;;  %v1672_v40 = vpop.f32.mrf.mxu0 }
 0x297   : > { %v1825_v56 = vadd.f32 %v1824_v18, %v1794_v16  ;;  %v1447_v47 = vadd.f32 %v1446_v37, %v1334_v25 }
 0x298   : > { %v1336_v4 = vpop.f32.mrf.mxu1  ;;  %v1559_v30 = vpop.f32.mrf.mxu3 }
 0x299   : > { %v1560_v57 = vadd.f32 %v1559_v30, %v1447_v47  ;;  %v1337_v58 = vadd.f32 %v1336_v4, %v3194_v49 }
 0x29b   : > { %v1673_v27 = vadd.f32 %v1672_v40, %v1560_v57 }
 0x29d   : > { %1726 = vst [vmem:[%s3268_s19 + $0xa8] sm:$0xff] %v1673_v27  ;;  %v1757_v10 = vadd.f32 %v1756_v61, %v1673_v27  ;;  %v1795_v2 = vmul.f32 %v1673_v27, %v1673_v27 }
 0x29e   : > { %v1449_v5 = vpop.f32.mrf.mxu2  ;;  %v1675_v8 = vpop.f32.mrf.mxu0 }
 0x29f   : > { %v1826_v33 = vadd.f32 %v1825_v56, %v1795_v2  ;;  %v1450_v3 = vadd.f32 %v1449_v5, %v1337_v58 }
 0x2a0   : > { %v1339_v51 = vpop.f32.mrf.mxu1  ;;  %v1562_v36 = vpop.f32.mrf.mxu3 }
 0x2a1   : > { %v1563_v29 = vadd.f32 %v1562_v36, %v1450_v3  ;;  %v1340_v1 = vadd.f32 %v1339_v51, %v3201_v53 }
 0x2a3   : > { %v1676_v38 = vadd.f32 %v1675_v8, %v1563_v29 }
 0x2a5   : > { %1727 = vst [vmem:[%s3268_s19 + $0xb0] sm:$0xff] %v1676_v38  ;;  %v1758_v26 = vadd.f32 %v1757_v10, %v1676_v38  ;;  %v1796_v32 = vmul.f32 %v1676_v38, %v1676_v38 }
 0x2a6   : > { %v1452_v31 = vpop.f32.mrf.mxu2  ;;  %v1678_v50 = vpop.f32.mrf.mxu0 }
 0x2a7   : > { %v1827_v49 = vadd.f32 %v1826_v33, %v1796_v32  ;;  %v1453_v11 = vadd.f32 %v1452_v31, %v1340_v1 }
 0x2a8   : > { %v1342_v43 = vpop.f32.mrf.mxu1  ;;  %v1565_v44 = vpop.f32.mrf.mxu3 }
 0x2a9   : > { %v1566_v60 = vadd.f32 %v1565_v44, %v1453_v11  ;;  %v1343_v22 = vadd.f32 %v1342_v43, %v3208_v0 }
 0x2ab   : > { %v1679_v48 = vadd.f32 %v1678_v50, %v1566_v60 }
 0x2ad   : > { %1728 = vst [vmem:[%s3268_s19 + $0xb8] sm:$0xff] %v1679_v48  ;;  %v1759_v7 = vadd.f32 %v1758_v26, %v1679_v48  ;;  %v1797_v55 = vmul.f32 %v1679_v48, %v1679_v48 }
 0x2ae   : > { %v1455_v41 = vpop.f32.mrf.mxu2  ;;  %v1681_v42 = vpop.f32.mrf.mxu0 }
 0x2af   : > { %v1828_v53 = vadd.f32 %v1827_v49, %v1797_v55  ;;  %v1456_v12 = vadd.f32 %v1455_v41, %v1343_v22 }
 0x2b0   : > { %v1345_v24 = vpop.f32.mrf.mxu1  ;;  %v1568_v17 = vpop.f32.mrf.mxu3 }
 0x2b1   : > { %v1569_v13 = vadd.f32 %v1568_v17, %v1456_v12  ;;  %v1346_v59 = vadd.f32 %v1345_v24, %v3215_v52 }
 0x2b3   : > { %v1682_v62 = vadd.f32 %v1681_v42, %v1569_v13 }
 0x2b5   : > { %1729 = vst [vmem:[%s3268_s19 + $0xc0] sm:$0xff] %v1682_v62  ;;  %v1760_v23 = vadd.f32 %v1759_v7, %v1682_v62  ;;  %v1798_v39 = vmul.f32 %v1682_v62, %v1682_v62 }
 0x2b6   : > { %v1458_v54 = vpop.f32.mrf.mxu2  ;;  %v1684_v19 = vpop.f32.mrf.mxu0 }
 0x2b7   : > { %v1829_v0 = vadd.f32 %v1828_v53, %v1798_v39  ;;  %v1459_v20 = vadd.f32 %v1458_v54, %v1346_v59 }
 0x2b8   : > { %v1348_v18 = vpop.f32.mrf.mxu1  ;;  %v1571_v45 = vpop.f32.mrf.mxu3 }
 0x2b9   : > { %v1572_v46 = vadd.f32 %v1571_v45, %v1459_v20  ;;  %v1349_v14 = vadd.f32 %v1348_v18, %v3222_v6 }
 0x2bb   : > { %v1685_v21 = vadd.f32 %v1684_v19, %v1572_v46 }
 0x2bd   : > { %1730 = vst [vmem:[%s3268_s19 + $0xc8] sm:$0xff] %v1685_v21  ;;  %v1761_v15 = vadd.f32 %v1760_v23, %v1685_v21  ;;  %v1799_v25 = vmul.f32 %v1685_v21, %v1685_v21 }
 0x2be   : > { %v1461_v61 = vpop.f32.mrf.mxu2  ;;  %v1687_v16 = vpop.f32.mrf.mxu0 }
 0x2bf   : > { %v1830_v52 = vadd.f32 %v1829_v0, %v1799_v25  ;;  %v1462_v37 = vadd.f32 %v1461_v61, %v1349_v14 }
 0x2c0   : > { %v1351_v40 = vpop.f32.mrf.mxu1  ;;  %v1574_v56 = vpop.f32.mrf.mxu3 }
 0x2c1   : > { %v1575_v47 = vadd.f32 %v1574_v56, %v1462_v37  ;;  %v1352_v30 = vadd.f32 %v1351_v40, %v3229_v28 }
 0x2c3   : > { %v1688_v4 = vadd.f32 %v1687_v16, %v1575_v47 }
 0x2c5   : > { %1731 = vst [vmem:[%s3268_s19 + $0xd0] sm:$0xff] %v1688_v4  ;;  %v1762_v57 = vadd.f32 %v1761_v15, %v1688_v4  ;;  %v1800_v27 = vmul.f32 %v1688_v4, %v1688_v4 }
 0x2c6   : > { %v1464_v58 = vpop.f32.mrf.mxu2  ;;  %v1690_v10 = vpop.f32.mrf.mxu0 }
 0x2c7   : > { %v1831_v6 = vadd.f32 %v1830_v52, %v1800_v27  ;;  %v1465_v2 = vadd.f32 %v1464_v58, %v1352_v30 }
 0x2c8   : > { %v1354_v5 = vpop.f32.mrf.mxu1  ;;  %v1577_v8 = vpop.f32.mrf.mxu3 }
 0x2c9   : > { %v1578_v33 = vadd.f32 %v1577_v8, %v1465_v2  ;;  %v1355_v51 = vadd.f32 %v1354_v5, %v3236_v35 }
 0x2cb   : > { %v1691_v3 = vadd.f32 %v1690_v10, %v1578_v33 }
 0x2cd   : > { %1732 = vst [vmem:[%s3268_s19 + $0xd8] sm:$0xff] %v1691_v3  ;;  %v1763_v36 = vadd.f32 %v1762_v57, %v1691_v3  ;;  %v1801_v29 = vmul.f32 %v1691_v3, %v1691_v3 }
 0x2ce   : > { %v1467_v38 = vpop.f32.mrf.mxu2  ;;  %v1693_v1 = vpop.f32.mrf.mxu0 }
 0x2cf   : > { %v1832_v28 = vadd.f32 %v1831_v6, %v1801_v29  ;;  %v1468_v26 = vadd.f32 %v1467_v38, %v1355_v51 }
 0x2d0   : > { %v1357_v32 = vpop.f32.mrf.mxu1  ;;  %v1580_v31 = vpop.f32.mrf.mxu3 }
 0x2d1   : > { %v1581_v50 = vadd.f32 %v1580_v31, %v1468_v26  ;;  %v1358_v11 = vadd.f32 %v1357_v32, %v3243_v9 }
 0x2d3   : > { %v1694_v49 = vadd.f32 %v1693_v1, %v1581_v50 }
 0x2d5   : > { %1733 = vst [vmem:[%s3268_s19 + $0xe0] sm:$0xff] %v1694_v49  ;;  %v1764_v43 = vadd.f32 %v1763_v36, %v1694_v49  ;;  %v1802_v44 = vmul.f32 %v1694_v49, %v1694_v49 }
 0x2d6   : > { %v1470_v60 = vpop.f32.mrf.mxu2  ;;  %v1696_v48 = vpop.f32.mrf.mxu0 }
 0x2d7   : > { %v1833_v35 = vadd.f32 %v1832_v28, %v1802_v44  ;;  %v1471_v22 = vadd.f32 %v1470_v60, %v1358_v11 }
 0x2d8   : > { %v1360_v7 = vpop.f32.mrf.mxu1  ;;  %v1583_v55 = vpop.f32.mrf.mxu3 }
 0x2d9   : > { %v1584_v41 = vadd.f32 %v1583_v55, %v1471_v22  ;;  %v1361_v53 = vadd.f32 %v1360_v7, %v3250_v63 }
 0x2db   : > { %v1697_v42 = vadd.f32 %v1696_v48, %v1584_v41 }
 0x2dd   : > { %1734 = vst [vmem:[%s3268_s19 + $0xe8] sm:$0xff] %v1697_v42  ;;  %v1765_v12 = vadd.f32 %v1764_v43, %v1697_v42  ;;  %v1803_v24 = vmul.f32 %v1697_v42, %v1697_v42 }
 0x2de   : > { %v1473_v17 = vpop.f32.mrf.mxu2  ;;  %v1699_v13 = vpop.f32.mrf.mxu0 }
 0x2df   : > { %v1834_v9 = vadd.f32 %v1833_v35, %v1803_v24  ;;  %v1474_v62 = vadd.f32 %v1473_v17, %v1361_v53 }
 0x2e0   : > { %v1586_v59 = vpop.f32.mrf.mxu3  ;;  %v1363_v39 = vpop.f32.mrf.mxu1 }
 0x2e1   : > { %v1587_v23 = vadd.f32 %v1586_v59, %v1474_v62  ;;  %v1364_v19 = vadd.f32 %v1363_v39, %v3257_v34 }
 0x2e3   : > { %v1700_v54 = vadd.f32 %v1699_v13, %v1587_v23 }
 0x2e5   : > { %1735 = vst [vmem:[%s3268_s19 + $0xf0] sm:$0xff] %v1700_v54  ;;  %v1766_v0 = vadd.f32 %v1765_v12, %v1700_v54  ;;  %v1804_v20 = vmul.f32 %v1700_v54, %v1700_v54 }
 0x2e6   : > { %v1476_v18 = vpop.f32.mrf.mxu2  ;;  %v1702_v21 = vpop.f32.mrf.mxu0 }
 0x2e7   : > { %v1835_v45 = vadd.f32 %v1834_v9, %v1804_v20  ;;  %v1477_v63 = vadd.f32 %v1476_v18, %v1364_v19 }
 0x2e8   : > { %v1589_v46 = vpop.f32.mrf.mxu3 }
 0x2e9   : > { %v1590_v14 = vadd.f32 %v1589_v46, %v1477_v63 }
 0x2eb   : > { %v1703_v15 = vadd.f32 %v1702_v21, %v1590_v14 }
 0x2ed   : > { %1736 = vst [vmem:[%s3268_s19 + $0xf8] sm:$0xff] %v1703_v15  ;;  %v1767_v25 = vadd.f32 %v1766_v0, %v1703_v15  ;;  %v1805_v61 = vmul.f32 %v1703_v15, %v1703_v15 }
 0x2ef   : > { %v1768_v16 = vrot.slane %v1767_v25, 4  ;;  %v1836_v52 = vadd.f32 %v1835_v45, %v1805_v61 }
 0x2f1   : > { %v1769_v37 = vadd.f32 %v1768_v16, %v1767_v25  ;;  %v1837_v40 = vrot.slane %v1836_v52, 4 }
 0x2f3   : > { %v1770_v56 = vrot.slane %v1769_v37, 2  ;;  %v1838_v34 = vadd.f32 %v1837_v40, %v1836_v52 }
 0x2f5   : > { %v1771_v47 = vadd.f32 %v1770_v56, %v1769_v37  ;;  %v1839_v4 = vrot.slane %v1838_v34, 2 }
 0x2f7   : > { %v1772_v30 = vrot.slane %v1771_v47, 1  ;;  %v1840_v57 = vadd.f32 %v1839_v4, %v1838_v34 }
 0x2f9   : > { %v1841_v27 = vrot.slane %v1840_v57, 1  ;;  %v1773_v58 = vadd.f32 %v1772_v30, %v1771_v47 }
 0x2fb   : > { %v1842_v10 = vadd.f32 %v1841_v27, %v1840_v57 }
 0x2fd   : > { %v1844_v6 = vsel %vm1843_vm2, %v1773_v58, %v1842_v10 }
 0x2fe   : > { %1845 = vst [vmem:[%s181_s23] sm:$0x3] %v1844_v6 }
 0x2ff PF: > { %s14_s12 = sadd.s32 1, %s2035_s12  }
 0x300   : > { %p11_p4 = scmp.ge.s32.totalorder %s14_s12, 4  }
 0x302   :  { %13 = sbr.rel (!%p11_p4) target bundleno = 1 (0x1), region = 70 }

// kernel: basic_block.4
= control target key start
LH: loop header
LB: loop body
LE: loop exit
PB: predicated region body
PF: predicated region fallthrough
CT: control target
= control target key end

     0   :  { %s2391_s18 = smov 0   ;;  %s3999_s0 = inlined_call_operand.vmem [shape: f32[2,256,128], index: 0, kind: input, shape index: {}]   ;;  %s4000_s1 = inlined_call_operand.vmem [shape: f32[1,128], index: 1, kind: input, shape index: {}]   ;;  %s4001_s2 = inlined_call_operand.vmem [shape: f32[1,128], index: 2, kind: input, shape index: {}]   ;;  %s4002_s3 = inlined_call_operand.vmem [shape: f32[1152,128], index: 3, kind: input, shape index: {}]   ;;  %s4003_s4 = inlined_call_operand.vmem [shape: f32[2,256,128], index: 4, kind: output, shape index: {0}]   ;;  %s4004_s5 = inlined_call_operand.vmem [shape: f32[2,2,128], index: 5, kind: output, shape index: {1}]  }
   0x1 LB: > { %s2185_s19 = sadd.s32 4294967295, %s2358_s18   ;;  %p2189_p0 = scmp.ge.s32.totalorder %s2358_s18, 1  ;;  %s2358_s18 = sphi %s2391_s18, %s16_s18  }
   0x2   : > { %p190_p1 = scmp.lt.s32.totalorder %s2358_s18, 3 }
   0x4   : > { %p191_p2 = pnand %p2189_p0, %p190_p1 }
   0x6   : > { %194 = sbr.rel (%p191_p2) target bundleno = 767 (0x2ff), region = 36 }
   0xb   : > { %v813_v0 = vld [vmem:[%s4002_s3 + $0x78] sm:$0xff]  ;;  %v812_v1 = vld [vmem:[%s4002_s3 + $0x70] sm:$0xff]  ;;  %p222_p3 = scmp.lt.s32.totalorder %s2185_s19, 1  ;;  %v811_v2 = vld [vmem:[%s4002_s3 + $0x68] sm:$0xff]  ;;  %vm404_vm0 = vcmask 1040384   ;;  %vm564_vm2 = vcmask 1046528  }
   0xc   : > { %2291 = vmatpush.msra.mxu1 %v813_v0  ;;  %2292 = vmatpush.msra.mxu2 %v813_v0  ;;  %v810_v3 = vld [vmem:[%s4002_s3 + $0x60] sm:$0xff]  ;;  %v809_v4 = vld [vmem:[%s4002_s3 + $0x58] sm:$0xff]  ;;  %v808_v5 = vld [vmem:[%s4002_s3 + $0x50] sm:$0xff]  ;;  %vm673_vm3 = vcmask 1045504  }
   0xd   : > { %2293 = vmatpush.msra.mxu3 %v813_v0  ;;  %942 = vmatpush.msra.mxu0 %v813_v0  ;;  %s4239_s19 = smov (!%p222_p3, %s2185_s19), 1  ;;  %v807_v6 = vld [vmem:[%s4002_s3 + $0x48] sm:$0xff]  ;;  %v806_v7 = vld [vmem:[%s4002_s3 + $0x40] sm:$0xff]  ;;  %v805_v11 = vld [vmem:[%s4002_s3 + $0x38] sm:$0xff] }
   0xe   : > { %2294 = vmatpush.msra.mxu1 %v812_v1  ;;  %2295 = vmatpush.msra.mxu2 %v812_v1  ;;  %s2289_s30 = sshll.u32 %s4239_s19, 8  ;;  %v2436_v8 = vld [vmem:[%s4000_s1] ss:$0 sm:$0xff]  ;;  %v804_v13 = vld [vmem:[%s4002_s3 + $0x30] sm:$0xff]  ;;  %v803_v17 = vld [vmem:[%s4002_s3 + $0x28] sm:$0xff] }
   0xf   : > { %2296 = vmatpush.msra.mxu3 %v812_v1  ;;  %943 = vmatpush.msra.mxu0 %v812_v1  ;;  %s2428_s12 = scalar_lea.vmem %s3999_s0, %s2289_s30  ;;  %v2451_v15 = vld [vmem:[%s4001_s2] ss:$0 sm:$0xff]  ;;  %v801_v27 = vld [vmem:[%s4002_s3 + $0x18] sm:$0xff]  ;;  %v800_v30 = vld [vmem:[%s4002_s3 + $0x10] sm:$0xff]  ;;  %s3853_s25 = scalar_lea.vmem %s4003_s4, %s2289_s30 }
  0x10   : > { %2297 = vmatpush.msra.mxu1 %v811_v2  ;;  %2298 = vmatpush.msra.mxu2 %v811_v2  ;;  %v242_v9 = vld [vmem:[%s2428_s12 + $0x30] sm:$0xff]  ;;  %v243_v19 = vld [vmem:[%s2428_s12 + $0x38] sm:$0xff]  ;;  %v802_v21 = vld [vmem:[%s4002_s3 + $0x20] sm:$0xff]  ;;  %s2194_s30 = sshll.u32 %s4239_s19, 1 }
  0x11   : > { %2299 = vmatpush.msra.mxu3 %v811_v2  ;;  %944 = vmatpush.msra.mxu0 %v811_v2  ;;  %v250_v10 = vld [vmem:[%s2428_s12 + $0x70] sm:$0xff]  ;;  %v278_v14 = vmul.f32 %v2436_v8, %v242_v9  ;;  %v251_v20 = vld [vmem:[%s2428_s12 + $0x78] sm:$0xff]  ;;  %v279_v25 = vmul.f32 %v2436_v8, %v243_v19  ;;  %v799_v35 = vld [vmem:[%s4002_s3 + $0x8] sm:$0xff]  ;;  %s235_s28 = scalar_lea.vmem %s4004_s5, %s2194_s30 }
  0x12   : > { %2300 = vmatpush.msra.mxu1 %v810_v3  ;;  %2301 = vmatpush.msra.mxu2 %v810_v3  ;;  %v258_v12 = vld [vmem:[%s2428_s12 + $0xb0] sm:$0xff]  ;;  %v286_v16 = vmul.f32 %v2436_v8, %v250_v10  ;;  %v259_v24 = vld [vmem:[%s2428_s12 + $0xb8] sm:$0xff]  ;;  %v287_v26 = vmul.f32 %v2436_v8, %v251_v20  ;;  %v798_v38 = vld [vmem:[%s4002_s3] sm:$0xff] }
  0x13   : > { %2302 = vmatpush.msra.mxu3 %v810_v3  ;;  %945 = vmatpush.msra.mxu0 %v810_v3  ;;  %v294_v18 = vmul.f32 %v2436_v8, %v258_v12  ;;  %v314_v22 = vadd.f32 %v2451_v15, %v278_v14  ;;  %v295_v29 = vmul.f32 %v2436_v8, %v259_v24  ;;  %vm2490_vm1 = vmneg %vm404_vm0  ;;  %v244_v44 = vld [vmem:[%s2428_s12 + $0x40] sm:$0xff]  ;;  %v845_v46 = vld [vmem:[%s4002_s3 + $0x178] sm:$0xff]  ;;  %v4005_v12 = vmov 0.0  }
  0x14   : > { %2303 = vmatpush.msra.mxu1 %v809_v4  ;;  %2304 = vmatpush.msra.mxu2 %v809_v4  ;;  %v322_v23 = vadd.f32 %v2451_v15, %v286_v16  ;;  %v315_v33 = vadd.f32 %v2451_v15, %v279_v25  ;;  %v323_v34 = vadd.f32 %v2451_v15, %v287_v26  ;;  %v252_v45 = vld [vmem:[%s2428_s12 + $0x80] sm:$0xff]  ;;  %v829_v48 = vld [vmem:[%s4002_s3 + $0xf8] sm:$0xff]  ;;  %v844_v52 = vld [vmem:[%s4002_s3 + $0x170] sm:$0xff] }
  0x15   : > { %2305 = vmatpush.msra.mxu3 %v809_v4  ;;  %946 = vmatpush.msra.mxu0 %v809_v4  ;;  %v330_v28 = vadd.f32 %v2451_v15, %v294_v18  ;;  %v346_v31 = vmax.f32 %v314_v22, 0.0  ;;  %v331_v37 = vadd.f32 %v2451_v15, %v295_v29  ;;  %v260_v50 = vld [vmem:[%s2428_s12 + $0xc0] sm:$0xff]  ;;  %v861_v51 = vld [vmem:[%s4002_s3 + $0x1f8] sm:$0xff]  ;;  %v280_v53 = vmul.f32 %v2436_v8, %v244_v44  ;;  %v828_v57 = vld [vmem:[%s4002_s3 + $0xf0] sm:$0xff] }
  0x16   : > { %2306 = vmatpush.msra.mxu1 %v808_v5  ;;  %2307 = vmatpush.msra.mxu2 %v808_v5  ;;  %v354_v32 = vmax.f32 %v322_v23, 0.0  ;;  %v347_v42 = vmax.f32 %v315_v33, 0.0  ;;  %v355_v43 = vmax.f32 %v323_v34, 0.0  ;;  %v288_v54 = vmul.f32 %v2436_v8, %v252_v45  ;;  %v245_v58 = vld [vmem:[%s2428_s12 + $0x48] sm:$0xff]  ;;  %v860_v59 = vld [vmem:[%s4002_s3 + $0x1f0] sm:$0xff]  ;;  %v236_v1 = vld [vmem:[%s2428_s12] sm:$0xff] }
  0x17   : > { %2308 = vmatpush.msra.mxu3 %v808_v5  ;;  %947 = vmatpush.msra.mxu0 %v808_v5  ;;  %v362_v36 = vmax.f32 %v330_v28, 0.0  ;;  %v2485_v39 = vrot.slane %v346_v31, 7  ;;  %v363_v49 = vmax.f32 %v331_v37, 0.0  ;;  %v843_v60 = vld [vmem:[%s4002_s3 + $0x168] sm:$0xff]  ;;  %v296_v61 = vmul.f32 %v2436_v8, %v260_v50  ;;  %v877_v3 = vld [vmem:[%s4002_s3 + $0x278] sm:$0xff]  ;;  %v858_v14 = vld [vmem:[%s4002_s3 + $0x1e0] sm:$0xff] }
  0x18   : > { %2309 = vmatpush.msra.mxu1 %v807_v6  ;;  %2310 = vmatpush.msra.mxu2 %v807_v6  ;;  %v2487_v40 = vrot.slane %v354_v32, 7  ;;  %v2519_v55 = vrot.slane %v347_v42, 7  ;;  %v2521_v56 = vrot.slane %v355_v43, 7  ;;  %v253_v62 = vld [vmem:[%s2428_s12 + $0x88] sm:$0xff]  ;;  %v316_v4 = vadd.f32 %v2451_v15, %v280_v53  ;;  %v876_v19 = vld [vmem:[%s4002_s3 + $0x270] sm:$0xff]  ;;  %v826_v23 = vld [vmem:[%s4002_s3 + $0xe0] sm:$0xff] }
  0x19   : > { %2311 = vmatpush.msra.mxu3 %v807_v6  ;;  %948 = vmatpush.msra.mxu0 %v807_v6  ;;  %4069 = vst [vmem:[#allocation2_spill] sm:$0xff] %v2485_v39  ;;  %v2499_v47 = vrot.slane %v362_v36, 7  ;;  %v2538_v63 = vrot.slane %v363_v49, 7  ;;  %v827_v0 = vld [vmem:[%s4002_s3 + $0xe8] sm:$0xff]  ;;  %v324_v5 = vadd.f32 %v2451_v15, %v288_v54  ;;  %v281_v6 = vmul.f32 %v2436_v8, %v245_v58  ;;  %v841_v24 = vld [vmem:[%s4002_s3 + $0x158] sm:$0xff]  ;;  %v840_v32 = vld [vmem:[%s4002_s3 + $0x150] sm:$0xff] }
  0x1a   : > { %2312 = vmatpush.msra.mxu1 %v806_v7  ;;  %2313 = vmatpush.msra.mxu2 %v806_v7  ;;  %4070 = vst [vmem:[#allocation3_spill] sm:$0xff] %v2487_v40  ;;  %v859_v2 = vld [vmem:[%s4002_s3 + $0x1e8] sm:$0xff]  ;;  %v2557_v9 = vsel %vm404_vm0, %v2485_v39, %v2519_v55  ;;  %v2562_v10 = vsel %vm404_vm0, %v2487_v40, %v2521_v56  ;;  %v857_v26 = vld [vmem:[%s4002_s3 + $0x1d8] sm:$0xff]  ;;  %v856_v34 = vld [vmem:[%s4002_s3 + $0x1d0] sm:$0xff] }
  0x1b   : > { %2314 = vmatpush.msra.mxu3 %v806_v7  ;;  %949 = vmatpush.msra.mxu0 %v806_v7  ;;  %v261_v7 = vld [vmem:[%s2428_s12 + $0xc8] sm:$0xff]  ;;  %4073 = vst [vmem:[#allocation4_spill] sm:$0xff] %v2557_v9  ;;  %v332_v16 = vadd.f32 %v2451_v15, %v296_v61  ;;  %v2577_v18 = vsel %vm404_vm0, %v2499_v47, %v2538_v63  ;;  %v356_v22 = vmax.f32 %v324_v5, 0.0  ;;  %v825_v31 = vld [vmem:[%s4002_s3 + $0xd8] sm:$0xff]  ;;  %v874_v42 = vld [vmem:[%s4002_s3 + $0x260] sm:$0xff] }
  0x1c   : > { %2315 = vmatpush.msra.mxu1 %v805_v11  ;;  %2316 = vmatpush.msra.mxu2 %v805_v11  ;;  %4074 = vst [vmem:[#allocation5_spill] sm:$0xff] %v2562_v10  ;;  %v297_v20 = vmul.f32 %v2436_v8, %v261_v7  ;;  %v237_v25 = vld [vmem:[%s2428_s12 + $0x8] sm:$0xff]  ;;  %v317_v28 = vadd.f32 %v2451_v15, %v281_v6  ;;  %v824_v43 = vld [vmem:[%s4002_s3 + $0xd0] sm:$0xff]  ;;  %v873_v54 = vld [vmem:[%s4002_s3 + $0x258] sm:$0xff] }
  0x1d   : > { %2317 = vmatpush.msra.mxu3 %v805_v11  ;;  %950 = vmatpush.msra.mxu0 %v805_v11  ;;  %v289_v11 = vmul.f32 %v2436_v8, %v253_v62  ;;  %4075 = vst [vmem:[#allocation6_spill] sm:$0xff] %v2577_v18  ;;  %v273_v36 = vmul.f32 %v2436_v8, %v237_v25  ;;  %v839_v50 = vld [vmem:[%s4002_s3 + $0x148] sm:$0xff]  ;;  %v262_v58 = vld [vmem:[%s2428_s12 + $0xd0] sm:$0xff]  ;;  %v822_v6 = vld [vmem:[%s4002_s3 + $0xc0] sm:$0xff] }
  0x1e   : > { %2318 = vmatpush.msra.mxu1 %v804_v13  ;;  %2319 = vmatpush.msra.mxu2 %v804_v13  ;;  %v349_v44 = vmax.f32 %v317_v28, 0.0  ;;  %v837_v7 = vld [vmem:[%s4002_s3 + $0x138] sm:$0xff] }
  0x1f   : > { %2320 = vmatpush.msra.mxu3 %v804_v13  ;;  %951 = vmatpush.msra.mxu0 %v804_v13  ;;  %v842_v13 = vld [vmem:[%s4002_s3 + $0x160] sm:$0xff]  ;;  %v325_v29 = vadd.f32 %v2451_v15, %v289_v11  ;;  %v298_v11 = vmul.f32 %v2436_v8, %v262_v58  ;;  %v263_v25 = vld [vmem:[%s2428_s12 + $0xd8] sm:$0xff] }
  0x20   : > { %2321 = vmatpush.msra.mxu1 %v803_v17  ;;  %2322 = vmatpush.msra.mxu2 %v803_v17  ;;  %v834_v58 = vld [vmem:[%s4002_s3 + $0x120] sm:$0xff] }
  0x21   : > { %2323 = vmatpush.msra.mxu3 %v803_v17  ;;  %952 = vmatpush.msra.mxu0 %v803_v17  ;;  %v272_v17 = vmul.f32 %v2436_v8, %v236_v1  ;;  %v357_v45 = vmax.f32 %v325_v29, 0.0  ;;  %v334_v29 = vadd.f32 %v2451_v15, %v298_v11 }
  0x22   : > { %2324 = vmatpush.msra.mxu1 %v802_v21  ;;  %2325 = vmatpush.msra.mxu2 %v802_v21 }
  0x23   : > { %2326 = vmatpush.msra.mxu3 %v802_v21  ;;  %953 = vmatpush.msra.mxu0 %v802_v21  ;;  %v348_v21 = vmax.f32 %v316_v4, 0.0  ;;  %v308_v33 = vadd.f32 %v2451_v15, %v272_v17  ;;  %v2655_v1 = vrot.slane %v357_v45, 7  ;;  %v247_v4 = vld [vmem:[%s2428_s12 + $0x58] sm:$0xff]  ;;  %v820_v45 = vld [vmem:[%s4002_s3 + $0xb0] sm:$0xff] }
  0x24   : > { %2327 = vmatpush.msra.mxu1 %v801_v27  ;;  %2328 = vmatpush.msra.mxu2 %v801_v27  ;;  %v853_v17 = vld [vmem:[%s4002_s3 + $0x1b8] sm:$0xff] }
  0x25   : > { %2329 = vmatpush.msra.mxu3 %v801_v27  ;;  %954 = vmatpush.msra.mxu0 %v801_v27  ;;  %v875_v27 = vld [vmem:[%s4002_s3 + $0x268] sm:$0xff]  ;;  %v2613_v37 = vrot.slane %v348_v21, 7 }
  0x26   : > { %2330 = vmatpush.msra.mxu1 %v800_v30  ;;  %2331 = vmatpush.msra.mxu2 %v800_v30 }
  0x27   : > { %2332 = vmatpush.msra.mxu3 %v800_v30  ;;  %955 = vmatpush.msra.mxu0 %v800_v30  ;;  %v364_v30 = vmax.f32 %v332_v16, 0.0  ;;  %4076 = vst [vmem:[#allocation7_spill] sm:$0xff] %v2613_v37 }
  0x28   : > { %2333 = vmatpush.msra.mxu1 %v799_v35  ;;  %2334 = vmatpush.msra.mxu2 %v799_v35 }
  0x29   : > { %2335 = vmatpush.msra.mxu3 %v799_v35  ;;  %956 = vmatpush.msra.mxu0 %v799_v35  ;;  %v333_v35 = vadd.f32 %v2451_v15, %v297_v20  ;;  %v2626_v49 = vrot.slane %v364_v30, 7  ;;  %v836_v30 = vld [vmem:[%s4002_s3 + $0x130] sm:$0xff] }
  0x2a   : > { %2336 = vmatpush.msra.mxu1 %v798_v38  ;;  %2337 = vmatpush.msra.mxu2 %v798_v38 }
  0x2b   : > { %2202 = vmatmul.msk.f32.vlgmr.msra.gmra.mxu1 %vm2490_vm1, %v2485_v39  ;;  %2210 = vmatmul.msk.f32.vlgmr.msra.gmra.mxu2 %vm2490_vm1, %v2487_v40  ;;  %v365_v53 = vmax.f32 %v333_v35, 0.0  ;;  %v870_v35 = vld [vmem:[%s4002_s3 + $0x240] sm:$0xff] }
  0x2c   : > { %1168 = vmatpush.msrb.mxu2 %v845_v46  ;;  %2338 = vmatpush.msra.mxu3 %v798_v38  ;;  %v246_v46 = vld [vmem:[%s2428_s12 + $0x50] sm:$0xff] }
  0x2d   : > { %2218 = vmatmul.msk.f32.vlgmr.msra.gmra.mxu3 %vm2490_vm1, %v2499_v47  ;;  %1055 = vmatpush.msrb.mxu1 %v829_v48  ;;  %v254_v48 = vld [vmem:[%s2428_s12 + $0x90] sm:$0xff]  ;;  %v282_v61 = vmul.f32 %v2436_v8, %v246_v46  ;;  %v835_v46 = vld [vmem:[%s4002_s3 + $0x128] sm:$0xff] }
  0x2e   : > { %1281 = vmatpush.msrb.mxu3 %v861_v51  ;;  %1169 = vmatpush.msrb.mxu2 %v844_v52  ;;  %v340_v51 = vmax.f32 %v308_v33, 0.0  ;;  %v855_v52 = vld [vmem:[%s4002_s3 + $0x1c8] sm:$0xff]  ;;  %v290_v62 = vmul.f32 %v2436_v8, %v254_v48  ;;  %v239_v48 = vld [vmem:[%s2428_s12 + $0x18] sm:$0xff] }
  0x2f   : > { %1056 = vmatpush.msrb.mxu1 %v828_v57  ;;  %957 = vmatpush.msra.mxu0 %v798_v38  ;;  %v2615_v38 = vrot.slane %v356_v22, 7  ;;  %v309_v57 = vadd.f32 %v2451_v15, %v273_v36  ;;  %v318_v20 = vadd.f32 %v2451_v15, %v282_v61  ;;  %v871_v22 = vld [vmem:[%s4002_s3 + $0x248] sm:$0xff]  ;;  %v299_v36 = vmul.f32 %v2436_v8, %v263_v25  ;;  %v850_v61 = vld [vmem:[%s4002_s3 + $0x1a0] sm:$0xff] }
  0x30   : > { %1282 = vmatpush.msrb.mxu3 %v860_v59  ;;  %1170 = vmatpush.msrb.mxu2 %v843_v60  ;;  %v823_v59 = vld [vmem:[%s4002_s3 + $0xc8] sm:$0xff]  ;;  %v838_v60 = vld [vmem:[%s4002_s3 + $0x140] sm:$0xff]  ;;  %v2667_v5 = vrot.slane %v340_v51, 7  ;;  %v326_v21 = vadd.f32 %v2451_v15, %v290_v62  ;;  %v275_v62 = vmul.f32 %v2436_v8, %v239_v48  ;;  %v816_v48 = vld [vmem:[%s4002_s3 + $0x90] sm:$0xff] }
  0x31   : > { %958 = vmatmul.f32.vlgmr.msra.gmra.mxu0 %v4005_v12  ;;  %1057 = vmatpush.msrb.mxu1 %v827_v0  ;;  %4077 = vst [vmem:[#allocation8_spill] sm:$0xff] %v2615_v38  ;;  %v2653_v0 = vrot.slane %v349_v44, 7  ;;  %v341_v16 = vmax.f32 %v309_v57, 0.0  ;;  %v851_v51 = vld [vmem:[%s4002_s3 + $0x1a8] sm:$0xff] }
  0x32   : > { %1283 = vmatpush.msrb.mxu3 %v859_v2  ;;  %1394 = vmatpush.msrb.mxu0 %v877_v3  ;;  %v854_v2 = vld [vmem:[%s4002_s3 + $0x1c0] sm:$0xff]  ;;  %v872_v3 = vld [vmem:[%s4002_s3 + $0x250] sm:$0xff]  ;;  %v819_v57 = vld [vmem:[%s4002_s3 + $0xa8] sm:$0xff] }
  0x33   : > { %985 = vmatmul.f32.gmra.mxu1 %v2557_v9  ;;  %1009 = vmatmul.f32.gmra.mxu2 %v2562_v10  ;;  %v867_v25 = vld [vmem:[%s4002_s3 + $0x228] sm:$0xff] }
  0x34   : > { %1171 = vmatpush.msrb.mxu2 %v842_v13  ;;  %1284 = vmatpush.msrb.mxu3 %v858_v14  ;;  %v255_v13 = vld [vmem:[%s2428_s12 + $0x98] sm:$0xff]  ;;  %v2677_v14 = vrot.slane %v365_v53, 7  ;;  %v366_v53 = vmax.f32 %v334_v29, 0.0 }
  0x35   : > { %1033 = vmatmul.f32.gmra.mxu3 %v2577_v18  ;;  %1395 = vmatpush.msrb.mxu0 %v876_v19  ;;  %v238_v19 = vld [vmem:[%s2428_s12 + $0x10] sm:$0xff]  ;;  %v291_v28 = vmul.f32 %v2436_v8, %v255_v13  ;;  %v248_v13 = vld [vmem:[%s2428_s12 + $0x60] sm:$0xff] }
  0x36   : > { %1058 = vmatpush.msrb.mxu1 %v826_v23  ;;  %1172 = vmatpush.msrb.mxu2 %v841_v24  ;;  %v821_v23 = vld [vmem:[%s4002_s3 + $0xb8] sm:$0xff]  ;;  %v283_v24 = vmul.f32 %v2436_v8, %v247_v4  ;;  %v2718_v33 = vsel %vm404_vm0, %v2626_v49, %v2677_v14  ;;  %v284_v29 = vmul.f32 %v2436_v8, %v248_v13 }
  0x37   : > { %1285 = vmatpush.msrb.mxu3 %v857_v26  ;;  %1396 = vmatpush.msrb.mxu0 %v875_v27  ;;  %v2696_v26 = vsel %vm404_vm0, %v2613_v37, %v2653_v0  ;;  %v2701_v27 = vsel %vm404_vm0, %v2615_v38, %v2655_v1  ;;  %4080 = vst [vmem:[#allocation11_spill] sm:$0xff] %v2718_v33 }
  0x38   : > { %1059 = vmatpush.msrb.mxu1 %v825_v31  ;;  %1173 = vmatpush.msrb.mxu2 %v840_v32  ;;  %4078 = vst [vmem:[#allocation9_spill] sm:$0xff] %v2696_v26  ;;  %v852_v31 = vld [vmem:[%s4002_s3 + $0x1b0] sm:$0xff]  ;;  %v274_v32 = vmul.f32 %v2436_v8, %v238_v19  ;;  %v319_v44 = vadd.f32 %v2451_v15, %v283_v24  ;;  %v264_v24 = vld [vmem:[%s2428_s12 + $0xe0] sm:$0xff] }
  0x39   : > { %961 = vmatmul.f32.gmra.mxu0 %v4005_v12  ;;  %1286 = vmatpush.msrb.mxu3 %v856_v34  ;;  %4079 = vst [vmem:[#allocation10_spill] sm:$0xff] %v2701_v27  ;;  %v2720_v34 = vrot.slane %v341_v16, 7  ;;  %v256_v16 = vld [vmem:[%s2428_s12 + $0xa0] sm:$0xff] }
  0x3a   : > { %1397 = vmatpush.msrb.mxu0 %v874_v42  ;;  %1060 = vmatpush.msrb.mxu1 %v824_v43  ;;  %v350_v42 = vmax.f32 %v318_v20, 0.0  ;;  %v358_v43 = vmax.f32 %v326_v21, 0.0  ;;  %v351_v4 = vmax.f32 %v319_v44, 0.0  ;;  %v833_v20 = vld [vmem:[%s4002_s3 + $0x118] sm:$0xff] }
  0x3b   : > { %2204 = vmatmul.msk.f32.gmra.mxu1 %vm2490_vm1, %v2613_v37  ;;  %2212 = vmatmul.msk.f32.gmra.mxu2 %vm2490_vm1, %v2615_v38  ;;  %v849_v21 = vld [vmem:[%s4002_s3 + $0x198] sm:$0xff] }
  0x3c   : > { %1174 = vmatpush.msrb.mxu2 %v839_v50  ;;  %1287 = vmatpush.msrb.mxu3 %v855_v52  ;;  %v327_v50 = vadd.f32 %v2451_v15, %v291_v28  ;;  %v869_v52 = vld [vmem:[%s4002_s3 + $0x238] sm:$0xff]  ;;  %v2793_v28 = vrot.slane %v351_v4, 7  ;;  %v815_v4 = vld [vmem:[%s4002_s3 + $0x88] sm:$0xff] }
  0x3d   : > { %2220 = vmatmul.msk.f32.gmra.mxu3 %vm2490_vm1, %v2626_v49  ;;  %1398 = vmatpush.msrb.mxu0 %v873_v54  ;;  %v310_v54 = vadd.f32 %v2451_v15, %v274_v32  ;;  %v832_v32 = vld [vmem:[%s4002_s3 + $0x110] sm:$0xff] }
  0x3e   : > { %1061 = vmatpush.msrb.mxu1 %v823_v59  ;;  %1175 = vmatpush.msrb.mxu2 %v838_v60  ;;  %v2754_v59 = vsel %vm404_vm0, %v2667_v5, %v2720_v34  ;;  %v335_v60 = vadd.f32 %v2451_v15, %v299_v36  ;;  %v359_v11 = vmax.f32 %v327_v50, 0.0  ;;  %v848_v36 = vld [vmem:[%s4002_s3 + $0x190] sm:$0xff]  ;;  %v831_v50 = vld [vmem:[%s4002_s3 + $0x108] sm:$0xff] }
  0x3f   : > { %1288 = vmatpush.msrb.mxu3 %v854_v2  ;;  %1399 = vmatpush.msrb.mxu0 %v872_v3  ;;  %v2761_v2 = vrot.slane %v350_v42, 7  ;;  %v2763_v3 = vrot.slane %v358_v43, 7  ;;  %v342_v19 = vmax.f32 %v310_v54, 0.0  ;;  %v866_v42 = vld [vmem:[%s4002_s3 + $0x220] sm:$0xff]  ;;  %v249_v43 = vld [vmem:[%s2428_s12 + $0x68] sm:$0xff] }
  0x40   : > { %1062 = vmatpush.msrb.mxu1 %v822_v6  ;;  %1176 = vmatpush.msrb.mxu2 %v837_v7  ;;  %v868_v6 = vld [vmem:[%s4002_s3 + $0x230] sm:$0xff]  ;;  %v818_v7 = vld [vmem:[%s4002_s3 + $0xa0] sm:$0xff]  ;;  %v847_v54 = vld [vmem:[%s4002_s3 + $0x188] sm:$0xff] }
  0x41   : > { %2196 = vmatmul.msk.f32.gmra.mxu0 %vm2490_vm1, %v2667_v5  ;;  %1289 = vmatpush.msrb.mxu3 %v853_v17  ;;  %4081 = vst [vmem:[#allocation12_spill] sm:$0xff] %v2761_v2  ;;  %v2774_v17 = vrot.slane %v366_v53, 7  ;;  %v2815_v44 = vrot.slane %v342_v19, 7  ;;  %v240_v53 = vld [vmem:[%s2428_s12 + $0x20] sm:$0xff] }
  0x42   : > { %1400 = vmatpush.msrb.mxu0 %v871_v22  ;;  %1063 = vmatpush.msrb.mxu1 %v821_v23  ;;  %v367_v22 = vmax.f32 %v335_v60, 0.0  ;;  %v311_v23 = vadd.f32 %v2451_v15, %v275_v62  ;;  %v865_v62 = vld [vmem:[%s4002_s3 + $0x218] sm:$0xff]  ;;  %v830_v19 = vld [vmem:[%s4002_s3 + $0x100] sm:$0xff] }
  0x43   : > { %991 = vmatmul.f32.gmra.mxu1 %v2696_v26  ;;  %1015 = vmatmul.f32.gmra.mxu2 %v2701_v27  ;;  %4082 = vst [vmem:[#allocation13_spill] sm:$0xff] %v2774_v17 }
  0x44   : > { %1177 = vmatpush.msrb.mxu2 %v836_v30  ;;  %1290 = vmatpush.msrb.mxu3 %v852_v31  ;;  %v292_v30 = vmul.f32 %v2436_v8, %v256_v16  ;;  %v817_v31 = vld [vmem:[%s4002_s3 + $0x98] sm:$0xff]  ;;  %v276_v16 = vmul.f32 %v2436_v8, %v240_v53 }
  0x45   : > { %1039 = vmatmul.f32.gmra.mxu3 %v2718_v33  ;;  %1401 = vmatpush.msrb.mxu0 %v870_v35  ;;  %v2803_v35 = vrot.slane %v359_v11, 7 }
  0x46   : > { %1064 = vmatpush.msrb.mxu1 %v820_v45  ;;  %1178 = vmatpush.msrb.mxu2 %v835_v46  ;;  %v300_v45 = vmul.f32 %v2436_v8, %v264_v24  ;;  %v257_v46 = vld [vmem:[%s2428_s12 + $0xa8] sm:$0xff]  ;;  %v328_v60 = vadd.f32 %v2451_v15, %v292_v30  ;;  %v864_v24 = vld [vmem:[%s4002_s3 + $0x210] sm:$0xff]  ;;  %v814_v30 = vld [vmem:[%s4002_s3 + $0x80] sm:$0xff] }
  0x47   : > { %1291 = vmatpush.msrb.mxu3 %v851_v51  ;;  %1402 = vmatpush.msrb.mxu0 %v869_v52  ;;  %v2825_v51 = vrot.slane %v367_v22, 7  ;;  %v343_v52 = vmax.f32 %v311_v23, 0.0  ;;  %v293_v11 = vmul.f32 %v2436_v8, %v257_v46 }
  0x48   : > { %1065 = vmatpush.msrb.mxu1 %v819_v57  ;;  %1179 = vmatpush.msrb.mxu2 %v834_v58  ;;  %v2834_v57 = vsel %vm404_vm0, %v2761_v2, %v2793_v28  ;;  %v320_v58 = vadd.f32 %v2451_v15, %v284_v29  ;;  %v336_v13 = vadd.f32 %v2451_v15, %v300_v45  ;;  %v360_v29 = vmax.f32 %v328_v60, 0.0  ;;  %v925_v45 = vld [vmem:[%s4002_s3 + $0x3f8] sm:$0xff] }
  0x49   : > { %967 = vmatmul.f32.gmra.mxu0 %v2754_v59  ;;  %1292 = vmatpush.msrb.mxu3 %v850_v61  ;;  %4083 = vst [vmem:[#allocation14_spill] sm:$0xff] %v2834_v57  ;;  %v265_v61 = vld [vmem:[%s2428_s12 + $0xe8] sm:$0xff]  ;;  %v2868_v22 = vrot.slane %v343_v52, 7 }
  0x4a   : > { %1403 = vmatpush.msrb.mxu0 %v868_v6  ;;  %1066 = vmatpush.msrb.mxu1 %v818_v7  ;;  %v2848_v6 = vsel %vm404_vm0, %v2763_v3, %v2803_v35  ;;  %v285_v7 = vmul.f32 %v2436_v8, %v249_v43  ;;  %v301_v23 = vmul.f32 %v2436_v8, %v265_v61  ;;  %v863_v43 = vld [vmem:[%s4002_s3 + $0x208] sm:$0xff]  ;;  %v368_v46 = vmax.f32 %v336_v13, 0.0  ;;  %v862_v61 = vld [vmem:[%s4002_s3 + $0x200] sm:$0xff] }
  0x4b   : > { %2206 = vmatmul.msk.f32.gmra.mxu1 %vm2490_vm1, %v2761_v2  ;;  %2214 = vmatmul.msk.f32.gmra.mxu2 %vm2490_vm1, %v2763_v3  ;;  %4084 = vst [vmem:[#allocation15_spill] sm:$0xff] %v2848_v6  ;;  %v2899_v52 = vsel %vm404_vm0, %v2815_v44, %v2868_v22  ;;  %v2905_v60 = vrot.slane %v360_v29, 7 }
  0x4c   : > { %1180 = vmatpush.msrb.mxu2 %v833_v20  ;;  %1293 = vmatpush.msrb.mxu3 %v849_v21  ;;  %v846_v20 = vld [vmem:[%s4002_s3 + $0x180] sm:$0xff]  ;;  %v2866_v21 = vsel %vm404_vm0, %v2774_v17, %v2825_v51  ;;  %v337_v53 = vadd.f32 %v2451_v15, %v301_v23 }
  0x4d   : > { %2222 = vmatmul.msk.f32.gmra.mxu3 %vm2490_vm1, %v2774_v17  ;;  %1404 = vmatpush.msrb.mxu0 %v867_v25  ;;  %4085 = vst [vmem:[#allocation16_spill] sm:$0xff] %v2866_v21  ;;  %v352_v25 = vmax.f32 %v320_v58, 0.0 }
  0x4e   : > { %1067 = vmatpush.msrb.mxu1 %v817_v31  ;;  %1181 = vmatpush.msrb.mxu2 %v832_v32  ;;  %v909_v31 = vld [vmem:[%s4002_s3 + $0x378] sm:$0xff]  ;;  %v241_v32 = vld [vmem:[%s2428_s12 + $0x28] sm:$0xff]  ;;  %v369_v13 = vmax.f32 %v337_v53, 0.0 }
  0x4f   : > { %1294 = vmatpush.msrb.mxu3 %v848_v36  ;;  %1405 = vmatpush.msrb.mxu0 %v866_v42  ;;  %v321_v36 = vadd.f32 %v2451_v15, %v285_v7  ;;  %v329_v42 = vadd.f32 %v2451_v15, %v293_v11  ;;  %v2903_v58 = vrot.slane %v352_v25, 7  ;;  %v2911_v7 = vrot.slane %v368_v46, 7  ;;  %v892_v25 = vld [vmem:[%s4002_s3 + $0x2f0] sm:$0xff] }
  0x50   : > { %1068 = vmatpush.msrb.mxu1 %v816_v48  ;;  %1182 = vmatpush.msrb.mxu2 %v831_v50  ;;  %v312_v48 = vadd.f32 %v2451_v15, %v276_v16  ;;  %v893_v50 = vld [vmem:[%s4002_s3 + $0x2f8] sm:$0xff]  ;;  %v2941_v29 = vrot.slane %v369_v13, 7  ;;  %v2975_v46 = vrot.slane %v4005_v12, 1 }
  0x51   : > { %2198 = vmatmul.msk.f32.gmra.mxu0 %vm2490_vm1, %v2815_v44  ;;  %1295 = vmatpush.msrb.mxu3 %v847_v54  ;;  %v277_v54 = vmul.f32 %v2436_v8, %v241_v32  ;;  %4086 = vst [vmem:[#allocation17_spill] sm:$0xff] %v2903_v58  ;;  %v941_v8 = vld [vmem:[%s4002_s3 + $0x478] sm:$0xff] }
  0x52   : > { %1406 = vmatpush.msrb.mxu0 %v865_v62  ;;  %1069 = vmatpush.msrb.mxu1 %v815_v4  ;;  %v353_v62 = vmax.f32 %v321_v36, 0.0  ;;  %v361_v4 = vmax.f32 %v329_v42, 0.0  ;;  %v344_v11 = vmax.f32 %v312_v48, 0.0  ;;  %v2959_v36 = vsel %vm404_vm0, %v2911_v7, %v2941_v29  ;;  %4091 = vst [vmem:[#allocation22_spill] sm:$0xff] %v2975_v46 }
  0x53   : > { %997 = vmatmul.f32.gmra.mxu1 %v2834_v57  ;;  %1021 = vmatmul.f32.gmra.mxu2 %v2848_v6  ;;  %v313_v16 = vadd.f32 %v2451_v15, %v277_v54  ;;  %v2978_v48 = vrot.slane %v4005_v12, 2  ;;  %v568_v54 = vrot.slane %v2754_v59, 1 }
  0x54   : > { %1183 = vmatpush.msrb.mxu2 %v830_v19  ;;  %1296 = vmatpush.msrb.mxu3 %v846_v20  ;;  %v908_v19 = vld [vmem:[%s4002_s3 + $0x370] sm:$0xff]  ;;  %v2926_v20 = vrot.slane %v353_v62, 7  ;;  %v2928_v23 = vrot.slane %v361_v4, 7  ;;  %v2933_v15 = vrot.slane %v344_v11, 7  ;;  %v923_v62 = vld [vmem:[%s4002_s3 + $0x3e8] sm:$0xff] }
  0x55   : > { %1045 = vmatmul.f32.gmra.mxu3 %v2866_v21  ;;  %1407 = vmatpush.msrb.mxu0 %v864_v24  ;;  %v924_v24 = vld [vmem:[%s4002_s3 + $0x3f0] sm:$0xff]  ;;  %4092 = vst [vmem:[#allocation23_spill] sm:$0xff] %v2978_v48  ;;  %v891_v4 = vld [vmem:[%s4002_s3 + $0x2e8] sm:$0xff] }
  0x56   : > { %1070 = vmatpush.msrb.mxu1 %v814_v30  ;;  %1620 = vmatpush.msra.mxu2 %v909_v31  ;;  %4087 = vst [vmem:[#allocation18_spill] sm:$0xff] %v2933_v15  ;;  %v345_v30 = vmax.f32 %v313_v16, 0.0  ;;  %v2946_v31 = vsel %vm404_vm0, %v2903_v58, %v2926_v20  ;;  %v2951_v32 = vsel %vm404_vm0, %v2905_v60, %v2928_v23  ;;  %v677_v16 = vrot.slane %v2754_v59, 2 }
  0x57   : > { %1408 = vmatpush.msrb.mxu0 %v863_v43  ;;  %1733 = vmatpush.msra.mxu3 %v925_v45  ;;  %4088 = vst [vmem:[#allocation19_spill] sm:$0xff] %v2946_v31  ;;  %v940_v43 = vld [vmem:[%s4002_s3 + $0x470] sm:$0xff] }
  0x58   : > { %1507 = vmatpush.msra.mxu1 %v893_v50  ;;  %1621 = vmatpush.msra.mxu2 %v908_v19  ;;  %4089 = vst [vmem:[#allocation20_spill] sm:$0xff] %v2951_v32  ;;  %v2961_v42 = vrot.slane %v345_v30, 7  ;;  %v501_v50 = vsel %vm404_vm0, 0.0, %v2667_v5  ;;  %v939_v19 = vld [vmem:[%s4002_s3 + $0x468] sm:$0xff] }
  0x59   : > { %973 = vmatmul.f32.gmra.mxu0 %v2899_v52  ;;  %1734 = vmatpush.msra.mxu3 %v924_v24  ;;  %v567_v53 = vrot.slane %v501_v50, 1 }
  0x5a   : > { %1409 = vmatpush.msrb.mxu0 %v862_v61  ;;  %1508 = vmatpush.msra.mxu1 %v892_v25  ;;  %v2972_v45 = vsel %vm404_vm0, %v2933_v15, %v2961_v42  ;;  %v907_v61 = vld [vmem:[%s4002_s3 + $0x368] sm:$0xff] }
  0x5b   : > { %2208 = vmatmul.msk.f32.gmra.mxu1 %vm2490_vm1, %v2903_v58  ;;  %2216 = vmatmul.msk.f32.gmra.mxu2 %vm2490_vm1, %v2905_v60  ;;  %4090 = vst [vmem:[#allocation21_spill] sm:$0xff] %v2972_v45  ;;  %v569_v11 = vsel %vm564_vm2, %v567_v53, %v568_v54  ;;  %v922_v53 = vld [vmem:[%s4002_s3 + $0x3e0] sm:$0xff] }
  0x5c   : > { %1846 = vmatpush.msra.mxu0 %v941_v8  ;;  %1622 = vmatpush.msra.mxu2 %v907_v61  ;;  %v517_v8 = vsel %vm404_vm0, %v2720_v34, 0.0  ;;  %v502_v34 = vsel %vm404_vm0, 0.0, %v2815_v44 }
  0x5d   : > { %2224 = vmatmul.msk.f32.gmra.mxu3 %vm2490_vm1, %v2911_v7  ;;  %1509 = vmatpush.msra.mxu1 %v891_v4  ;;  %v570_v13 = vrot.slane %v517_v8, 1  ;;  %v572_v30 = vrot.slane %v502_v34, 1 }
  0x5e   : > { %1847 = vmatpush.msra.mxu0 %v940_v43  ;;  %1735 = vmatpush.msra.mxu3 %v923_v62  ;;  %v573_v43 = vrot.slane %v2899_v52, 1  ;;  %v518_v62 = vsel %vm404_vm0, %v2868_v22, 0.0 }
  0x5f   : > { %v571_v24 = vsel %vm564_vm2, %v568_v54, %v570_v13  ;;  %v890_v54 = vld [vmem:[%s4002_s3 + $0x2e0] sm:$0xff]  ;;  %v682_v13 = vrot.slane %v2899_v52, 2 }
  0x60   : > { %1848 = vmatpush.msra.mxu0 %v939_v19  ;;  %v3029_v61 = vsel %vm564_vm2, %v572_v30, %v573_v43  ;;  %1736 = vmatpush.msra.mxu3 %v922_v53  ;;  %v905_v30 = vld [vmem:[%s4002_s3 + $0x358] sm:$0xff] }
  0x61   : > { %2200 = vmatmul.msk.f32.gmra.mxu0 %vm2490_vm1, %v2933_v15  ;;  %1510 = vmatpush.msra.mxu1 %v890_v54  ;;  %v889_v53 = vld [vmem:[%s4002_s3 + $0x2d8] sm:$0xff]  ;;  %v519_v54 = vsel %vm404_vm0, %v2961_v42, 0.0 }
  0x62   : > { %v937_v42 = vld [vmem:[%s4002_s3 + $0x458] sm:$0xff] }
  0x63   : > { %1003 = vmatmul.f32.gmra.mxu1 %v2946_v31  ;;  %1027 = vmatmul.f32.gmra.mxu2 %v2951_v32 }
  0x64   : > { %1511 = vmatpush.msra.mxu1 %v889_v53  ;;  %v920_v53 = vld [vmem:[%s4002_s3 + $0x3d0] sm:$0xff] }
  0x65   : > { %1051 = vmatmul.f32.gmra.mxu3 %v2959_v36 }
  0x69   : > { %979 = vmatmul.f32.gmra.mxu0 %v2972_v45 }
  0x6b   : > { %1071 = vmatmul.f32.vlgmr.msrb.gmra.mxu1 %v2975_v46  ;;  %1184 = vmatmul.f32.vlgmr.msrb.gmra.mxu2 %v2978_v48 }
  0x6d   : > { %2226 = vmatmul.msk.f32.vlgmr.msrb.gmra.mxu3 %vm2490_vm1, %v2667_v5  ;;  %v676_v5 = vrot.slane %v501_v50, 2  ;;  %v679_v50 = vrot.slane %v517_v8, 2  ;;  %v681_v8 = vrot.slane %v502_v34, 2  ;;  %v578_v34 = vrot.slane %v2972_v45, 1 }
  0x6f   : > { %v3012_v25 = vsel %vm673_vm3, %v676_v5, %v677_v16  ;;  %v3034_v4 = vsel %vm673_vm3, %v677_v16, %v679_v50  ;;  %v938_v5 = vld [vmem:[%s4002_s3 + $0x460] sm:$0xff]  ;;  %v503_v16 = vsel %vm404_vm0, 0.0, %v2933_v15  ;;  %v3049_v19 = vsel %vm673_vm3, %v681_v8, %v682_v13 }
  0x70   : > { %1849 = vmatpush.msra.mxu0 %v938_v5  ;;  %v686_v8 = vrot.slane %v503_v16, 2  ;;  %v687_v5 = vrot.slane %v2972_v45, 2 }
  0x71   : > { %1410 = vmatmul.f32.vlgmr.msrb.gmra.mxu0 %v569_v11 }
  0x72   : > { %1850 = vmatpush.msra.mxu0 %v937_v42 }
  0x73   : > { %1074 = vmatmul.f32.gmra.mxu1 %v2975_v46  ;;  %1187 = vmatmul.f32.gmra.mxu2 %v2978_v48  ;;  %v588_v48 = vrot.slane %v2696_v26, 1 }
  0x75   : > { %1300 = vmatmul.f32.gmra.mxu3 %v2754_v59  ;;  %v906_v59 = vld [vmem:[%s4002_s3 + $0x360] sm:$0xff] }
  0x76   : > { %1623 = vmatpush.msra.mxu2 %v906_v59  ;;  %v921_v59 = vld [vmem:[%s4002_s3 + $0x3d8] sm:$0xff] }
  0x77   : > { %1737 = vmatpush.msra.mxu3 %v921_v59  ;;  %v689_v59 = vrot.slane %v519_v54, 2 }
  0x78   : > { %1624 = vmatpush.msra.mxu2 %v905_v30  ;;  %v3089_v30 = vsel %vm673_vm3, %v686_v8, %v687_v5  ;;  %v888_v8 = vld [vmem:[%s4002_s3 + $0x2d0] sm:$0xff] }
  0x79   : > { %1413 = vmatmul.f32.gmra.mxu0 %v571_v24  ;;  %4096 = vst [vmem:[#allocation27_spill] sm:$0xff] %v3089_v30  ;;  %1738 = vmatpush.msra.mxu3 %v920_v53  ;;  %v3113_v42 = vsel %vm673_vm3, %v687_v5, %v689_v59  ;;  %v692_v53 = vrot.slane %v2557_v9, 2  ;;  %v505_v5 = vsel %vm404_vm0, 0.0, %v2613_v37 }
  0x7a   : > { %1512 = vmatpush.msra.mxu1 %v888_v8  ;;  %4098 = vst [vmem:[#allocation29_spill] sm:$0xff] %v3113_v42 }
  0x7b   : > { %1077 = vmatmul.f32.gmra.mxu1 %v569_v11  ;;  %1190 = vmatmul.f32.gmra.mxu2 %v3012_v25  ;;  %v575_v11 = vrot.slane %v518_v62, 1 }
  0x7d   : > { %2228 = vmatmul.msk.f32.gmra.mxu3 %vm2490_vm1, %v2815_v44  ;;  %v3044_v22 = vsel %vm564_vm2, %v573_v43, %v575_v11  ;;  %v684_v43 = vrot.slane %v518_v62, 2  ;;  %v580_v11 = vrot.slane %v519_v54, 1  ;;  %v520_v54 = vsel %vm404_vm0, %v2519_v55, 0.0  ;;  %v936_v55 = vld [vmem:[%s4002_s3 + $0x450] sm:$0xff] }
  0x7e   : > { %1851 = vmatpush.msra.mxu0 %v936_v55 }
  0x7f   : > { %v3073_v62 = vsel %vm673_vm3, %v682_v13, %v684_v43  ;;  %v504_v13 = vsel %vm404_vm0, 0.0, %v2485_v39  ;;  %v583_v43 = vrot.slane %v2557_v9, 1 }
  0x80   : > { %4094 = vst [vmem:[#allocation25_spill] sm:$0xff] %v3073_v62 }
  0x81   : > { %1416 = vmatmul.f32.gmra.mxu0 %v3029_v61 }
  0x83   : > { %1080 = vmatmul.f32.gmra.mxu1 %v571_v24  ;;  %1193 = vmatmul.f32.gmra.mxu2 %v3034_v4  ;;  %v577_v24 = vrot.slane %v503_v16, 1  ;;  %v582_v16 = vrot.slane %v504_v13, 1 }
  0x85   : > { %1306 = vmatmul.f32.gmra.mxu3 %v2899_v52  ;;  %v3065_v50 = vsel %vm564_vm2, %v577_v24, %v578_v34  ;;  %v3084_v24 = vsel %vm564_vm2, %v578_v34, %v580_v11  ;;  %v904_v34 = vld [vmem:[%s4002_s3 + $0x350] sm:$0xff]  ;;  %v3105_v11 = vsel %vm564_vm2, %v582_v16, %v583_v43  ;;  %v691_v16 = vrot.slane %v504_v13, 2 }
  0x86   : > { %4093 = vst [vmem:[#allocation24_spill] sm:$0xff] %v3065_v50  ;;  %1625 = vmatpush.msra.mxu2 %v904_v34  ;;  %v585_v34 = vrot.slane %v520_v54, 1  ;;  %v587_v13 = vrot.slane %v505_v5, 1 }
  0x87   : > { %4095 = vst [vmem:[#allocation26_spill] sm:$0xff] %v3084_v24  ;;  %v3131_v12 = vsel %vm673_vm3, %v691_v16, %v692_v53  ;;  %v919_v16 = vld [vmem:[%s4002_s3 + $0x3c8] sm:$0xff] }
  0x88   : > { %4097 = vst [vmem:[#allocation28_spill] sm:$0xff] %v3105_v11  ;;  %v3124_v8 = vsel %vm564_vm2, %v583_v43, %v585_v34  ;;  %v903_v43 = vld [vmem:[%s4002_s3 + $0x348] sm:$0xff]  ;;  %v694_v34 = vrot.slane %v520_v54, 2  ;;  %1739 = vmatpush.msra.mxu3 %v919_v16  ;;  %v696_v16 = vrot.slane %v505_v5, 2 }
  0x89   : > { %1419 = vmatmul.f32.gmra.mxu0 %v3044_v22  ;;  %4099 = vst [vmem:[#allocation30_spill] sm:$0xff] %v3124_v8  ;;  %1626 = vmatpush.msra.mxu2 %v903_v43  ;;  %v887_v54 = vld [vmem:[%s4002_s3 + $0x2c8] sm:$0xff]  ;;  %v521_v43 = vsel %vm404_vm0, %v2653_v0, 0.0 }
  0x8a   : > { %4100 = vst [vmem:[#allocation31_spill] sm:$0xff] %v3131_v12  ;;  %1513 = vmatpush.msra.mxu1 %v887_v54  ;;  %v935_v0 = vld [vmem:[%s4002_s3 + $0x448] sm:$0xff] }
  0x8b   : > { %1083 = vmatmul.f32.gmra.mxu1 %v3029_v61  ;;  %1196 = vmatmul.f32.gmra.mxu2 %v3049_v19 }
  0x8c   : > { %1852 = vmatpush.msra.mxu0 %v935_v0 }
  0x8d   : > { %2230 = vmatmul.msk.f32.gmra.mxu3 %vm2490_vm1, %v2933_v15 }
  0x91   : > { %1422 = vmatmul.f32.gmra.mxu0 %v3065_v50 }
  0x93   : > { %1086 = vmatmul.f32.gmra.mxu1 %v3044_v22  ;;  %1199 = vmatmul.f32.gmra.mxu2 %v3073_v62 }
  0x95   : > { %1312 = vmatmul.f32.gmra.mxu3 %v2972_v45  ;;  %v702_v45 = vrot.slane %v2834_v57, 2 }
  0x99   : > { %1425 = vmatmul.f32.gmra.mxu0 %v3084_v24 }
  0x9b   : > { %1089 = vmatmul.f32.gmra.mxu1 %v3065_v50  ;;  %1202 = vmatmul.f32.gmra.mxu2 %v3089_v30 }
  0x9d   : > { %2232 = vmatmul.msk.f32.gmra.mxu3 %vm2490_vm1, %v2485_v39  ;;  %v697_v39 = vrot.slane %v2696_v26, 2 }
  0xa1   : > { %1428 = vmatmul.f32.gmra.mxu0 %v3105_v11 }
  0xa3   : > { %1092 = vmatmul.f32.gmra.mxu1 %v3084_v24  ;;  %1205 = vmatmul.f32.gmra.mxu2 %v3113_v42  ;;  %v593_v42 = vrot.slane %v2834_v57, 1 }
  0xa5   : > { %1318 = vmatmul.f32.gmra.mxu3 %v2557_v9  ;;  %v3151_v9 = vsel %vm564_vm2, %v587_v13, %v588_v48  ;;  %v590_v13 = vrot.slane %v521_v43, 1 }
  0xa6   : > { %4101 = vst [vmem:[#allocation32_spill] sm:$0xff] %v3151_v9 }
  0xa8   : > { %v3128_v59 = vpop.f32.mrf.mxu1 }
  0xa9   : > { %1431 = vmatmul.f32.gmra.mxu0 %v3124_v8 }
  0xab   : > { %1095 = vmatmul.f32.gmra.mxu1 %v3105_v11  ;;  %1208 = vmatmul.f32.gmra.mxu2 %v3131_v12  ;;  %v3163_v11 = vsel %vm673_vm3, %v692_v53, %v694_v34  ;;  %v3178_v34 = vsel %vm564_vm2, %v588_v48, %v590_v13  ;;  %v902_v48 = vld [vmem:[%s4002_s3 + $0x340] sm:$0xff]  ;;  %v699_v13 = vrot.slane %v521_v43, 2 }
  0xac   : > { %4103 = vst [vmem:[#allocation34_spill] sm:$0xff] %v3163_v11  ;;  %1627 = vmatpush.msra.mxu2 %v902_v48  ;;  %v886_v43 = vld [vmem:[%s4002_s3 + $0x2c0] sm:$0xff]  ;;  %v522_v48 = vsel %vm404_vm0, %v2793_v28, 0.0 }
  0xad   : > { %2234 = vmatmul.msk.f32.gmra.mxu3 %vm2490_vm1, %v2613_v37  ;;  %4104 = vst [vmem:[#allocation35_spill] sm:$0xff] %v3178_v34  ;;  %1514 = vmatpush.msra.mxu1 %v886_v43  ;;  %v3219_v24 = vsel %vm673_vm3, %v697_v39, %v699_v13  ;;  %v934_v28 = vld [vmem:[%s4002_s3 + $0x440] sm:$0xff] }
  0xae   : > { %v3146_v55 = vpop.f32.mrf.mxu2  ;;  %v3148_v46 = vpop.f32.mrf.mxu0  ;;  %4110 = vst [vmem:[#allocation41_spill] sm:$0xff] %v3219_v24  ;;  %1853 = vmatpush.msra.mxu0 %v934_v28 }
  0xb0   : > { %v3158_v37 = vpop.f32.mrf.mxu1  ;;  %v3160_v12 = vpop.f32.mrf.mxu3 }
  0xb1   : > { %4102 = vst [vmem:[#allocation33_spill] sm:$0xff] %v3160_v12  ;;  %1434 = vmatmul.f32.gmra.mxu0 %v3151_v9  ;;  %v506_v12 = vsel %vm404_vm0, 0.0, %v2761_v2 }
  0xb3   : > { %1098 = vmatmul.f32.gmra.mxu1 %v3124_v8  ;;  %1211 = vmatmul.f32.gmra.mxu2 %v3163_v11  ;;  %v592_v8 = vrot.slane %v506_v12, 1 }
  0xb5   : > { %1324 = vmatmul.f32.gmra.mxu3 %v2696_v26  ;;  %v3187_v26 = vsel %vm673_vm3, %v696_v16, %v697_v39  ;;  %v918_v16 = vld [vmem:[%s4002_s3 + $0x3c0] sm:$0xff] }
  0xb6   : > { %v3173_v54 = vpop.f32.mrf.mxu2  ;;  %v3175_v53 = vpop.f32.mrf.mxu0  ;;  %4106 = vst [vmem:[#allocation37_spill] sm:$0xff] %v3187_v26  ;;  %1740 = vmatpush.msra.mxu3 %v918_v16  ;;  %v701_v16 = vrot.slane %v506_v12, 2 }
  0xb8   : > { %v3182_v5 = vpop.f32.mrf.mxu1  ;;  %v3184_v11 = vpop.f32.mrf.mxu3 }
  0xb9   : > { %4105 = vst [vmem:[#allocation36_spill] sm:$0xff] %v3184_v11  ;;  %1437 = vmatmul.f32.gmra.mxu0 %v3178_v34 }
  0xbb   : > { %1101 = vmatmul.f32.gmra.mxu1 %v3151_v9  ;;  %1214 = vmatmul.f32.gmra.mxu2 %v3187_v26  ;;  %v3207_v26 = vsel %vm564_vm2, %v592_v8, %v593_v42  ;;  %v595_v8 = vrot.slane %v522_v48, 1 }
  0xbc   : > { %4108 = vst [vmem:[#allocation39_spill] sm:$0xff] %v3207_v26 }
  0xbd   : > { %2236 = vmatmul.msk.f32.gmra.mxu3 %vm2490_vm1, %v2761_v2  ;;  %v3234_v13 = vsel %vm564_vm2, %v593_v42, %v595_v8  ;;  %v901_v42 = vld [vmem:[%s4002_s3 + $0x338] sm:$0xff]  ;;  %v704_v8 = vrot.slane %v522_v48, 2  ;;  %v523_v48 = vsel %vm404_vm0, %v2926_v20, 0.0 }
  0xbe   : > { %v3202_v0 = vpop.f32.mrf.mxu2  ;;  %v3204_v11 = vpop.f32.mrf.mxu0  ;;  %4112 = vst [vmem:[#allocation43_spill] sm:$0xff] %v3234_v13  ;;  %1628 = vmatpush.msra.mxu2 %v901_v42  ;;  %v885_v42 = vld [vmem:[%s4002_s3 + $0x2b8] sm:$0xff] }
  0xbf   : > { %4107 = vst [vmem:[#allocation38_spill] sm:$0xff] %v3202_v0  ;;  %v3275_v30 = vsel %vm673_vm3, %v702_v45, %v704_v8  ;;  %1515 = vmatpush.msra.mxu1 %v885_v42  ;;  %v508_v42 = vsel %vm404_vm0, 0.0, %v2487_v40 }
  0xc0   : > { %v3214_v2 = vpop.f32.mrf.mxu1  ;;  %v3216_v9 = vpop.f32.mrf.mxu3  ;;  %4118 = vst [vmem:[#allocation49_spill] sm:$0xff] %v3275_v30 }
  0xc1   : > { %4109 = vst [vmem:[#allocation40_spill] sm:$0xff] %v3216_v9  ;;  %1440 = vmatmul.f32.gmra.mxu0 %v3207_v26  ;;  %v507_v9 = vsel %vm404_vm0, 0.0, %v2903_v58 }
  0xc2   : > { %v706_v20 = vrot.slane %v507_v9, 2 }
  0xc3   : > { %1104 = vmatmul.f32.gmra.mxu1 %v3178_v34  ;;  %1217 = vmatmul.f32.gmra.mxu2 %v3219_v24  ;;  %v597_v34 = vrot.slane %v507_v9, 1 }
  0xc5   : > { %1330 = vmatmul.f32.gmra.mxu3 %v2834_v57  ;;  %v3243_v57 = vsel %vm673_vm3, %v701_v16, %v702_v45  ;;  %v917_v16 = vld [vmem:[%s4002_s3 + $0x3b8] sm:$0xff] }
  0xc6   : > { %v3229_v43 = vpop.f32.mrf.mxu2  ;;  %v3231_v39 = vpop.f32.mrf.mxu0  ;;  %4114 = vst [vmem:[#allocation45_spill] sm:$0xff] %v3243_v57  ;;  %1741 = vmatpush.msra.mxu3 %v917_v16  ;;  %v707_v16 = vrot.slane %v2946_v31, 2 }
  0xc7   : > { %4111 = vst [vmem:[#allocation42_spill] sm:$0xff] %v3229_v43  ;;  %v598_v43 = vrot.slane %v2946_v31, 1 }
  0xc8   : > { %v3238_v12 = vpop.f32.mrf.mxu1  ;;  %v3240_v24 = vpop.f32.mrf.mxu3 }
  0xc9   : > { %4113 = vst [vmem:[#allocation44_spill] sm:$0xff] %v3240_v24  ;;  %1443 = vmatmul.f32.gmra.mxu0 %v3234_v13 }
  0xcb   : > { %1107 = vmatmul.f32.gmra.mxu1 %v3207_v26  ;;  %1220 = vmatmul.f32.gmra.mxu2 %v3243_v57  ;;  %v3263_v57 = vsel %vm564_vm2, %v597_v34, %v598_v43  ;;  %v600_v34 = vrot.slane %v523_v48, 1 }
  0xcc   : > { %4116 = vst [vmem:[#allocation47_spill] sm:$0xff] %v3263_v57 }
  0xcd   : > { %2238 = vmatmul.msk.f32.gmra.mxu3 %vm2490_vm1, %v2903_v58  ;;  %v3290_v8 = vsel %vm564_vm2, %v598_v43, %v600_v34  ;;  %v709_v43 = vrot.slane %v523_v48, 2  ;;  %v916_v34 = vld [vmem:[%s4002_s3 + $0x3b0] sm:$0xff]  ;;  %v524_v48 = vsel %vm404_vm0, %v2521_v56, 0.0  ;;  %v711_v56 = vrot.slane %v508_v42, 2 }
  0xce   : > { %v3258_v28 = vpop.f32.mrf.mxu2  ;;  %v3260_v24 = vpop.f32.mrf.mxu0  ;;  %4120 = vst [vmem:[#allocation51_spill] sm:$0xff] %v3290_v8  ;;  %1742 = vmatpush.msra.mxu3 %v916_v34  ;;  %v712_v34 = vrot.slane %v2562_v10, 2 }
  0xcf   : > { %4115 = vst [vmem:[#allocation46_spill] sm:$0xff] %v3258_v28  ;;  %v3331_v50 = vsel %vm673_vm3, %v707_v16, %v709_v43 }
  0xd0   : > { %v3270_v58 = vpop.f32.mrf.mxu1  ;;  %v3272_v26 = vpop.f32.mrf.mxu3  ;;  %4126 = vst [vmem:[#allocation57_spill] sm:$0xff] %v3331_v50 }
  0xd1   : > { %4117 = vst [vmem:[#allocation48_spill] sm:$0xff] %v3272_v26  ;;  %1446 = vmatmul.f32.gmra.mxu0 %v3263_v57  ;;  %v933_v26 = vld [vmem:[%s4002_s3 + $0x438] sm:$0xff] }
  0xd2   : > { %1854 = vmatpush.msra.mxu0 %v933_v26  ;;  %v900_v26 = vld [vmem:[%s4002_s3 + $0x330] sm:$0xff] }
  0xd3   : > { %1110 = vmatmul.f32.gmra.mxu1 %v3234_v13  ;;  %1223 = vmatmul.f32.gmra.mxu2 %v3275_v30  ;;  %v602_v13 = vrot.slane %v508_v42, 1 }
  0xd4   : > { %1629 = vmatpush.msra.mxu2 %v900_v26  ;;  %v884_v26 = vld [vmem:[%s4002_s3 + $0x2b0] sm:$0xff] }
  0xd5   : > { %1336 = vmatmul.f32.gmra.mxu3 %v2946_v31  ;;  %v3299_v31 = vsel %vm673_vm3, %v706_v20, %v707_v16  ;;  %1516 = vmatpush.msra.mxu1 %v884_v26  ;;  %v509_v26 = vsel %vm404_vm0, 0.0, %v2615_v38 }
  0xd6   : > { %v3285_v28 = vpop.f32.mrf.mxu2  ;;  %v3287_v45 = vpop.f32.mrf.mxu0  ;;  %4122 = vst [vmem:[#allocation53_spill] sm:$0xff] %v3299_v31 }
  0xd7   : > { %4119 = vst [vmem:[#allocation50_spill] sm:$0xff] %v3285_v28  ;;  %v603_v28 = vrot.slane %v2562_v10, 1 }
  0xd8   : > { %v3294_v9 = vpop.f32.mrf.mxu1  ;;  %v3296_v30 = vpop.f32.mrf.mxu3 }
  0xd9   : > { %4121 = vst [vmem:[#allocation52_spill] sm:$0xff] %v3296_v30  ;;  %1449 = vmatmul.f32.gmra.mxu0 %v3290_v8 }
  0xdb   : > { %1113 = vmatmul.f32.gmra.mxu1 %v3263_v57  ;;  %1226 = vmatmul.f32.gmra.mxu2 %v3299_v31  ;;  %v3319_v31 = vsel %vm564_vm2, %v602_v13, %v603_v28  ;;  %v605_v13 = vrot.slane %v524_v48, 1 }
  0xdc   : > { %4124 = vst [vmem:[#allocation55_spill] sm:$0xff] %v3319_v31 }
  0xdd   : > { %2240 = vmatmul.msk.f32.gmra.mxu3 %vm2490_vm1, %v2487_v40  ;;  %v3346_v43 = vsel %vm564_vm2, %v603_v28, %v605_v13  ;;  %v714_v28 = vrot.slane %v524_v48, 2  ;;  %v525_v48 = vsel %vm404_vm0, %v2655_v1, 0.0  ;;  %v716_v1 = vrot.slane %v509_v26, 2 }
  0xde   : > { %v3314_v20 = vpop.f32.mrf.mxu2  ;;  %v3316_v30 = vpop.f32.mrf.mxu0 }
  0xdf   : > { %4123 = vst [vmem:[#allocation54_spill] sm:$0xff] %v3314_v20 }
  0xe0   : > { %v3326_v40 = vpop.f32.mrf.mxu1  ;;  %v3328_v57 = vpop.f32.mrf.mxu3 }
  0xe1   : > { %4125 = vst [vmem:[#allocation56_spill] sm:$0xff] %v3328_v57  ;;  %1452 = vmatmul.f32.gmra.mxu0 %v3319_v31  ;;  %v932_v57 = vld [vmem:[%s4002_s3 + $0x430] sm:$0xff] }
  0xe2   : > { %1855 = vmatpush.msra.mxu0 %v932_v57  ;;  %v899_v57 = vld [vmem:[%s4002_s3 + $0x328] sm:$0xff] }
  0xe3   : > { %1116 = vmatmul.f32.gmra.mxu1 %v3290_v8  ;;  %1229 = vmatmul.f32.gmra.mxu2 %v3331_v50  ;;  %v607_v8 = vrot.slane %v509_v26, 1  ;;  %v510_v26 = vsel %vm404_vm0, 0.0, %v2763_v3 }
  0xe4   : > { %1630 = vmatpush.msra.mxu2 %v899_v57 }
  0xe5   : > { %1342 = vmatmul.f32.gmra.mxu3 %v2562_v10  ;;  %v3353_v10 = vsel %vm673_vm3, %v711_v56, %v712_v34  ;;  %v915_v56 = vld [vmem:[%s4002_s3 + $0x3a8] sm:$0xff] }
  0xe6   : > { %v3341_v20 = vpop.f32.mrf.mxu2  ;;  %v3343_v16 = vpop.f32.mrf.mxu0  ;;  %4129 = vst [vmem:[#allocation60_spill] sm:$0xff] %v3353_v10  ;;  %1743 = vmatpush.msra.mxu3 %v915_v56 }
  0xe7   : > { %4127 = vst [vmem:[#allocation58_spill] sm:$0xff] %v3341_v20  ;;  %v608_v20 = vrot.slane %v2701_v27, 1 }
  0xe8   : > { %v3350_v42 = vpop.f32.mrf.mxu3  ;;  %v1072_v50 = vpop.f32.mrf.mxu1 }
  0xe9   : > { %4128 = vst [vmem:[#allocation59_spill] sm:$0xff] %v3350_v42  ;;  %1455 = vmatmul.f32.gmra.mxu0 %v3346_v43  ;;  %v1073_v13 = vadd.f32 %v1072_v50, %v3148_v46  ;;  %v883_v46 = vld [vmem:[%s4002_s3 + $0x2a8] sm:$0xff] }
  0xea   : > { %1517 = vmatpush.msra.mxu1 %v883_v46 }
  0xeb   : > { %1119 = vmatmul.f32.gmra.mxu1 %v3319_v31  ;;  %1232 = vmatmul.f32.gmra.mxu2 %v3353_v10  ;;  %v3370_v10 = vsel %vm564_vm2, %v607_v8, %v608_v20  ;;  %v610_v8 = vrot.slane %v525_v48, 1 }
  0xed   : > { %2242 = vmatmul.msk.f32.gmra.mxu3 %vm2490_vm1, %v2615_v38  ;;  %v3378_v38 = vsel %vm673_vm3, %v712_v34, %v714_v28 }
  0xee   : > { %v1185_v42 = vpop.f32.mrf.mxu2  ;;  %v1411_v31 = vpop.f32.mrf.mxu0 }
  0xef   : > { %v1186_v0 = vadd.f32 %v1185_v42, %v1073_v13  ;;  %v717_v42 = vrot.slane %v2701_v27, 2 }
  0xf0   : > { %v1075_v50 = vpop.f32.mrf.mxu1  ;;  %v1298_v57 = vpop.f32.mrf.mxu3 }
  0xf1   : > { %v1299_v15 = vadd.f32 %v1298_v57, %v1186_v0  ;;  %1458 = vmatmul.f32.gmra.mxu0 %v3370_v10  ;;  %v1076_v13 = vadd.f32 %v1075_v50, %v3175_v53  ;;  %v931_v0 = vld [vmem:[%s4002_s3 + $0x428] sm:$0xff]  ;;  %v3397_v53 = vsel %vm673_vm3, %v716_v1, %v717_v42  ;;  %v612_v57 = vrot.slane %v510_v26, 1 }
  0xf2   : > { %1856 = vmatpush.msra.mxu0 %v931_v0 }
  0xf3   : > { %v3381_v62 = vadd.f32 %v1411_v31, %v1299_v15  ;;  %1122 = vmatmul.f32.gmra.mxu1 %v3346_v43  ;;  %1235 = vmatmul.f32.gmra.mxu2 %v3378_v38  ;;  %v3392_v15 = vsel %vm564_vm2, %v608_v20, %v610_v8  ;;  %v898_v20 = vld [vmem:[%s4002_s3 + $0x320] sm:$0xff]  ;;  %v719_v8 = vrot.slane %v525_v48, 2  ;;  %v526_v48 = vsel %vm404_vm0, %v2803_v35, 0.0 }
  0xf4   : > { %1631 = vmatpush.msra.mxu2 %v898_v20  ;;  %v721_v35 = vrot.slane %v510_v26, 2  ;;  %v511_v26 = vsel %vm404_vm0, 0.0, %v2905_v60 }
  0xf5   : > { %4130 = vst [vmem:[#allocation61_spill] sm:$0xff] %v3381_v62  ;;  %1348 = vmatmul.f32.gmra.mxu3 %v2701_v27  ;;  %v613_v62 = vrot.slane %v2848_v6, 1 }
  0xf6   : > { %v1188_v34 = vpop.f32.mrf.mxu2  ;;  %v1414_v28 = vpop.f32.mrf.mxu0 }
  0xf7   : > { %v1189_v31 = vadd.f32 %v1188_v34, %v1076_v13  ;;  %v914_v13 = vld [vmem:[%s4002_s3 + $0x3a0] sm:$0xff] }
  0xf8   : > { %v1078_v56 = vpop.f32.mrf.mxu1  ;;  %v1301_v46 = vpop.f32.mrf.mxu3  ;;  %1744 = vmatpush.msra.mxu3 %v914_v13 }
  0xf9   : > { %v1302_v50 = vadd.f32 %v1301_v46, %v1189_v31  ;;  %1461 = vmatmul.f32.gmra.mxu0 %v3392_v15  ;;  %v1079_v1 = vadd.f32 %v1078_v56, %v3204_v11  ;;  %v882_v11 = vld [vmem:[%s4002_s3 + $0x2a0] sm:$0xff] }
  0xfa   : > { %1518 = vmatpush.msra.mxu1 %v882_v11 }
  0xfb   : > { %v3401_v27 = vadd.f32 %v1414_v28, %v1302_v50  ;;  %1125 = vmatmul.f32.gmra.mxu1 %v3370_v10  ;;  %1238 = vmatmul.f32.gmra.mxu2 %v3397_v53  ;;  %v3416_v28 = vsel %vm564_vm2, %v612_v57, %v613_v62  ;;  %v3424_v50 = vsel %vm673_vm3, %v717_v42, %v719_v8  ;;  %v615_v57 = vrot.slane %v526_v48, 1  ;;  %v930_v42 = vld [vmem:[%s4002_s3 + $0x420] sm:$0xff] }
  0xfc   : > { %1857 = vmatpush.msra.mxu0 %v930_v42 }
  0xfd   : > { %4131 = vst [vmem:[#allocation62_spill] sm:$0xff] %v3401_v27  ;;  %2244 = vmatmul.msk.f32.gmra.mxu3 %vm2490_vm1, %v2763_v3 }
  0xfe   : > { %v1191_v0 = vpop.f32.mrf.mxu2  ;;  %v1417_v34 = vpop.f32.mrf.mxu0 }
  0xff   : > { %v1192_v31 = vadd.f32 %v1191_v0, %v1079_v1  ;;  %v722_v1 = vrot.slane %v2848_v6, 2 }
 0x100   : > { %v1081_v56 = vpop.f32.mrf.mxu1  ;;  %v1304_v46 = vpop.f32.mrf.mxu3 }
 0x101   : > { %v1305_v20 = vadd.f32 %v1304_v46, %v1192_v31  ;;  %1464 = vmatmul.f32.gmra.mxu0 %v3416_v28  ;;  %v1082_v13 = vadd.f32 %v1081_v56, %v3231_v39  ;;  %v3443_v39 = vsel %vm673_vm3, %v721_v35, %v722_v1 }
 0x103   : > { %v3427_v27 = vadd.f32 %v1417_v34, %v1305_v20  ;;  %1128 = vmatmul.f32.gmra.mxu1 %v3392_v15  ;;  %1241 = vmatmul.f32.gmra.mxu2 %v3424_v50  ;;  %v3438_v34 = vsel %vm564_vm2, %v613_v62, %v615_v57  ;;  %v617_v20 = vrot.slane %v511_v26, 1  ;;  %v897_v62 = vld [vmem:[%s4002_s3 + $0x318] sm:$0xff]  ;;  %v724_v57 = vrot.slane %v526_v48, 2 }
 0x104   : > { %1632 = vmatpush.msra.mxu2 %v897_v62  ;;  %v527_v48 = vsel %vm404_vm0, %v2928_v23, 0.0  ;;  %v726_v23 = vrot.slane %v511_v26, 2  ;;  %v512_v26 = vsel %vm404_vm0, 0.0, %v2499_v47 }
 0x105   : > { %4132 = vst [vmem:[#allocation63_spill] sm:$0xff] %v3427_v27  ;;  %1354 = vmatmul.f32.gmra.mxu3 %v2848_v6  ;;  %v618_v27 = vrot.slane %v2951_v32, 1 }
 0x106   : > { %v1194_v8 = vpop.f32.mrf.mxu2  ;;  %v1420_v0 = vpop.f32.mrf.mxu0 }
 0x107   : > { %v1195_v31 = vadd.f32 %v1194_v8, %v1082_v13  ;;  %v913_v13 = vld [vmem:[%s4002_s3 + $0x398] sm:$0xff] }
 0x108   : > { %v1084_v11 = vpop.f32.mrf.mxu1  ;;  %v1307_v46 = vpop.f32.mrf.mxu3  ;;  %1745 = vmatpush.msra.mxu3 %v913_v13 }
 0x109   : > { %v1308_v56 = vadd.f32 %v1307_v46, %v1195_v31  ;;  %1467 = vmatmul.f32.gmra.mxu0 %v3438_v34  ;;  %v1085_v35 = vadd.f32 %v1084_v11, %v3260_v24  ;;  %v881_v24 = vld [vmem:[%s4002_s3 + $0x298] sm:$0xff] }
 0x10a   : > { %1519 = vmatpush.msra.mxu1 %v881_v24 }
 0x10b   : > { %v3447_v6 = vadd.f32 %v1420_v0, %v1308_v56  ;;  %1131 = vmatmul.f32.gmra.mxu1 %v3416_v28  ;;  %1244 = vmatmul.f32.gmra.mxu2 %v3443_v39  ;;  %v3462_v0 = vsel %vm564_vm2, %v617_v20, %v618_v27  ;;  %v3470_v56 = vsel %vm673_vm3, %v722_v1, %v724_v57  ;;  %v620_v20 = vrot.slane %v527_v48, 1  ;;  %v929_v1 = vld [vmem:[%s4002_s3 + $0x418] sm:$0xff] }
 0x10c   : > { %1858 = vmatpush.msra.mxu0 %v929_v1 }
 0x10d   : > { %4133 = vst [vmem:[#allocation64_spill] sm:$0xff] %v3447_v6  ;;  %2246 = vmatmul.msk.f32.gmra.mxu3 %vm2490_vm1, %v2905_v60 }
 0x10e   : > { %v1197_v42 = vpop.f32.mrf.mxu2  ;;  %v1423_v8 = vpop.f32.mrf.mxu0 }
 0x10f   : > { %v1198_v31 = vadd.f32 %v1197_v42, %v1085_v35  ;;  %v727_v35 = vrot.slane %v2951_v32, 2 }
 0x110   : > { %v1087_v11 = vpop.f32.mrf.mxu1  ;;  %v1310_v46 = vpop.f32.mrf.mxu3 }
 0x111   : > { %v1311_v62 = vadd.f32 %v1310_v46, %v1198_v31  ;;  %1470 = vmatmul.f32.gmra.mxu0 %v3462_v0  ;;  %v1088_v13 = vadd.f32 %v1087_v11, %v3287_v45  ;;  %v3489_v45 = vsel %vm673_vm3, %v726_v23, %v727_v35 }
 0x113   : > { %v3473_v6 = vadd.f32 %v1423_v8, %v1311_v62  ;;  %1134 = vmatmul.f32.gmra.mxu1 %v3438_v34  ;;  %1247 = vmatmul.f32.gmra.mxu2 %v3470_v56  ;;  %v3484_v8 = vsel %vm564_vm2, %v618_v27, %v620_v20  ;;  %v622_v62 = vrot.slane %v512_v26, 1  ;;  %v896_v27 = vld [vmem:[%s4002_s3 + $0x310] sm:$0xff]  ;;  %v729_v20 = vrot.slane %v527_v48, 2 }
 0x114   : > { %1633 = vmatpush.msra.mxu2 %v896_v27  ;;  %v528_v48 = vsel %vm404_vm0, %v2538_v63, 0.0  ;;  %v731_v63 = vrot.slane %v512_v26, 2  ;;  %v513_v26 = vsel %vm404_vm0, 0.0, %v2626_v49 }
 0x115   : > { %4134 = vst [vmem:[#allocation65_spill] sm:$0xff] %v3473_v6  ;;  %1360 = vmatmul.f32.gmra.mxu3 %v2951_v32  ;;  %v623_v6 = vrot.slane %v2577_v18, 1 }
 0x116   : > { %v1200_v57 = vpop.f32.mrf.mxu2  ;;  %v1426_v42 = vpop.f32.mrf.mxu0 }
 0x117   : > { %v1201_v31 = vadd.f32 %v1200_v57, %v1088_v13  ;;  %v912_v13 = vld [vmem:[%s4002_s3 + $0x390] sm:$0xff] }
 0x118   : > { %v1090_v24 = vpop.f32.mrf.mxu1  ;;  %v1313_v46 = vpop.f32.mrf.mxu3  ;;  %1746 = vmatpush.msra.mxu3 %v912_v13 }
 0x119   : > { %v1314_v11 = vadd.f32 %v1313_v46, %v1201_v31  ;;  %1473 = vmatmul.f32.gmra.mxu0 %v3484_v8  ;;  %v1091_v23 = vadd.f32 %v1090_v24, %v3316_v30  ;;  %v880_v30 = vld [vmem:[%s4002_s3 + $0x290] sm:$0xff] }
 0x11a   : > { %1520 = vmatpush.msra.mxu1 %v880_v30 }
 0x11b   : > { %v3493_v32 = vadd.f32 %v1426_v42, %v1314_v11  ;;  %1137 = vmatmul.f32.gmra.mxu1 %v3462_v0  ;;  %1250 = vmatmul.f32.gmra.mxu2 %v3489_v45  ;;  %v3508_v42 = vsel %vm564_vm2, %v622_v62, %v623_v6  ;;  %v3516_v11 = vsel %vm673_vm3, %v727_v35, %v729_v20  ;;  %v625_v62 = vrot.slane %v528_v48, 1  ;;  %v928_v35 = vld [vmem:[%s4002_s3 + $0x410] sm:$0xff] }
 0x11c   : > { %1859 = vmatpush.msra.mxu0 %v928_v35 }
 0x11d   : > { %4135 = vst [vmem:[#allocation66_spill] sm:$0xff] %v3493_v32  ;;  %2248 = vmatmul.msk.f32.gmra.mxu3 %vm2490_vm1, %v2499_v47 }
 0x11e   : > { %v1203_v1 = vpop.f32.mrf.mxu2  ;;  %v1429_v57 = vpop.f32.mrf.mxu0 }
 0x11f   : > { %v1204_v31 = vadd.f32 %v1203_v1, %v1091_v23  ;;  %v732_v23 = vrot.slane %v2577_v18, 2 }
 0x120   : > { %v1093_v24 = vpop.f32.mrf.mxu1  ;;  %v1316_v46 = vpop.f32.mrf.mxu3 }
 0x121   : > { %v1317_v27 = vadd.f32 %v1316_v46, %v1204_v31  ;;  %1476 = vmatmul.f32.gmra.mxu0 %v3508_v42  ;;  %v1094_v13 = vadd.f32 %v1093_v24, %v3343_v16  ;;  %v3535_v16 = vsel %vm673_vm3, %v731_v63, %v732_v23 }
 0x123   : > { %v3519_v32 = vadd.f32 %v1429_v57, %v1317_v27  ;;  %1140 = vmatmul.f32.gmra.mxu1 %v3484_v8  ;;  %1253 = vmatmul.f32.gmra.mxu2 %v3516_v11  ;;  %v3530_v57 = vsel %vm564_vm2, %v623_v6, %v625_v62  ;;  %v627_v27 = vrot.slane %v513_v26, 1  ;;  %v895_v6 = vld [vmem:[%s4002_s3 + $0x308] sm:$0xff]  ;;  %v734_v62 = vrot.slane %v528_v48, 2 }
 0x124   : > { %1634 = vmatpush.msra.mxu2 %v895_v6  ;;  %v529_v48 = vsel %vm404_vm0, %v2677_v14, 0.0  ;;  %v736_v14 = vrot.slane %v513_v26, 2  ;;  %v514_v26 = vsel %vm404_vm0, 0.0, %v2774_v17 }
 0x125   : > { %4136 = vst [vmem:[#allocation67_spill] sm:$0xff] %v3519_v32  ;;  %1366 = vmatmul.f32.gmra.mxu3 %v2577_v18  ;;  %v628_v32 = vrot.slane %v2718_v33, 1 }
 0x126   : > { %v1206_v20 = vpop.f32.mrf.mxu2  ;;  %v1432_v1 = vpop.f32.mrf.mxu0 }
 0x127   : > { %v1207_v31 = vadd.f32 %v1206_v20, %v1094_v13  ;;  %v911_v13 = vld [vmem:[%s4002_s3 + $0x388] sm:$0xff] }
 0x128   : > { %v1096_v30 = vpop.f32.mrf.mxu1  ;;  %v1319_v46 = vpop.f32.mrf.mxu3  ;;  %1747 = vmatpush.msra.mxu3 %v911_v13 }
 0x129   : > { %v1320_v24 = vadd.f32 %v1319_v46, %v1207_v31  ;;  %1479 = vmatmul.f32.gmra.mxu0 %v3530_v57  ;;  %v1097_v63 = vadd.f32 %v1096_v30, %v3128_v59  ;;  %v879_v59 = vld [vmem:[%s4002_s3 + $0x288] sm:$0xff] }
 0x12a   : > { %1521 = vmatpush.msra.mxu1 %v879_v59 }
 0x12b   : > { %v3539_v18 = vadd.f32 %v1432_v1, %v1320_v24  ;;  %1143 = vmatmul.f32.gmra.mxu1 %v3508_v42  ;;  %1256 = vmatmul.f32.gmra.mxu2 %v3535_v16  ;;  %v3554_v1 = vsel %vm564_vm2, %v627_v27, %v628_v32  ;;  %v3562_v24 = vsel %vm673_vm3, %v732_v23, %v734_v62  ;;  %v630_v27 = vrot.slane %v529_v48, 1  ;;  %v927_v23 = vld [vmem:[%s4002_s3 + $0x408] sm:$0xff] }
 0x12c   : > { %1860 = vmatpush.msra.mxu0 %v927_v23 }
 0x12d   : > { %4137 = vst [vmem:[#allocation68_spill] sm:$0xff] %v3539_v18  ;;  %2250 = vmatmul.msk.f32.gmra.mxu3 %vm2490_vm1, %v2626_v49 }
 0x12e   : > { %v1209_v35 = vpop.f32.mrf.mxu2  ;;  %v1435_v20 = vpop.f32.mrf.mxu0 }
 0x12f   : > { %v1210_v31 = vadd.f32 %v1209_v35, %v1097_v63  ;;  %v737_v63 = vrot.slane %v2718_v33, 2 }
 0x130   : > { %v1099_v30 = vpop.f32.mrf.mxu1  ;;  %v1322_v46 = vpop.f32.mrf.mxu3 }
 0x131   : > { %v1323_v6 = vadd.f32 %v1322_v46, %v1210_v31  ;;  %1482 = vmatmul.f32.gmra.mxu0 %v3554_v1  ;;  %v1100_v13 = vadd.f32 %v1099_v30, %v3158_v37  ;;  %v3581_v37 = vsel %vm673_vm3, %v736_v14, %v737_v63 }
 0x133   : > { %v3565_v18 = vadd.f32 %v1435_v20, %v1323_v6  ;;  %1146 = vmatmul.f32.gmra.mxu1 %v3530_v57  ;;  %1259 = vmatmul.f32.gmra.mxu2 %v3562_v24  ;;  %v3576_v20 = vsel %vm564_vm2, %v628_v32, %v630_v27  ;;  %v632_v6 = vrot.slane %v514_v26, 1  ;;  %v894_v32 = vld [vmem:[%s4002_s3 + $0x300] sm:$0xff]  ;;  %v739_v27 = vrot.slane %v529_v48, 2 }
 0x134   : > { %1635 = vmatpush.msra.mxu2 %v894_v32  ;;  %v530_v48 = vsel %vm404_vm0, %v2825_v51, 0.0  ;;  %v741_v51 = vrot.slane %v514_v26, 2  ;;  %v515_v26 = vsel %vm404_vm0, 0.0, %v2911_v7 }
 0x135   : > { %4138 = vst [vmem:[#allocation69_spill] sm:$0xff] %v3565_v18  ;;  %1372 = vmatmul.f32.gmra.mxu3 %v2718_v33  ;;  %v633_v18 = vrot.slane %v2866_v21, 1 }
 0x136   : > { %v1212_v62 = vpop.f32.mrf.mxu2  ;;  %v1438_v35 = vpop.f32.mrf.mxu0 }
 0x137   : > { %v1213_v31 = vadd.f32 %v1212_v62, %v1100_v13  ;;  %v910_v13 = vld [vmem:[%s4002_s3 + $0x380] sm:$0xff] }
 0x138   : > { %v1102_v59 = vpop.f32.mrf.mxu1  ;;  %v1325_v46 = vpop.f32.mrf.mxu3  ;;  %1748 = vmatpush.msra.mxu3 %v910_v13 }
 0x139   : > { %v1326_v30 = vadd.f32 %v1325_v46, %v1213_v31  ;;  %1485 = vmatmul.f32.gmra.mxu0 %v3576_v20  ;;  %v1103_v14 = vadd.f32 %v1102_v59, %v3182_v5  ;;  %v878_v5 = vld [vmem:[%s4002_s3 + $0x280] sm:$0xff] }
 0x13a   : > { %1522 = vmatpush.msra.mxu1 %v878_v5  ;;  %v266_v5 = vld [vmem:[%s2428_s12 + $0xf0] sm:$0xff] }
 0x13b   : > { %v3585_v33 = vadd.f32 %v1438_v35, %v1326_v30  ;;  %1149 = vmatmul.f32.gmra.mxu1 %v3554_v1  ;;  %1262 = vmatmul.f32.gmra.mxu2 %v3581_v37  ;;  %v3600_v35 = vsel %vm564_vm2, %v632_v6, %v633_v18  ;;  %v3608_v30 = vsel %vm673_vm3, %v737_v63, %v739_v27  ;;  %v635_v6 = vrot.slane %v530_v48, 1  ;;  %v926_v63 = vld [vmem:[%s4002_s3 + $0x400] sm:$0xff] }
 0x13c   : > { %4140 = vst [vmem:[#allocation71_spill] sm:$0xff] %v3600_v35  ;;  %1861 = vmatpush.msra.mxu0 %v926_v63 }
 0x13d   : > { %4139 = vst [vmem:[#allocation70_spill] sm:$0xff] %v3585_v33  ;;  %2252 = vmatmul.msk.f32.gmra.mxu3 %vm2490_vm1, %v2774_v17 }
 0x13e   : > { %v1215_v23 = vpop.f32.mrf.mxu2  ;;  %v1441_v62 = vpop.f32.mrf.mxu0 }
 0x13f   : > { %v1216_v31 = vadd.f32 %v1215_v23, %v1103_v14  ;;  %v742_v14 = vrot.slane %v2866_v21, 2  ;;  %v267_v23 = vld [vmem:[%s2428_s12 + $0xf8] sm:$0xff] }
 0x140   : > { %v1105_v59 = vpop.f32.mrf.mxu1  ;;  %v1328_v46 = vpop.f32.mrf.mxu3 }
 0x141   : > { %v1329_v32 = vadd.f32 %v1328_v46, %v1216_v31  ;;  %1488 = vmatmul.f32.gmra.mxu0 %v3600_v35  ;;  %v1106_v33 = vadd.f32 %v1105_v59, %v3214_v2  ;;  %v2350_v2 = vld [vmem:[%s4000_s1] ss:$0 sm:$0xff] }
 0x142   : > { %v303_v59 = vmul.f32 %v2350_v2, %v267_v23  ;;  %v2351_v23 = vld [vmem:[%s4001_s2] ss:$0 sm:$0xff] }
 0x143   : > { %v3611_v13 = vadd.f32 %v1441_v62, %v1329_v32  ;;  %1152 = vmatmul.f32.gmra.mxu1 %v3576_v20  ;;  %1265 = vmatmul.f32.gmra.mxu2 %v3608_v30  ;;  %v3623_v62 = vsel %vm564_vm2, %v633_v18, %v635_v6  ;;  %v302_v18 = vmul.f32 %v2350_v2, %v266_v5  ;;  %v637_v6 = vrot.slane %v515_v26, 1 }
 0x145   : > { %4141 = vst [vmem:[#allocation72_spill] sm:$0xff] %v3611_v13  ;;  %1378 = vmatmul.f32.gmra.mxu3 %v2866_v21  ;;  %v3632_v21 = vsel %vm673_vm3, %v741_v51, %v742_v14  ;;  %v744_v51 = vrot.slane %v530_v48, 2  ;;  %v338_v5 = vadd.f32 %v2351_v23, %v302_v18 }
 0x146   : > { %v1218_v27 = vpop.f32.mrf.mxu2  ;;  %v1444_v31 = vpop.f32.mrf.mxu0  ;;  %4142 = vst [vmem:[#allocation73_spill] sm:$0xff] %v3632_v21 }
 0x147   : > { %v1219_v46 = vadd.f32 %v1218_v27, %v1106_v33  ;;  %v638_v33 = vrot.slane %v2959_v36, 1  ;;  %v339_v27 = vadd.f32 %v2351_v23, %v303_v59  ;;  %v3653_v48 = vsel %vm673_vm3, %v742_v14, %v744_v51 }
 0x148   : > { %v1108_v32 = vpop.f32.mrf.mxu1  ;;  %v1331_v13 = vpop.f32.mrf.mxu3 }
 0x149   : > { %v1332_v17 = vadd.f32 %v1331_v13, %v1219_v46  ;;  %1491 = vmatmul.f32.gmra.mxu0 %v3623_v62  ;;  %v1109_v13 = vadd.f32 %v1108_v32, %v3238_v12  ;;  %v370_v32 = vmax.f32 %v338_v5, 0.0 }
 0x14b   : > { %v3636_v63 = vadd.f32 %v1444_v31, %v1332_v17  ;;  %1155 = vmatmul.f32.gmra.mxu1 %v3600_v35  ;;  %1268 = vmatmul.f32.gmra.mxu2 %v3632_v21  ;;  %v3648_v31 = vsel %vm564_vm2, %v637_v6, %v638_v33  ;;  %v371_v21 = vmax.f32 %v339_v27, 0.0  ;;  %v3663_v14 = vrot.slane %v370_v32, 7 }
 0x14d   : > { %4143 = vst [vmem:[#allocation74_spill] sm:$0xff] %v3636_v63  ;;  %2254 = vmatmul.msk.f32.gmra.mxu3 %vm2490_vm1, %v2911_v7  ;;  %v531_v63 = vsel %vm404_vm0, %v2941_v29, 0.0  ;;  %v451_v6 = vrot.slane %v371_v21, 7  ;;  %v747_v29 = vrot.slane %v2959_v36, 2  ;;  %v3674_v21 = vsel %vm404_vm0, 0.0, %v3663_v14 }
 0x14e   : > { %v1221_v46 = vpop.f32.mrf.mxu2  ;;  %v1447_v17 = vpop.f32.mrf.mxu0  ;;  %v640_v18 = vrot.slane %v531_v63, 1 }
 0x14f   : > { %v1222_v2 = vadd.f32 %v1221_v46, %v1109_v13  ;;  %v746_v13 = vrot.slane %v515_v26, 2 }
 0x150   : > { %v1111_v35 = vpop.f32.mrf.mxu1  ;;  %v1334_v59 = vpop.f32.mrf.mxu3  ;;  %v3666_v5 = vsel %vm564_vm2, %v638_v33, %v640_v18  ;;  %v784_v33 = vrot.slane %v3674_v21, 1  ;;  %v749_v18 = vrot.slane %v531_v63, 2 }
 0x151   : > { %v1335_v12 = vadd.f32 %v1334_v59, %v1222_v2  ;;  %1494 = vmatmul.f32.gmra.mxu0 %v3648_v31  ;;  %v1112_v27 = vadd.f32 %v1111_v35, %v3270_v58  ;;  %v3670_v2 = vsel %vm404_vm0, %v3663_v14, %v451_v6  ;;  %v3677_v35 = vsel %vm673_vm3, %v746_v13, %v747_v29 }
 0x153   : > { %v3656_v23 = vadd.f32 %v1447_v17, %v1335_v12  ;;  %1158 = vmatmul.f32.gmra.mxu1 %v3623_v62  ;;  %1271 = vmatmul.f32.gmra.mxu2 %v3653_v48  ;;  %v785_v12 = vrot.slane %v3670_v2, 1 }
 0x155   : > { %4144 = vst [vmem:[#allocation75_spill] sm:$0xff] %v3656_v23  ;;  %1384 = vmatmul.f32.gmra.mxu3 %v2959_v36  ;;  %v3697_v23 = vsel %vm673_vm3, %v747_v29, %v749_v18 }
 0x156   : > { %v1224_v51 = vpop.f32.mrf.mxu2  ;;  %v1450_v46 = vpop.f32.mrf.mxu0 }
 0x157   : > { %v1225_v17 = vadd.f32 %v1224_v51, %v1112_v27 }
 0x158   : > { %v1114_v26 = vpop.f32.mrf.mxu1  ;;  %v1337_v58 = vpop.f32.mrf.mxu3 }
 0x159   : > { %v1338_v59 = vadd.f32 %v1337_v58, %v1225_v17  ;;  %1497 = vmatmul.f32.gmra.mxu0 %v3666_v5  ;;  %v1115_v27 = vadd.f32 %v1114_v26, %v3294_v9  ;;  %v3691_v17 = vsel %vm564_vm2, %v784_v33, %v785_v12 }
 0x15b   : > { %v3682_v32 = vadd.f32 %v1450_v46, %v1338_v59  ;;  %1161 = vmatmul.f32.gmra.mxu1 %v3648_v31  ;;  %1274 = vmatmul.f32.gmra.mxu2 %v3677_v35  ;;  %v3694_v46 = vsel %vm404_vm0, %v451_v6, 0.0 }
 0x15c   : > { %v787_v9 = vrot.slane %v3694_v46, 1  ;;  %v794_v41 = vrot.slane %v3694_v46, 2 }
 0x15d   : > { %4145 = vst [vmem:[#allocation76_spill] sm:$0xff] %v3682_v32  ;;  %2256 = vmatmul.msk.f32.gmra.mxu3 %vm2490_vm1, %v3663_v14 }
 0x15e   : > { %v1227_v13 = vpop.f32.mrf.mxu2  ;;  %v1453_v51 = vpop.f32.mrf.mxu0  ;;  %v3708_v29 = vsel %vm564_vm2, %v785_v12, %v787_v9 }
 0x15f   : > { %v1228_v58 = vadd.f32 %v1227_v13, %v1115_v27 }
 0x160   : > { %v1117_v59 = vpop.f32.mrf.mxu1  ;;  %v1340_v32 = vpop.f32.mrf.mxu3 }
 0x161   : > { %v1341_v63 = vadd.f32 %v1340_v32, %v1228_v58  ;;  %1500 = vmatmul.f32.gmra.mxu0 %v3691_v17  ;;  %v1118_v33 = vadd.f32 %v1117_v59, %v3326_v40 }
 0x163   : > { %v3701_v26 = vadd.f32 %v1453_v51, %v1341_v63  ;;  %1164 = vmatmul.f32.gmra.mxu1 %v3666_v5  ;;  %1277 = vmatmul.f32.gmra.mxu2 %v3697_v23 }
 0x165   : > { %1390 = vmatmul.f32.gmra.mxu3 %v3670_v2 }
 0x166   : > { %v1230_v6 = vpop.f32.mrf.mxu2  ;;  %v1456_v27 = vpop.f32.mrf.mxu0 }
 0x167   : > { %v1231_v32 = vadd.f32 %v1230_v6, %v1118_v33 }
 0x168   : > { %v1120_v18 = vpop.f32.mrf.mxu1  ;;  %v1343_v13 = vpop.f32.mrf.mxu3 }
 0x169   : > { %v1344_v58 = vadd.f32 %v1343_v13, %v1231_v32  ;;  %1503 = vmatmul.f32.gmra.mxu0 %v3708_v29  ;;  %v1121_v40 = vadd.f32 %v1120_v18, %v3146_v55 }
 0x16b   : > { %v3711_v51 = vadd.f32 %v1456_v27, %v1344_v58  ;;  %1523 = vmatmul.f32.vlgmr.msra.gmra.mxu1 %v3012_v25  ;;  %2258 = vmatmul.msk.f32.vlgmr.msra.gmra.mxu2 %vm2490_vm1, %v2815_v44  ;;  %v4146_v58 = vld [vmem:[#allocation25_spill] sm:$0xff] }
 0x16d   : > { %1749 = vmatmul.f32.vlgmr.msra.gmra.mxu3 %v3029_v61 }
 0x16e   : > { %v1233_v12 = vpop.f32.mrf.mxu2  ;;  %v1459_v59 = vpop.f32.mrf.mxu0 }
 0x16f   : > { %v1234_v63 = vadd.f32 %v1233_v12, %v1121_v40  ;;  %v4147_v12 = vld [vmem:[#allocation18_spill] sm:$0xff] }
 0x170   : > { %v1123_v9 = vpop.f32.mrf.mxu1  ;;  %v1346_v33 = vpop.f32.mrf.mxu3 }
 0x171   : > { %v1347_v6 = vadd.f32 %v1346_v33, %v1234_v63  ;;  %1862 = vmatmul.f32.vlgmr.msra.gmra.mxu0 %v3049_v19  ;;  %v1124_v44 = vadd.f32 %v1123_v9, %v3173_v54  ;;  %v4149_v54 = vld [vmem:[#allocation24_spill] sm:$0xff] }
 0x173   : > { %v3720_v27 = vadd.f32 %v1459_v59, %v1347_v6  ;;  %1526 = vmatmul.f32.gmra.mxu1 %v3034_v4  ;;  %1639 = vmatmul.f32.gmra.mxu2 %v2899_v52  ;;  %v4148_v52 = vld [vmem:[#allocation38_spill] sm:$0xff] }
 0x175   : > { %1752 = vmatmul.f32.gmra.mxu3 %v3044_v22 }
 0x176   : > { %v1236_v25 = vpop.f32.mrf.mxu2  ;;  %v1462_v61 = vpop.f32.mrf.mxu0 }
 0x177   : > { %v1237_v55 = vadd.f32 %v1236_v25, %v1124_v44  ;;  %v4150_v44 = vld [vmem:[#allocation27_spill] sm:$0xff] }
 0x178   : > { %v1126_v32 = vpop.f32.mrf.mxu1  ;;  %v1349_v18 = vpop.f32.mrf.mxu3 }
 0x179   : > { %v1350_v13 = vadd.f32 %v1349_v18, %v1237_v55  ;;  %1865 = vmatmul.f32.gmra.mxu0 %v4146_v58  ;;  %v1127_v4 = vadd.f32 %v1126_v32, %v4148_v52  ;;  %v4154_v18 = vld [vmem:[#allocation26_spill] sm:$0xff] }
 0x17b   : > { %v3727_v40 = vadd.f32 %v1462_v61, %v1350_v13  ;;  %1529 = vmatmul.f32.gmra.mxu1 %v3049_v19  ;;  %2260 = vmatmul.msk.f32.gmra.mxu2 %vm2490_vm1, %v4147_v12  ;;  %v4152_v19 = vld [vmem:[#allocation21_spill] sm:$0xff]  ;;  %v4153_v61 = vld [vmem:[#allocation42_spill] sm:$0xff] }
 0x17d   : > { %1755 = vmatmul.f32.gmra.mxu3 %v4149_v54 }
 0x17e   : > { %v1239_v22 = vpop.f32.mrf.mxu2  ;;  %v1465_v59 = vpop.f32.mrf.mxu0 }
 0x17f   : > { %v1240_v63 = vadd.f32 %v1239_v22, %v1127_v4  ;;  %v4155_v22 = vld [vmem:[#allocation29_spill] sm:$0xff] }
 0x180   : > { %v1129_v9 = vpop.f32.mrf.mxu1  ;;  %v1352_v33 = vpop.f32.mrf.mxu3 }
 0x181   : > { %v1353_v6 = vadd.f32 %v1352_v33, %v1240_v63  ;;  %1868 = vmatmul.f32.gmra.mxu0 %v4150_v44  ;;  %v1130_v55 = vadd.f32 %v1129_v9, %v4153_v61  ;;  %v4159_v33 = vld [vmem:[#allocation28_spill] sm:$0xff] }
 0x183   : > { %v3736_v25 = vadd.f32 %v1465_v59, %v1353_v6  ;;  %1532 = vmatmul.f32.gmra.mxu1 %v4146_v58  ;;  %1645 = vmatmul.f32.gmra.mxu2 %v4152_v19  ;;  %v4157_v59 = vld [vmem:[#allocation2_spill] sm:$0xff] }
 0x184   : > { %v4158_v58 = vld [vmem:[#allocation46_spill] sm:$0xff] }
 0x185   : > { %4151 = vst [vmem:[#allocation25_spill] sm:$0xff] %v3736_v25  ;;  %1758 = vmatmul.f32.gmra.mxu3 %v4154_v18  ;;  %v4165_v25 = vld [vmem:[#allocation34_spill] sm:$0xff] }
 0x186   : > { %v1242_v32 = vpop.f32.mrf.mxu2  ;;  %v1468_v13 = vpop.f32.mrf.mxu0 }
 0x187   : > { %v1243_v12 = vadd.f32 %v1242_v32, %v1130_v55 }
 0x188   : > { %v1132_v52 = vpop.f32.mrf.mxu1  ;;  %v1355_v4 = vpop.f32.mrf.mxu3 }
 0x189   : > { %v1356_v54 = vadd.f32 %v1355_v4, %v1243_v12  ;;  %1871 = vmatmul.f32.gmra.mxu0 %v4155_v22  ;;  %v1133_v9 = vadd.f32 %v1132_v52, %v4158_v58  ;;  %v4160_v12 = vld [vmem:[#allocation31_spill] sm:$0xff]  ;;  %v4163_v4 = vld [vmem:[#allocation50_spill] sm:$0xff] }
 0x18b   : > { %v3743_v63 = vadd.f32 %v1468_v13, %v1356_v54  ;;  %1535 = vmatmul.f32.gmra.mxu1 %v4150_v44  ;;  %2262 = vmatmul.msk.f32.gmra.mxu2 %vm2490_vm1, %v4157_v59  ;;  %v4162_v44 = vld [vmem:[#allocation4_spill] sm:$0xff]  ;;  %v4164_v59 = vld [vmem:[#allocation30_spill] sm:$0xff] }
 0x18d   : > { %4156 = vst [vmem:[#allocation18_spill] sm:$0xff] %v3743_v63  ;;  %1761 = vmatmul.f32.gmra.mxu3 %v4159_v33 }
 0x18e   : > { %v1245_v6 = vpop.f32.mrf.mxu2  ;;  %v1471_v19 = vpop.f32.mrf.mxu0 }
 0x18f   : > { %v1246_v61 = vadd.f32 %v1245_v6, %v1133_v9 }
 0x190   : > { %v1135_v55 = vpop.f32.mrf.mxu1  ;;  %v1358_v18 = vpop.f32.mrf.mxu3 }
 0x191   : > { %v1359_v32 = vadd.f32 %v1358_v18, %v1246_v61  ;;  %1874 = vmatmul.f32.gmra.mxu0 %v4160_v12  ;;  %v1136_v54 = vadd.f32 %v1135_v55, %v4163_v4  ;;  %v4169_v18 = vld [vmem:[#allocation32_spill] sm:$0xff] }
 0x193   : > { %v3752_v13 = vadd.f32 %v1471_v19, %v1359_v32  ;;  %1538 = vmatmul.f32.gmra.mxu1 %v4155_v22  ;;  %1651 = vmatmul.f32.gmra.mxu2 %v4162_v44  ;;  %v4167_v19 = vld [vmem:[#allocation7_spill] sm:$0xff]  ;;  %v4168_v22 = vld [vmem:[#allocation54_spill] sm:$0xff] }
 0x195   : > { %4161 = vst [vmem:[#allocation38_spill] sm:$0xff] %v3752_v13  ;;  %1764 = vmatmul.f32.gmra.mxu3 %v4164_v59  ;;  %v4175_v13 = vld [vmem:[#allocation41_spill] sm:$0xff] }
 0x196   : > { %v1248_v52 = vpop.f32.mrf.mxu2  ;;  %v1474_v58 = vpop.f32.mrf.mxu0 }
 0x197   : > { %v1249_v33 = vadd.f32 %v1248_v52, %v1136_v54 }
 0x198   : > { %v1138_v63 = vpop.f32.mrf.mxu1  ;;  %v1361_v9 = vpop.f32.mrf.mxu3 }
 0x199   : > { %v1362_v6 = vadd.f32 %v1361_v9, %v1249_v33  ;;  %1877 = vmatmul.f32.gmra.mxu0 %v4165_v25  ;;  %v1139_v55 = vadd.f32 %v1138_v63, %v4168_v22  ;;  %v4170_v33 = vld [vmem:[#allocation37_spill] sm:$0xff]  ;;  %v4173_v9 = vld [vmem:[#allocation58_spill] sm:$0xff] }
 0x19b   : > { %v3759_v61 = vadd.f32 %v1474_v58, %v1362_v6  ;;  %1541 = vmatmul.f32.gmra.mxu1 %v4160_v12  ;;  %2264 = vmatmul.msk.f32.gmra.mxu2 %vm2490_vm1, %v4167_v19  ;;  %v4172_v12 = vld [vmem:[#allocation9_spill] sm:$0xff]  ;;  %v4174_v19 = vld [vmem:[#allocation35_spill] sm:$0xff] }
 0x19d   : > { %4166 = vst [vmem:[#allocation24_spill] sm:$0xff] %v3759_v61  ;;  %1767 = vmatmul.f32.gmra.mxu3 %v4169_v18 }
 0x19e   : > { %v1251_v32 = vpop.f32.mrf.mxu2  ;;  %v1477_v44 = vpop.f32.mrf.mxu0 }
 0x19f   : > { %v1252_v4 = vadd.f32 %v1251_v32, %v1139_v55 }
 0x1a0   : > { %v1141_v54 = vpop.f32.mrf.mxu1  ;;  %v1364_v59 = vpop.f32.mrf.mxu3 }
 0x1a1   : > { %v1365_v52 = vadd.f32 %v1364_v59, %v1252_v4  ;;  %1880 = vmatmul.f32.gmra.mxu0 %v4170_v33  ;;  %v1142_v6 = vadd.f32 %v1141_v54, %v4173_v9  ;;  %v4179_v59 = vld [vmem:[#allocation39_spill] sm:$0xff] }
 0x1a3   : > { %v3768_v58 = vadd.f32 %v1477_v44, %v1365_v52  ;;  %1544 = vmatmul.f32.gmra.mxu1 %v4165_v25  ;;  %1657 = vmatmul.f32.gmra.mxu2 %v4172_v12  ;;  %v4177_v44 = vld [vmem:[#allocation12_spill] sm:$0xff]  ;;  %v4178_v25 = vld [vmem:[#allocation33_spill] sm:$0xff] }
 0x1a5   : > { %4171 = vst [vmem:[#allocation27_spill] sm:$0xff] %v3768_v58  ;;  %1770 = vmatmul.f32.gmra.mxu3 %v4174_v19  ;;  %v4185_v58 = vld [vmem:[#allocation49_spill] sm:$0xff] }
 0x1a6   : > { %v1254_v63 = vpop.f32.mrf.mxu2  ;;  %v1480_v22 = vpop.f32.mrf.mxu0 }
 0x1a7   : > { %v1255_v18 = vadd.f32 %v1254_v63, %v1142_v6 }
 0x1a8   : > { %v1144_v61 = vpop.f32.mrf.mxu1  ;;  %v1367_v55 = vpop.f32.mrf.mxu3 }
 0x1a9   : > { %v1368_v32 = vadd.f32 %v1367_v55, %v1255_v18  ;;  %1883 = vmatmul.f32.gmra.mxu0 %v4175_v13  ;;  %v1145_v54 = vadd.f32 %v1144_v61, %v4178_v25  ;;  %v4180_v18 = vld [vmem:[#allocation45_spill] sm:$0xff]  ;;  %v4183_v55 = vld [vmem:[#allocation36_spill] sm:$0xff] }
 0x1ab   : > { %v3775_v4 = vadd.f32 %v1480_v22, %v1368_v32  ;;  %1547 = vmatmul.f32.gmra.mxu1 %v4170_v33  ;;  %2266 = vmatmul.msk.f32.gmra.mxu2 %vm2490_vm1, %v4177_v44  ;;  %v4182_v33 = vld [vmem:[#allocation14_spill] sm:$0xff]  ;;  %v4184_v44 = vld [vmem:[#allocation43_spill] sm:$0xff] }
 0x1ad   : > { %4176 = vst [vmem:[#allocation21_spill] sm:$0xff] %v3775_v4  ;;  %1773 = vmatmul.f32.gmra.mxu3 %v4179_v59 }
 0x1ae   : > { %v1257_v52 = vpop.f32.mrf.mxu2  ;;  %v1483_v12 = vpop.f32.mrf.mxu0 }
 0x1af   : > { %v1258_v9 = vadd.f32 %v1257_v52, %v1145_v54 }
 0x1b0   : > { %v1147_v6 = vpop.f32.mrf.mxu1  ;;  %v1370_v19 = vpop.f32.mrf.mxu3 }
 0x1b1   : > { %v1371_v63 = vadd.f32 %v1370_v19, %v1258_v9  ;;  %1886 = vmatmul.f32.gmra.mxu0 %v4180_v18  ;;  %v1148_v32 = vadd.f32 %v1147_v6, %v4183_v55  ;;  %v4189_v19 = vld [vmem:[#allocation47_spill] sm:$0xff] }
 0x1b3   : > { %v3784_v22 = vadd.f32 %v1483_v12, %v1371_v63  ;;  %1550 = vmatmul.f32.gmra.mxu1 %v4175_v13  ;;  %1663 = vmatmul.f32.gmra.mxu2 %v4182_v33  ;;  %v4187_v12 = vld [vmem:[#allocation17_spill] sm:$0xff]  ;;  %v4188_v13 = vld [vmem:[#allocation40_spill] sm:$0xff] }
 0x1b5   : > { %4181 = vst [vmem:[#allocation42_spill] sm:$0xff] %v3784_v22  ;;  %1776 = vmatmul.f32.gmra.mxu3 %v4184_v44  ;;  %v4194_v22 = vld [vmem:[#allocation57_spill] sm:$0xff] }
 0x1b6   : > { %v1260_v61 = vpop.f32.mrf.mxu2  ;;  %v1486_v25 = vpop.f32.mrf.mxu0 }
 0x1b7   : > { %v1261_v59 = vadd.f32 %v1260_v61, %v1148_v32 }
 0x1b8   : > { %v1150_v4 = vpop.f32.mrf.mxu1  ;;  %v1373_v54 = vpop.f32.mrf.mxu3 }
 0x1b9   : > { %v1374_v52 = vadd.f32 %v1373_v54, %v1261_v59  ;;  %1889 = vmatmul.f32.gmra.mxu0 %v4185_v58  ;;  %v1151_v6 = vadd.f32 %v1150_v4, %v4188_v13  ;;  %v4190_v59 = vld [vmem:[#allocation53_spill] sm:$0xff]  ;;  %v4192_v54 = vld [vmem:[#allocation44_spill] sm:$0xff] }
 0x1bb   : > { %v3791_v9 = vadd.f32 %v1486_v25, %v1374_v52  ;;  %1553 = vmatmul.f32.gmra.mxu1 %v4180_v18  ;;  %2268 = vmatmul.msk.f32.gmra.mxu2 %vm2490_vm1, %v4187_v12  ;;  %v4191_v18 = vld [vmem:[#allocation19_spill] sm:$0xff] }
 0x1bc   : > { %v4193_v12 = vld [vmem:[#allocation51_spill] sm:$0xff] }
 0x1bd   : > { %4186 = vst [vmem:[#allocation26_spill] sm:$0xff] %v3791_v9  ;;  %1779 = vmatmul.f32.gmra.mxu3 %v4189_v19 }
 0x1be   : > { %v1263_v63 = vpop.f32.mrf.mxu2  ;;  %v1489_v33 = vpop.f32.mrf.mxu0 }
 0x1bf   : > { %v1264_v55 = vadd.f32 %v1263_v63, %v1151_v6 }
 0x1c0   : > { %v1153_v32 = vpop.f32.mrf.mxu1  ;;  %v1376_v44 = vpop.f32.mrf.mxu3 }
 0x1c1   : > { %v1377_v61 = vadd.f32 %v1376_v44, %v1264_v55  ;;  %1892 = vmatmul.f32.gmra.mxu0 %v4190_v59  ;;  %v1154_v52 = vadd.f32 %v1153_v32, %v4192_v54  ;;  %v4197_v44 = vld [vmem:[#allocation55_spill] sm:$0xff] }
 0x1c3   : > { %v3800_v25 = vadd.f32 %v1489_v33, %v1377_v61  ;;  %1556 = vmatmul.f32.gmra.mxu1 %v4185_v58  ;;  %1669 = vmatmul.f32.gmra.mxu2 %v4191_v18  ;;  %v4195_v33 = vld [vmem:[#allocation3_spill] sm:$0xff]  ;;  %v4196_v58 = vld [vmem:[#allocation48_spill] sm:$0xff] }
 0x1c5   : > { %1782 = vmatmul.f32.gmra.mxu3 %v4193_v12 }
 0x1c6   : > { %v1266_v4 = vpop.f32.mrf.mxu2  ;;  %v1492_v13 = vpop.f32.mrf.mxu0 }
 0x1c7   : > { %v1267_v19 = vadd.f32 %v1266_v4, %v1154_v52 }
 0x1c8   : > { %v1156_v9 = vpop.f32.mrf.mxu1  ;;  %v1379_v6 = vpop.f32.mrf.mxu3 }
 0x1c9   : > { %v1380_v63 = vadd.f32 %v1379_v6, %v1267_v19  ;;  %1895 = vmatmul.f32.gmra.mxu0 %v4194_v22  ;;  %v1157_v32 = vadd.f32 %v1156_v9, %v4196_v58  ;;  %v4198_v19 = vld [vmem:[#allocation60_spill] sm:$0xff] }
 0x1ca   : > { %v4200_v6 = vld [vmem:[#allocation52_spill] sm:$0xff] }
 0x1cb   : > { %v3807_v55 = vadd.f32 %v1492_v13, %v1380_v63  ;;  %1559 = vmatmul.f32.gmra.mxu1 %v4190_v59  ;;  %2270 = vmatmul.msk.f32.gmra.mxu2 %vm2490_vm1, %v4195_v33  ;;  %v4199_v59 = vld [vmem:[#allocation5_spill] sm:$0xff] }
 0x1cd   : > { %1785 = vmatmul.f32.gmra.mxu3 %v4197_v44 }
 0x1ce   : > { %v1269_v61 = vpop.f32.mrf.mxu2  ;;  %v1495_v18 = vpop.f32.mrf.mxu0 }
 0x1cf   : > { %v1270_v54 = vadd.f32 %v1269_v61, %v1157_v32 }
 0x1d0   : > { %v1159_v52 = vpop.f32.mrf.mxu1  ;;  %v1382_v12 = vpop.f32.mrf.mxu3 }
 0x1d1   : > { %v1383_v4 = vadd.f32 %v1382_v12, %v1270_v54  ;;  %1898 = vmatmul.f32.gmra.mxu0 %v4198_v19  ;;  %v1160_v63 = vadd.f32 %v1159_v52, %v4200_v6 }
 0x1d3   : > { %v3816_v13 = vadd.f32 %v1495_v18, %v1383_v4  ;;  %1562 = vmatmul.f32.gmra.mxu1 %v4194_v22  ;;  %1675 = vmatmul.f32.gmra.mxu2 %v4199_v59  ;;  %v4201_v18 = vld [vmem:[#allocation8_spill] sm:$0xff] }
 0x1d4   : > { %v4202_v22 = vld [vmem:[#allocation56_spill] sm:$0xff] }
 0x1d5   : > { %1788 = vmatmul.f32.gmra.mxu3 %v3346_v43 }
 0x1d6   : > { %v1272_v9 = vpop.f32.mrf.mxu2  ;;  %v1498_v33 = vpop.f32.mrf.mxu0 }
 0x1d7   : > { %v1273_v58 = vadd.f32 %v1272_v9, %v1160_v63 }
 0x1d8   : > { %v1162_v44 = vpop.f32.mrf.mxu1  ;;  %v1385_v32 = vpop.f32.mrf.mxu3 }
 0x1d9   : > { %v1386_v61 = vadd.f32 %v1385_v32, %v1273_v58  ;;  %1901 = vmatmul.f32.gmra.mxu0 %v3378_v38  ;;  %v1163_v52 = vadd.f32 %v1162_v44, %v4202_v22 }
 0x1db   : > { %v3823_v54 = vadd.f32 %v1498_v33, %v1386_v61  ;;  %1565 = vmatmul.f32.gmra.mxu1 %v4198_v19  ;;  %2272 = vmatmul.msk.f32.gmra.mxu2 %vm2490_vm1, %v4201_v18  ;;  %v4203_v19 = vld [vmem:[#allocation10_spill] sm:$0xff]  ;;  %v4204_v33 = vld [vmem:[#allocation59_spill] sm:$0xff] }
 0x1dd   : > { %1791 = vmatmul.f32.gmra.mxu3 %v3370_v10 }
 0x1de   : > { %v1275_v43 = vpop.f32.mrf.mxu2  ;;  %v1501_v12 = vpop.f32.mrf.mxu0 }
 0x1df   : > { %v1276_v4 = vadd.f32 %v1275_v43, %v1163_v52 }
 0x1e0   : > { %v1165_v59 = vpop.f32.mrf.mxu1  ;;  %v1388_v6 = vpop.f32.mrf.mxu3 }
 0x1e1   : > { %v1389_v63 = vadd.f32 %v1388_v6, %v1276_v4  ;;  %1904 = vmatmul.f32.gmra.mxu0 %v3397_v53  ;;  %v1166_v58 = vadd.f32 %v1165_v59, %v4204_v33 }
 0x1e3   : > { %v3832_v9 = vadd.f32 %v1501_v12, %v1389_v63  ;;  %1568 = vmatmul.f32.gmra.mxu1 %v3378_v38  ;;  %1681 = vmatmul.f32.gmra.mxu2 %v4203_v19  ;;  %v4205_v38 = vld [vmem:[#allocation61_spill] sm:$0xff] }
 0x1e5   : > { %1794 = vmatmul.f32.gmra.mxu3 %v3392_v15 }
 0x1e6   : > { %v1278_v44 = vpop.f32.mrf.mxu2  ;;  %v1504_v10 = vpop.f32.mrf.mxu0 }
 0x1e7   : > { %v1279_v32 = vadd.f32 %v1278_v44, %v1166_v58 }
 0x1e8   : > { %v1391_v61 = vpop.f32.mrf.mxu3  ;;  %v1524_v18 = vpop.f32.mrf.mxu1 }
 0x1e9   : > { %v1392_v22 = vadd.f32 %v1391_v61, %v1279_v32  ;;  %1907 = vmatmul.f32.gmra.mxu0 %v3424_v50  ;;  %v1525_v43 = vadd.f32 %v1524_v18, %v4205_v38 }
 0x1eb   : > { %v3839_v52 = vadd.f32 %v1504_v10, %v1392_v22  ;;  %1571 = vmatmul.f32.gmra.mxu1 %v3397_v53  ;;  %2274 = vmatmul.msk.f32.gmra.mxu2 %vm2490_vm1, %v2763_v3  ;;  %v4206_v53 = vld [vmem:[#allocation15_spill] sm:$0xff] }
 0x1ec   : > { %v4208_v22 = vld [vmem:[#allocation63_spill] sm:$0xff] }
 0x1ed   : > { %1797 = vmatmul.f32.gmra.mxu3 %v3416_v28  ;;  %v4207_v28 = vld [vmem:[#allocation62_spill] sm:$0xff] }
 0x1ee   : > { %v1637_v15 = vpop.f32.mrf.mxu2  ;;  %v1863_v12 = vpop.f32.mrf.mxu0 }
 0x1ef   : > { %v1638_v4 = vadd.f32 %v1637_v15, %v1525_v43 }
 0x1f0   : > { %v1527_v59 = vpop.f32.mrf.mxu1  ;;  %v1750_v6 = vpop.f32.mrf.mxu3 }
 0x1f1   : > { %v1751_v63 = vadd.f32 %v1750_v6, %v1638_v4  ;;  %1910 = vmatmul.f32.gmra.mxu0 %v3443_v39  ;;  %v1528_v19 = vadd.f32 %v1527_v59, %v4207_v28  ;;  %v4210_v28 = vld [vmem:[#allocation64_spill] sm:$0xff] }
 0x1f3   : > { %v1864_v3 = vadd.f32 %v1863_v12, %v1751_v63  ;;  %1574 = vmatmul.f32.gmra.mxu1 %v3424_v50  ;;  %1687 = vmatmul.f32.gmra.mxu2 %v4206_v53 }
 0x1f5   : > { %1959 = vst [vmem:[%s3853_s25] sm:$0xff] %v1864_v3  ;;  %1800 = vmatmul.f32.gmra.mxu3 %v3438_v34  ;;  %v2028_v50 = vmul.f32 %v1864_v3, %v1864_v3 }
 0x1f6   : > { %v1640_v33 = vpop.f32.mrf.mxu2  ;;  %v1866_v58 = vpop.f32.mrf.mxu0 }
 0x1f7   : > { %v1641_v44 = vadd.f32 %v1640_v33, %v1528_v19 }
 0x1f8   : > { %v1530_v10 = vpop.f32.mrf.mxu1  ;;  %v1753_v32 = vpop.f32.mrf.mxu3 }
 0x1f9   : > { %v1754_v61 = vadd.f32 %v1753_v32, %v1641_v44  ;;  %1913 = vmatmul.f32.gmra.mxu0 %v3470_v56  ;;  %v1531_v38 = vadd.f32 %v1530_v10, %v4208_v22 }
 0x1fb   : > { %v1867_v18 = vadd.f32 %v1866_v58, %v1754_v61  ;;  %1577 = vmatmul.f32.gmra.mxu1 %v3443_v39  ;;  %2276 = vmatmul.msk.f32.gmra.mxu2 %vm2490_vm1, %v2905_v60  ;;  %v4209_v60 = vld [vmem:[#allocation20_spill] sm:$0xff] }
 0x1fd   : > { %1960 = vst [vmem:[%s3853_s25 + $0x8] sm:$0xff] %v1867_v18  ;;  %v1991_v34 = vadd.f32 %v1867_v18, %v1864_v3  ;;  %v2029_v43 = vmul.f32 %v1867_v18, %v1867_v18  ;;  %1803 = vmatmul.f32.gmra.mxu3 %v3462_v0 }
 0x1fe   : > { %v1643_v15 = vpop.f32.mrf.mxu2  ;;  %v1869_v12 = vpop.f32.mrf.mxu0 }
 0x1ff   : > { %v2060_v4 = vadd.f32 %v2029_v43, %v2028_v50  ;;  %v1644_v59 = vadd.f32 %v1643_v15, %v1531_v38  ;;  %v4211_v50 = vld [vmem:[#allocation65_spill] sm:$0xff] }
 0x200   : > { %v1533_v6 = vpop.f32.mrf.mxu1  ;;  %v1756_v63 = vpop.f32.mrf.mxu3 }
 0x201   : > { %v1757_v39 = vadd.f32 %v1756_v63, %v1644_v59  ;;  %1916 = vmatmul.f32.gmra.mxu0 %v3489_v45  ;;  %v1534_v19 = vadd.f32 %v1533_v6, %v4210_v28  ;;  %v4213_v63 = vld [vmem:[#allocation66_spill] sm:$0xff] }
 0x203   : > { %v1870_v53 = vadd.f32 %v1869_v12, %v1757_v39  ;;  %1580 = vmatmul.f32.gmra.mxu1 %v3470_v56  ;;  %1693 = vmatmul.f32.gmra.mxu2 %v4209_v60 }
 0x205   : > { %1961 = vst [vmem:[%s3853_s25 + $0x10] sm:$0xff] %v1870_v53  ;;  %v1992_v3 = vadd.f32 %v1991_v34, %v1870_v53  ;;  %v2030_v0 = vmul.f32 %v1870_v53, %v1870_v53  ;;  %1806 = vmatmul.f32.gmra.mxu3 %v3484_v8 }
 0x206   : > { %v1646_v33 = vpop.f32.mrf.mxu2  ;;  %v1872_v58 = vpop.f32.mrf.mxu0 }
 0x207   : > { %v2061_v44 = vadd.f32 %v2060_v4, %v2030_v0  ;;  %v1647_v10 = vadd.f32 %v1646_v33, %v1534_v19 }
 0x208   : > { %v1536_v32 = vpop.f32.mrf.mxu1  ;;  %v1759_v61 = vpop.f32.mrf.mxu3 }
 0x209   : > { %v1760_v18 = vadd.f32 %v1759_v61, %v1647_v10  ;;  %1919 = vmatmul.f32.gmra.mxu0 %v3516_v11  ;;  %v1537_v22 = vadd.f32 %v1536_v32, %v4211_v50 }
 0x20b   : > { %v1873_v56 = vadd.f32 %v1872_v58, %v1760_v18  ;;  %1583 = vmatmul.f32.gmra.mxu1 %v3489_v45  ;;  %2278 = vmatmul.msk.f32.gmra.mxu2 %vm2490_vm1, %v2499_v47  ;;  %v4212_v47 = vld [vmem:[#allocation6_spill] sm:$0xff] }
 0x20d   : > { %1962 = vst [vmem:[%s3853_s25 + $0x18] sm:$0xff] %v1873_v56  ;;  %v1993_v8 = vadd.f32 %v1992_v3, %v1873_v56  ;;  %v2031_v38 = vmul.f32 %v1873_v56, %v1873_v56  ;;  %1809 = vmatmul.f32.gmra.mxu3 %v3508_v42 }
 0x20e   : > { %v1649_v34 = vpop.f32.mrf.mxu2  ;;  %v1875_v43 = vpop.f32.mrf.mxu0 }
 0x20f   : > { %v2062_v15 = vadd.f32 %v2061_v44, %v2031_v38  ;;  %v1650_v12 = vadd.f32 %v1649_v34, %v1537_v22  ;;  %v4214_v44 = vld [vmem:[#allocation67_spill] sm:$0xff]  ;;  %v4216_v34 = vld [vmem:[#allocation68_spill] sm:$0xff] }
 0x210   : > { %v1539_v4 = vpop.f32.mrf.mxu1  ;;  %v1762_v59 = vpop.f32.mrf.mxu3 }
 0x211   : > { %v1763_v6 = vadd.f32 %v1762_v59, %v1650_v12  ;;  %1922 = vmatmul.f32.gmra.mxu0 %v3535_v16  ;;  %v1540_v39 = vadd.f32 %v1539_v4, %v4213_v63 }
 0x213   : > { %v1876_v45 = vadd.f32 %v1875_v43, %v1763_v6  ;;  %1586 = vmatmul.f32.gmra.mxu1 %v3516_v11  ;;  %1699 = vmatmul.f32.gmra.mxu2 %v4212_v47 }
 0x215   : > { %1963 = vst [vmem:[%s3853_s25 + $0x20] sm:$0xff] %v1876_v45  ;;  %v1994_v53 = vadd.f32 %v1993_v8, %v1876_v45  ;;  %v2032_v42 = vmul.f32 %v1876_v45, %v1876_v45  ;;  %1812 = vmatmul.f32.gmra.mxu3 %v3530_v57 }
 0x216   : > { %v1652_v60 = vpop.f32.mrf.mxu2  ;;  %v1878_v28 = vpop.f32.mrf.mxu0 }
 0x217   : > { %v2063_v19 = vadd.f32 %v2062_v15, %v2032_v42  ;;  %v1653_v3 = vadd.f32 %v1652_v60, %v1540_v39  ;;  %v4217_v39 = vld [vmem:[#allocation13_spill] sm:$0xff] }
 0x218   : > { %v1542_v0 = vpop.f32.mrf.mxu1  ;;  %v1765_v33 = vpop.f32.mrf.mxu3 }
 0x219   : > { %v1766_v58 = vadd.f32 %v1765_v33, %v1653_v3  ;;  %1925 = vmatmul.f32.gmra.mxu0 %v3562_v24  ;;  %v1543_v10 = vadd.f32 %v1542_v0, %v4214_v44 }
 0x21b   : > { %v1879_v11 = vadd.f32 %v1878_v28, %v1766_v58  ;;  %1589 = vmatmul.f32.gmra.mxu1 %v3535_v16  ;;  %2280 = vmatmul.msk.f32.gmra.mxu2 %vm2490_vm1, %v2626_v49  ;;  %v4215_v49 = vld [vmem:[#allocation11_spill] sm:$0xff] }
 0x21c   : > { %v4219_v28 = vld [vmem:[#allocation71_spill] sm:$0xff] }
 0x21d   : > { %1964 = vst [vmem:[%s3853_s25 + $0x28] sm:$0xff] %v1879_v11  ;;  %v1995_v57 = vadd.f32 %v1994_v53, %v1879_v11  ;;  %v2033_v32 = vmul.f32 %v1879_v11, %v1879_v11  ;;  %1815 = vmatmul.f32.gmra.mxu3 %v3554_v1  ;;  %v4218_v53 = vld [vmem:[#allocation69_spill] sm:$0xff] }
 0x21e   : > { %v1655_v61 = vpop.f32.mrf.mxu2  ;;  %v1881_v18 = vpop.f32.mrf.mxu0 }
 0x21f   : > { %v2064_v56 = vadd.f32 %v2063_v19, %v2033_v32  ;;  %v1656_v50 = vadd.f32 %v1655_v61, %v1543_v10  ;;  %v4222_v32 = vld [vmem:[#allocation70_spill] sm:$0xff] }
 0x220   : > { %v1545_v22 = vpop.f32.mrf.mxu1  ;;  %v1768_v8 = vpop.f32.mrf.mxu3 }
 0x221   : > { %v1769_v38 = vadd.f32 %v1768_v8, %v1656_v50  ;;  %1928 = vmatmul.f32.gmra.mxu0 %v3581_v37  ;;  %v1546_v43 = vadd.f32 %v1545_v22, %v4216_v34 }
 0x223   : > { %v1882_v16 = vadd.f32 %v1881_v18, %v1769_v38  ;;  %1592 = vmatmul.f32.gmra.mxu1 %v3562_v24  ;;  %1705 = vmatmul.f32.gmra.mxu2 %v4215_v49 }
 0x225   : > { %1965 = vst [vmem:[%s3853_s25 + $0x30] sm:$0xff] %v1882_v16  ;;  %v1996_v15 = vadd.f32 %v1995_v57, %v1882_v16  ;;  %v2034_v1 = vmul.f32 %v1882_v16, %v1882_v16  ;;  %1818 = vmatmul.f32.gmra.mxu3 %v3576_v20  ;;  %v4221_v57 = vld [vmem:[#allocation16_spill] sm:$0xff] }
 0x226   : > { %v1658_v12 = vpop.f32.mrf.mxu2  ;;  %v1884_v4 = vpop.f32.mrf.mxu0 }
 0x227   : > { %v2065_v59 = vadd.f32 %v2064_v56, %v2034_v1  ;;  %v1659_v6 = vadd.f32 %v1658_v12, %v1546_v43  ;;  %v4223_v43 = vld [vmem:[#allocation72_spill] sm:$0xff] }
 0x228   : > { %v1548_v45 = vpop.f32.mrf.mxu1  ;;  %v1771_v47 = vpop.f32.mrf.mxu3 }
 0x229   : > { %v1772_v63 = vadd.f32 %v1771_v47, %v1659_v6  ;;  %1931 = vmatmul.f32.gmra.mxu0 %v3608_v30  ;;  %v1549_v42 = vadd.f32 %v1548_v45, %v4218_v53 }
 0x22b   : > { %v1885_v24 = vadd.f32 %v1884_v4, %v1772_v63  ;;  %1595 = vmatmul.f32.gmra.mxu1 %v3581_v37  ;;  %2282 = vmatmul.msk.f32.gmra.mxu2 %vm2490_vm1, %v4217_v39  ;;  %v4220_v37 = vld [vmem:[#allocation73_spill] sm:$0xff] }
 0x22d   : > { %1966 = vst [vmem:[%s3853_s25 + $0x38] sm:$0xff] %v1885_v24  ;;  %v1997_v20 = vadd.f32 %v1996_v15, %v1885_v24  ;;  %v2035_v60 = vmul.f32 %v1885_v24, %v1885_v24  ;;  %1821 = vmatmul.f32.gmra.mxu3 %v4219_v28 }
 0x22e   : > { %v1661_v19 = vpop.f32.mrf.mxu2  ;;  %v1887_v3 = vpop.f32.mrf.mxu0 }
 0x22f   : > { %v2066_v0 = vadd.f32 %v2065_v59, %v2035_v60  ;;  %v1662_v33 = vadd.f32 %v1661_v19, %v1549_v42 }
 0x230   : > { %v1551_v58 = vpop.f32.mrf.mxu1  ;;  %v1774_v11 = vpop.f32.mrf.mxu3 }
 0x231   : > { %v1775_v44 = vadd.f32 %v1774_v11, %v1662_v33  ;;  %1934 = vmatmul.f32.gmra.mxu0 %v4220_v37  ;;  %v1552_v61 = vadd.f32 %v1551_v58, %v4222_v32 }
 0x233   : > { %v1888_v10 = vadd.f32 %v1887_v3, %v1775_v44  ;;  %1598 = vmatmul.f32.gmra.mxu1 %v3608_v30  ;;  %1711 = vmatmul.f32.gmra.mxu2 %v4221_v57 }
 0x235   : > { %1967 = vst [vmem:[%s3853_s25 + $0x40] sm:$0xff] %v1888_v10  ;;  %v1998_v18 = vadd.f32 %v1997_v20, %v1888_v10  ;;  %v2036_v56 = vmul.f32 %v1888_v10, %v1888_v10  ;;  %1824 = vmatmul.f32.gmra.mxu3 %v3623_v62 }
 0x236   : > { %v1664_v50 = vpop.f32.mrf.mxu2  ;;  %v1890_v22 = vpop.f32.mrf.mxu0 }
 0x237   : > { %v2067_v8 = vadd.f32 %v2066_v0, %v2036_v56  ;;  %v1665_v38 = vadd.f32 %v1664_v50, %v1552_v61  ;;  %v4226_v56 = vld [vmem:[#allocation76_spill] sm:$0xff] }
 0x238   : > { %v1554_v16 = vpop.f32.mrf.mxu1  ;;  %v1777_v49 = vpop.f32.mrf.mxu3 }
 0x239   : > { %v1778_v34 = vadd.f32 %v1777_v49, %v1665_v38  ;;  %1937 = vmatmul.f32.gmra.mxu0 %v3653_v48  ;;  %v1555_v15 = vadd.f32 %v1554_v16, %v4223_v43 }
 0x23b   : > { %v1891_v30 = vadd.f32 %v1890_v22, %v1778_v34  ;;  %1601 = vmatmul.f32.gmra.mxu1 %v4220_v37  ;;  %2284 = vmatmul.msk.f32.gmra.mxu2 %vm2490_vm1, %v2911_v7  ;;  %v4224_v7 = vld [vmem:[#allocation74_spill] sm:$0xff] }
 0x23d   : > { %1968 = vst [vmem:[%s3853_s25 + $0x48] sm:$0xff] %v1891_v30  ;;  %v1999_v62 = vadd.f32 %v1998_v18, %v1891_v30  ;;  %v2037_v1 = vmul.f32 %v1891_v30, %v1891_v30  ;;  %1827 = vmatmul.f32.gmra.mxu3 %v3648_v31 }
 0x23e   : > { %v1667_v12 = vpop.f32.mrf.mxu2  ;;  %v1893_v4 = vpop.f32.mrf.mxu0 }
 0x23f   : > { %v2068_v59 = vadd.f32 %v2067_v8, %v2037_v1  ;;  %v1668_v6 = vadd.f32 %v1667_v12, %v1555_v15  ;;  %v4228_v1 = vld [vmem:[#allocation22_spill] sm:$0xff] }
 0x240   : > { %v1557_v45 = vpop.f32.mrf.mxu1  ;;  %v1780_v47 = vpop.f32.mrf.mxu3 }
 0x241   : > { %v1781_v63 = vadd.f32 %v1780_v47, %v1668_v6  ;;  %1940 = vmatmul.f32.gmra.mxu0 %v3677_v35  ;;  %v1558_v39 = vadd.f32 %v1557_v45, %v4224_v7 }
 0x243   : > { %v1894_v24 = vadd.f32 %v1893_v4, %v1781_v63  ;;  %1604 = vmatmul.f32.gmra.mxu1 %v3653_v48  ;;  %1717 = vmatmul.f32.gmra.mxu2 %v2959_v36  ;;  %v791_v48 = vrot.slane %v3674_v21, 2  ;;  %v792_v36 = vrot.slane %v3670_v2, 2 }
 0x245   : > { %1969 = vst [vmem:[%s3853_s25 + $0x50] sm:$0xff] %v1894_v24  ;;  %v2000_v53 = vadd.f32 %v1999_v62, %v1894_v24  ;;  %v2038_v42 = vmul.f32 %v1894_v24, %v1894_v24  ;;  %1830 = vmatmul.f32.gmra.mxu3 %v3666_v5  ;;  %v4225_v5 = vld [vmem:[#allocation75_spill] sm:$0xff]  ;;  %v793_v21 = vsel %vm673_vm3, %v791_v48, %v792_v36 }
 0x246   : > { %v1670_v31 = vpop.f32.mrf.mxu2  ;;  %v1896_v20 = vpop.f32.mrf.mxu0  ;;  %v795_v16 = vsel %vm673_vm3, %v792_v36, %v794_v41  ;;  %v4229_v24 = vld [vmem:[#allocation23_spill] sm:$0xff] }
 0x247   : > { %v2069_v60 = vadd.f32 %v2068_v59, %v2038_v42  ;;  %v1671_v28 = vadd.f32 %v1670_v31, %v1558_v39 }
 0x248   : > { %v1560_v19 = vpop.f32.mrf.mxu1  ;;  %v1783_v3 = vpop.f32.mrf.mxu3 }
 0x249   : > { %v1784_v0 = vadd.f32 %v1783_v3, %v1671_v28  ;;  %1943 = vmatmul.f32.gmra.mxu0 %v3697_v23  ;;  %v1561_v58 = vadd.f32 %v1560_v19, %v4225_v5 }
 0x24b   : > { %v1897_v33 = vadd.f32 %v1896_v20, %v1784_v0  ;;  %1607 = vmatmul.f32.gmra.mxu1 %v3677_v35  ;;  %2286 = vmatmul.msk.f32.gmra.mxu2 %vm2490_vm1, %v3663_v14 }
 0x24d   : > { %1970 = vst [vmem:[%s3853_s25 + $0x58] sm:$0xff] %v1897_v33  ;;  %v2001_v11 = vadd.f32 %v2000_v53, %v1897_v33  ;;  %v2039_v44 = vmul.f32 %v1897_v33, %v1897_v33  ;;  %1833 = vmatmul.f32.gmra.mxu3 %v3691_v17 }
 0x24e   : > { %v1673_v37 = vpop.f32.mrf.mxu2  ;;  %v1899_v10 = vpop.f32.mrf.mxu0 }
 0x24f   : > { %v2070_v57 = vadd.f32 %v2069_v60, %v2039_v44  ;;  %v1674_v32 = vadd.f32 %v1673_v37, %v1561_v58 }
 0x250   : > { %v1563_v61 = vpop.f32.mrf.mxu1  ;;  %v1786_v35 = vpop.f32.mrf.mxu3 }
 0x251   : > { %v1787_v18 = vadd.f32 %v1786_v35, %v1674_v32  ;;  %1946 = vmatmul.f32.gmra.mxu0 %v793_v21  ;;  %v1564_v50 = vadd.f32 %v1563_v61, %v4226_v56 }
 0x253   : > { %v1900_v14 = vadd.f32 %v1899_v10, %v1787_v18  ;;  %1610 = vmatmul.f32.gmra.mxu1 %v3697_v23  ;;  %1723 = vmatmul.f32.gmra.mxu2 %v3670_v2  ;;  %v4227_v2 = vmov 0.0  }
 0x255   : > { %1971 = vst [vmem:[%s3853_s25 + $0x60] sm:$0xff] %v1900_v14  ;;  %v2002_v17 = vadd.f32 %v2001_v11, %v1900_v14  ;;  %v2040_v22 = vmul.f32 %v1900_v14, %v1900_v14  ;;  %1836 = vmatmul.f32.gmra.mxu3 %v3708_v29 }
 0x256   : > { %v1676_v8 = vpop.f32.mrf.mxu2  ;;  %v1902_v38 = vpop.f32.mrf.mxu0 }
 0x257   : > { %v2071_v49 = vadd.f32 %v2070_v57, %v2040_v22  ;;  %v1677_v34 = vadd.f32 %v1676_v8, %v1564_v50  ;;  %v4230_v22 = vld [vmem:[#allocation25_spill] sm:$0xff] }
 0x258   : > { %v1566_v46 = vpop.f32.mrf.mxu1  ;;  %v1789_v30 = vpop.f32.mrf.mxu3 }
 0x259   : > { %v1790_v43 = vadd.f32 %v1789_v30, %v1677_v34  ;;  %1949 = vmatmul.f32.gmra.mxu0 %v795_v16  ;;  %v1567_v15 = vadd.f32 %v1566_v46, %v3701_v26 }
 0x25b   : > { %v1903_v23 = vadd.f32 %v1902_v38, %v1790_v43  ;;  %1613 = vmatmul.f32.gmra.mxu1 %v793_v21  ;;  %1726 = vmatmul.f32.gmra.mxu2 %v4227_v2 }
 0x25d   : > { %1972 = vst [vmem:[%s3853_s25 + $0x68] sm:$0xff] %v1903_v23  ;;  %v2003_v62 = vadd.f32 %v2002_v17, %v1903_v23  ;;  %v2041_v29 = vmul.f32 %v1903_v23, %v1903_v23  ;;  %1839 = vmatmul.f32.gmra.mxu3 %v4228_v1 }
 0x25e   : > { %v1679_v12 = vpop.f32.mrf.mxu2  ;;  %v1905_v4 = vpop.f32.mrf.mxu0 }
 0x25f   : > { %v2072_v59 = vadd.f32 %v2071_v49, %v2041_v29  ;;  %v1680_v6 = vadd.f32 %v1679_v12, %v1567_v15  ;;  %v4231_v15 = vld [vmem:[#allocation18_spill] sm:$0xff] }
 0x260   : > { %v1569_v45 = vpop.f32.mrf.mxu1  ;;  %v1792_v47 = vpop.f32.mrf.mxu3 }
 0x261   : > { %v1793_v63 = vadd.f32 %v1792_v47, %v1680_v6  ;;  %1952 = vmatmul.f32.gmra.mxu0 %v4229_v24  ;;  %v1570_v26 = vadd.f32 %v1569_v45, %v3711_v51 }
 0x263   : > { %v1906_v7 = vadd.f32 %v1905_v4, %v1793_v63  ;;  %1616 = vmatmul.f32.gmra.mxu1 %v795_v16  ;;  %1729 = vmatmul.f32.gmra.mxu2 %v4227_v2 }
 0x265   : > { %1973 = vst [vmem:[%s3853_s25 + $0x70] sm:$0xff] %v1906_v7  ;;  %v2004_v39 = vadd.f32 %v2003_v62, %v1906_v7  ;;  %v2042_v53 = vmul.f32 %v1906_v7, %v1906_v7  ;;  %1842 = vmatmul.f32.gmra.mxu3 %v4228_v1  ;;  %v4232_v7 = vld [vmem:[#allocation38_spill] sm:$0xff] }
 0x266   : > { %v1682_v42 = vpop.f32.mrf.mxu2  ;;  %v1908_v31 = vpop.f32.mrf.mxu0 }
 0x267   : > { %v2073_v20 = vadd.f32 %v2072_v59, %v2042_v53  ;;  %v1683_v60 = vadd.f32 %v1682_v42, %v1570_v26 }
 0x268   : > { %v1572_v28 = vpop.f32.mrf.mxu1  ;;  %v1795_v19 = vpop.f32.mrf.mxu3 }
 0x269   : > { %v1796_v3 = vadd.f32 %v1795_v19, %v1683_v60  ;;  %1955 = vmatmul.f32.gmra.mxu0 %v4229_v24  ;;  %v1573_v48 = vadd.f32 %v1572_v28, %v3720_v27 }
 0x26b   : > { %v1909_v0 = vadd.f32 %v1908_v31, %v1796_v3 }
 0x26d   : > { %1974 = vst [vmem:[%s3853_s25 + $0x78] sm:$0xff] %v1909_v0  ;;  %v2005_v51 = vadd.f32 %v2004_v39, %v1909_v0  ;;  %v2043_v36 = vmul.f32 %v1909_v0, %v1909_v0 }
 0x26e   : > { %v1685_v33 = vpop.f32.mrf.mxu2  ;;  %v1911_v5 = vpop.f32.mrf.mxu0 }
 0x26f   : > { %v2074_v58 = vadd.f32 %v2073_v20, %v2043_v36  ;;  %v1686_v11 = vadd.f32 %v1685_v33, %v1573_v48  ;;  %v4233_v48 = vld [vmem:[#allocation24_spill] sm:$0xff] }
 0x270   : > { %v1575_v44 = vpop.f32.mrf.mxu1  ;;  %v1798_v37 = vpop.f32.mrf.mxu3 }
 0x271   : > { %v1799_v10 = vadd.f32 %v1798_v37, %v1686_v11  ;;  %v1576_v57 = vadd.f32 %v1575_v44, %v3727_v40 }
 0x273   : > { %v1912_v21 = vadd.f32 %v1911_v5, %v1799_v10 }
 0x275   : > { %1975 = vst [vmem:[%s3853_s25 + $0x80] sm:$0xff] %v1912_v21  ;;  %v2006_v32 = vadd.f32 %v2005_v51, %v1912_v21  ;;  %v2044_v61 = vmul.f32 %v1912_v21, %v1912_v21 }
 0x276   : > { %v1688_v35 = vpop.f32.mrf.mxu2  ;;  %v1914_v18 = vpop.f32.mrf.mxu0 }
 0x277   : > { %v2075_v27 = vadd.f32 %v2074_v58, %v2044_v61  ;;  %v1689_v41 = vadd.f32 %v1688_v35, %v1576_v57 }
 0x278   : > { %v1578_v14 = vpop.f32.mrf.mxu1  ;;  %v1801_v56 = vpop.f32.mrf.mxu3 }
 0x279   : > { %v1802_v50 = vadd.f32 %v1801_v56, %v1689_v41  ;;  %v1579_v8 = vadd.f32 %v1578_v14, %v4230_v22 }
 0x27b   : > { %v1915_v17 = vadd.f32 %v1914_v18, %v1802_v50 }
 0x27d   : > { %1976 = vst [vmem:[%s3853_s25 + $0x88] sm:$0xff] %v1915_v17  ;;  %v2007_v38 = vadd.f32 %v2006_v32, %v1915_v17  ;;  %v2045_v16 = vmul.f32 %v1915_v17, %v1915_v17  ;;  %v4234_v32 = vld [vmem:[#allocation27_spill] sm:$0xff] }
 0x27e   : > { %v1691_v49 = vpop.f32.mrf.mxu2  ;;  %v1917_v34 = vpop.f32.mrf.mxu0 }
 0x27f   : > { %v2076_v40 = vadd.f32 %v2075_v27, %v2045_v16  ;;  %v1692_v46 = vadd.f32 %v1691_v49, %v1579_v8 }
 0x280   : > { %v1581_v30 = vpop.f32.mrf.mxu1  ;;  %v1804_v43 = vpop.f32.mrf.mxu3 }
 0x281   : > { %v1805_v23 = vadd.f32 %v1804_v43, %v1692_v46  ;;  %v1582_v62 = vadd.f32 %v1581_v30, %v4231_v15 }
 0x283   : > { %v1918_v2 = vadd.f32 %v1917_v34, %v1805_v23 }
 0x285   : > { %1977 = vst [vmem:[%s3853_s25 + $0x90] sm:$0xff] %v1918_v2  ;;  %v2008_v29 = vadd.f32 %v2007_v38, %v1918_v2  ;;  %v2046_v1 = vmul.f32 %v1918_v2, %v1918_v2  ;;  %v4235_v38 = vld [vmem:[#allocation21_spill] sm:$0xff] }
 0x286   : > { %v1694_v12 = vpop.f32.mrf.mxu2  ;;  %v1920_v4 = vpop.f32.mrf.mxu0 }
 0x287   : > { %v2077_v59 = vadd.f32 %v2076_v40, %v2046_v1  ;;  %v1695_v6 = vadd.f32 %v1694_v12, %v1582_v62 }
 0x288   : > { %v1584_v45 = vpop.f32.mrf.mxu1  ;;  %v1807_v47 = vpop.f32.mrf.mxu3 }
 0x289   : > { %v1808_v63 = vadd.f32 %v1807_v47, %v1695_v6  ;;  %v1585_v26 = vadd.f32 %v1584_v45, %v4232_v7 }
 0x28b   : > { %v1921_v24 = vadd.f32 %v1920_v4, %v1808_v63 }
 0x28d   : > { %1978 = vst [vmem:[%s3853_s25 + $0x98] sm:$0xff] %v1921_v24  ;;  %v2009_v39 = vadd.f32 %v2008_v29, %v1921_v24  ;;  %v2047_v53 = vmul.f32 %v1921_v24, %v1921_v24  ;;  %v4236_v29 = vld [vmem:[#allocation42_spill] sm:$0xff] }
 0x28e   : > { %v1697_v42 = vpop.f32.mrf.mxu2  ;;  %v1923_v31 = vpop.f32.mrf.mxu0 }
 0x28f   : > { %v2078_v20 = vadd.f32 %v2077_v59, %v2047_v53  ;;  %v1698_v60 = vadd.f32 %v1697_v42, %v1585_v26 }
 0x290   : > { %v1587_v28 = vpop.f32.mrf.mxu1  ;;  %v1810_v19 = vpop.f32.mrf.mxu3 }
 0x291   : > { %v1811_v3 = vadd.f32 %v1810_v19, %v1698_v60  ;;  %v1588_v51 = vadd.f32 %v1587_v28, %v4233_v48 }
 0x293   : > { %v1924_v0 = vadd.f32 %v1923_v31, %v1811_v3 }
 0x295   : > { %1979 = vst [vmem:[%s3853_s25 + $0xa0] sm:$0xff] %v1924_v0  ;;  %v2010_v36 = vadd.f32 %v2009_v39, %v1924_v0  ;;  %v2048_v33 = vmul.f32 %v1924_v0, %v1924_v0  ;;  %v4237_v39 = vld [vmem:[#allocation26_spill] sm:$0xff] }
 0x296   : > { %v1700_v5 = vpop.f32.mrf.mxu2  ;;  %v1926_v58 = vpop.f32.mrf.mxu0 }
 0x297   : > { %v2079_v11 = vadd.f32 %v2078_v20, %v2048_v33  ;;  %v1701_v44 = vadd.f32 %v1700_v5, %v1588_v51 }
 0x298   : > { %v1590_v37 = vpop.f32.mrf.mxu1  ;;  %v1813_v10 = vpop.f32.mrf.mxu3 }
 0x299   : > { %v1814_v21 = vadd.f32 %v1813_v10, %v1701_v44  ;;  %v1591_v61 = vadd.f32 %v1590_v37, %v4234_v32 }
 0x29b   : > { %v1927_v57 = vadd.f32 %v1926_v58, %v1814_v21 }
 0x29d   : > { %1980 = vst [vmem:[%s3853_s25 + $0xa8] sm:$0xff] %v1927_v57  ;;  %v2011_v35 = vadd.f32 %v2010_v36, %v1927_v57  ;;  %v2049_v18 = vmul.f32 %v1927_v57, %v1927_v57 }
 0x29e   : > { %v1703_v27 = vpop.f32.mrf.mxu2  ;;  %v1929_v41 = vpop.f32.mrf.mxu0 }
 0x29f   : > { %v2080_v14 = vadd.f32 %v2079_v11, %v2049_v18  ;;  %v1704_v56 = vadd.f32 %v1703_v27, %v1591_v61 }
 0x2a0   : > { %v1593_v50 = vpop.f32.mrf.mxu1  ;;  %v1816_v17 = vpop.f32.mrf.mxu3 }
 0x2a1   : > { %v1817_v22 = vadd.f32 %v1816_v17, %v1704_v56  ;;  %v1594_v16 = vadd.f32 %v1593_v50, %v4235_v38 }
 0x2a3   : > { %v1930_v8 = vadd.f32 %v1929_v41, %v1817_v22 }
 0x2a5   : > { %1981 = vst [vmem:[%s3853_s25 + $0xb0] sm:$0xff] %v1930_v8  ;;  %v2012_v49 = vadd.f32 %v2011_v35, %v1930_v8  ;;  %v2050_v34 = vmul.f32 %v1930_v8, %v1930_v8 }
 0x2a6   : > { %v1706_v40 = vpop.f32.mrf.mxu2  ;;  %v1932_v46 = vpop.f32.mrf.mxu0 }
 0x2a7   : > { %v2081_v30 = vadd.f32 %v2080_v14, %v2050_v34  ;;  %v1707_v43 = vadd.f32 %v1706_v40, %v1594_v16 }
 0x2a8   : > { %v1596_v23 = vpop.f32.mrf.mxu1  ;;  %v1819_v2 = vpop.f32.mrf.mxu3 }
 0x2a9   : > { %v1820_v15 = vadd.f32 %v1819_v2, %v1707_v43  ;;  %v1597_v1 = vadd.f32 %v1596_v23, %v4236_v29 }
 0x2ab   : > { %v1933_v62 = vadd.f32 %v1932_v46, %v1820_v15 }
 0x2ad   : > { %1982 = vst [vmem:[%s3853_s25 + $0xb8] sm:$0xff] %v1933_v62  ;;  %v2013_v12 = vadd.f32 %v2012_v49, %v1933_v62  ;;  %v2051_v4 = vmul.f32 %v1933_v62, %v1933_v62 }
 0x2ae   : > { %v1709_v59 = vpop.f32.mrf.mxu2  ;;  %v1935_v6 = vpop.f32.mrf.mxu0 }
 0x2af   : > { %v2082_v45 = vadd.f32 %v2081_v30, %v2051_v4  ;;  %v1710_v47 = vadd.f32 %v1709_v59, %v1597_v1 }
 0x2b0   : > { %v1599_v63 = vpop.f32.mrf.mxu1  ;;  %v1822_v24 = vpop.f32.mrf.mxu3 }
 0x2b1   : > { %v1823_v7 = vadd.f32 %v1822_v24, %v1710_v47  ;;  %v1600_v53 = vadd.f32 %v1599_v63, %v4237_v39 }
 0x2b3   : > { %v1936_v26 = vadd.f32 %v1935_v6, %v1823_v7 }
 0x2b5   : > { %1983 = vst [vmem:[%s3853_s25 + $0xc0] sm:$0xff] %v1936_v26  ;;  %v2014_v42 = vadd.f32 %v2013_v12, %v1936_v26  ;;  %v2052_v31 = vmul.f32 %v1936_v26, %v1936_v26 }
 0x2b6   : > { %v1712_v20 = vpop.f32.mrf.mxu2  ;;  %v1938_v60 = vpop.f32.mrf.mxu0 }
 0x2b7   : > { %v2083_v28 = vadd.f32 %v2082_v45, %v2052_v31  ;;  %v1713_v19 = vadd.f32 %v1712_v20, %v1600_v53 }
 0x2b8   : > { %v1602_v3 = vpop.f32.mrf.mxu1  ;;  %v1825_v0 = vpop.f32.mrf.mxu3 }
 0x2b9   : > { %v1826_v48 = vadd.f32 %v1825_v0, %v1713_v19  ;;  %v1603_v36 = vadd.f32 %v1602_v3, %v3800_v25 }
 0x2bb   : > { %v1939_v51 = vadd.f32 %v1938_v60, %v1826_v48 }
 0x2bd   : > { %1984 = vst [vmem:[%s3853_s25 + $0xc8] sm:$0xff] %v1939_v51  ;;  %v2015_v33 = vadd.f32 %v2014_v42, %v1939_v51  ;;  %v2053_v5 = vmul.f32 %v1939_v51, %v1939_v51 }
 0x2be   : > { %v1715_v58 = vpop.f32.mrf.mxu2  ;;  %v1941_v11 = vpop.f32.mrf.mxu0 }
 0x2bf   : > { %v2084_v44 = vadd.f32 %v2083_v28, %v2053_v5  ;;  %v1716_v37 = vadd.f32 %v1715_v58, %v1603_v36 }
 0x2c0   : > { %v1605_v10 = vpop.f32.mrf.mxu1  ;;  %v1828_v21 = vpop.f32.mrf.mxu3 }
 0x2c1   : > { %v1829_v57 = vadd.f32 %v1828_v21, %v1716_v37  ;;  %v1606_v61 = vadd.f32 %v1605_v10, %v3807_v55 }
 0x2c3   : > { %v1942_v32 = vadd.f32 %v1941_v11, %v1829_v57 }
 0x2c5   : > { %1985 = vst [vmem:[%s3853_s25 + $0xd0] sm:$0xff] %v1942_v32  ;;  %v2016_v35 = vadd.f32 %v2015_v33, %v1942_v32  ;;  %v2054_v18 = vmul.f32 %v1942_v32, %v1942_v32 }
 0x2c6   : > { %v1718_v27 = vpop.f32.mrf.mxu2  ;;  %v1944_v41 = vpop.f32.mrf.mxu0 }
 0x2c7   : > { %v2085_v25 = vadd.f32 %v2084_v44, %v2054_v18  ;;  %v1719_v14 = vadd.f32 %v1718_v27, %v1606_v61 }
 0x2c8   : > { %v1608_v56 = vpop.f32.mrf.mxu1  ;;  %v1831_v50 = vpop.f32.mrf.mxu3 }
 0x2c9   : > { %v1832_v17 = vadd.f32 %v1831_v50, %v1719_v14  ;;  %v1609_v8 = vadd.f32 %v1608_v56, %v3816_v13 }
 0x2cb   : > { %v1945_v22 = vadd.f32 %v1944_v41, %v1832_v17 }
 0x2cd   : > { %1986 = vst [vmem:[%s3853_s25 + $0xd8] sm:$0xff] %v1945_v22  ;;  %v2017_v38 = vadd.f32 %v2016_v35, %v1945_v22  ;;  %v2055_v16 = vmul.f32 %v1945_v22, %v1945_v22 }
 0x2ce   : > { %v1721_v49 = vpop.f32.mrf.mxu2  ;;  %v1947_v34 = vpop.f32.mrf.mxu0 }
 0x2cf   : > { %v2086_v55 = vadd.f32 %v2085_v25, %v2055_v16  ;;  %v1722_v40 = vadd.f32 %v1721_v49, %v1609_v8 }
 0x2d0   : > { %v1611_v46 = vpop.f32.mrf.mxu1  ;;  %v1834_v30 = vpop.f32.mrf.mxu3 }
 0x2d1   : > { %v1835_v43 = vadd.f32 %v1834_v30, %v1722_v40  ;;  %v1612_v2 = vadd.f32 %v1611_v46, %v3823_v54 }
 0x2d3   : > { %v1948_v23 = vadd.f32 %v1947_v34, %v1835_v43 }
 0x2d5   : > { %1987 = vst [vmem:[%s3853_s25 + $0xe0] sm:$0xff] %v1948_v23  ;;  %v2018_v15 = vadd.f32 %v2017_v38, %v1948_v23  ;;  %v2056_v62 = vmul.f32 %v1948_v23, %v1948_v23 }
 0x2d6   : > { %v1724_v29 = vpop.f32.mrf.mxu2  ;;  %v1950_v1 = vpop.f32.mrf.mxu0 }
 0x2d7   : > { %v2087_v13 = vadd.f32 %v2086_v55, %v2056_v62  ;;  %v1725_v12 = vadd.f32 %v1724_v29, %v1612_v2 }
 0x2d8   : > { %v1614_v4 = vpop.f32.mrf.mxu1  ;;  %v1837_v59 = vpop.f32.mrf.mxu3 }
 0x2d9   : > { %v1838_v6 = vadd.f32 %v1837_v59, %v1725_v12  ;;  %v1615_v47 = vadd.f32 %v1614_v4, %v3832_v9 }
 0x2db   : > { %v1951_v45 = vadd.f32 %v1950_v1, %v1838_v6 }
 0x2dd   : > { %1988 = vst [vmem:[%s3853_s25 + $0xe8] sm:$0xff] %v1951_v45  ;;  %v2019_v63 = vadd.f32 %v2018_v15, %v1951_v45  ;;  %v2057_v24 = vmul.f32 %v1951_v45, %v1951_v45 }
 0x2de   : > { %v1727_v7 = vpop.f32.mrf.mxu2  ;;  %v1953_v26 = vpop.f32.mrf.mxu0 }
 0x2df   : > { %v2088_v54 = vadd.f32 %v2087_v13, %v2057_v24  ;;  %v1728_v39 = vadd.f32 %v1727_v7, %v1615_v47 }
 0x2e0   : > { %v1840_v53 = vpop.f32.mrf.mxu3  ;;  %v1617_v31 = vpop.f32.mrf.mxu1 }
 0x2e1   : > { %v1841_v42 = vadd.f32 %v1840_v53, %v1728_v39  ;;  %v1618_v60 = vadd.f32 %v1617_v31, %v3839_v52 }
 0x2e3   : > { %v1954_v20 = vadd.f32 %v1953_v26, %v1841_v42 }
 0x2e5   : > { %1989 = vst [vmem:[%s3853_s25 + $0xf0] sm:$0xff] %v1954_v20  ;;  %v2020_v28 = vadd.f32 %v2019_v63, %v1954_v20  ;;  %v2058_v19 = vmul.f32 %v1954_v20, %v1954_v20 }
 0x2e6   : > { %v1730_v3 = vpop.f32.mrf.mxu2  ;;  %v1956_v51 = vpop.f32.mrf.mxu0 }
 0x2e7   : > { %v2089_v0 = vadd.f32 %v2088_v54, %v2058_v19  ;;  %v1731_v9 = vadd.f32 %v1730_v3, %v1618_v60 }
 0x2e8   : > { %v1843_v48 = vpop.f32.mrf.mxu3 }
 0x2e9   : > { %v1844_v36 = vadd.f32 %v1843_v48, %v1731_v9 }
 0x2eb   : > { %v1957_v33 = vadd.f32 %v1956_v51, %v1844_v36 }
 0x2ed   : > { %1990 = vst [vmem:[%s3853_s25 + $0xf8] sm:$0xff] %v1957_v33  ;;  %v2021_v5 = vadd.f32 %v2020_v28, %v1957_v33  ;;  %v2059_v58 = vmul.f32 %v1957_v33, %v1957_v33 }
 0x2ef   : > { %v2022_v11 = vrot.slane %v2021_v5, 4  ;;  %v2090_v44 = vadd.f32 %v2089_v0, %v2059_v58 }
 0x2f1   : > { %v2023_v37 = vadd.f32 %v2022_v11, %v2021_v5  ;;  %v2091_v10 = vrot.slane %v2090_v44, 4 }
 0x2f3   : > { %v2024_v21 = vrot.slane %v2023_v37, 2  ;;  %v2092_v52 = vadd.f32 %v2091_v10, %v2090_v44 }
 0x2f5   : > { %v2025_v57 = vadd.f32 %v2024_v21, %v2023_v37  ;;  %v2093_v32 = vrot.slane %v2092_v52, 2 }
 0x2f7   : > { %v2026_v61 = vrot.slane %v2025_v57, 1  ;;  %v2094_v35 = vadd.f32 %v2093_v32, %v2092_v52 }
 0x2f9   : > { %v2095_v18 = vrot.slane %v2094_v35, 1  ;;  %v2027_v27 = vadd.f32 %v2026_v61, %v2025_v57 }
 0x2fb   : > { %v2096_v41 = vadd.f32 %v2095_v18, %v2094_v35 }
 0x2fd   : > { %v2097_v25 = vsel %vm404_vm0, %v2027_v27, %v2096_v41 }
 0x2fe   : > { %2098 = vst [vmem:[%s235_s28] sm:$0x3] %v2097_v25 }
 0x2ff PF: > { %s16_s18 = sadd.s32 1, %s2358_s18  }
 0x300   : > { %p13_p4 = scmp.ge.s32.totalorder %s16_s18, 4  }
 0x302   :  { %15 = sbr.rel (!%p13_p4) target bundleno = 1 (0x1), region = 78 }

</bundles_post_ra>
